<compile_context>
chip_gen: v5e
topology: v5e:2x2
jax: 0.10.0
libtpu: 0.0.40
codegen_flags: <defaults>
</compile_context>

<pallas_src>
import functools

import jax
import jax.numpy as jnp
from jax.experimental import pallas as pl
from jax.experimental.pallas import tpu as pltpu


def _kl_pair_kernel(s_i_ref, s_j_ref, t_i_ref, t_j_ref, o_ref, acc_ref, *,
                    inv_temp):
    """One grid step (i, row_tile, j): fused KL(softmax(t_sim) || softmax(s_sim))
    over a (TM, HW) row tile of the pairwise similarity maps, accumulated across
    the j axis into a VMEM scratch and flushed to the output block at the last j."""
    j = pl.program_id(2)

    @pl.when(j == 0)
    def _init():
        acc_ref[...] = jnp.zeros_like(acc_ref)

    # (C, TM) x (C, HW), contracting over C (dim 0 of both) -> (TM, HW).
    dn = (((0,), (0,)), ((), ()))
    s_sim = jax.lax.dot_general(
        s_i_ref[...], s_j_ref[...], dn,
        preferred_element_type=jnp.float32) * inv_temp
    t_sim = jax.lax.dot_general(
        t_i_ref[...], t_j_ref[...], dn,
        preferred_element_type=jnp.float32) * inv_temp

    # Student log-softmax pieces (row-wise, over the lane axis).
    s_max = jnp.max(s_sim, axis=1, keepdims=True)
    s_shift = s_sim - s_max
    s_lse = jnp.log(jnp.sum(jnp.exp(s_shift), axis=1, keepdims=True))

    # Teacher softmax pieces.
    t_max = jnp.max(t_sim, axis=1, keepdims=True)
    t_shift = t_sim - t_max
    t_exp = jnp.exp(t_shift)
    t_sum = jnp.sum(t_exp, axis=1, keepdims=True)

    # Fused KL without materializing p_t / log_p_t / log_p_s:
    #   sum_cols p_t * (log p_t - log p_s)
    #     = (1/t_sum) * sum_cols t_exp * (t_shift - s_shift) + (s_lse - log t_sum)
    inner = jnp.sum(t_exp * (t_shift - s_shift), axis=1, keepdims=True)
    row_kl = inner * pl.reciprocal(t_sum, approx=False) + (s_lse - jnp.log(t_sum))

    # Raw partial sum for this (i, row_tile); 1/(HW*B^2) scaling in the wrapper.
    acc_ref[...] = acc_ref[...] + jnp.sum(row_kl)

    @pl.when(j == pl.num_programs(2) - 1)
    def _finalize():
        o_ref[...] = acc_ref[...]


def _pick_row_tile(hw):
    """Largest TM dividing HW, multiple of 128, keeping the ~6 live (TM, HW) f32
    temporaries within ~24 MiB; falls back to HW when HW isn't 128-aligned."""
    if hw % 128 != 0:
        return hw
    budget = 24 << 20
    best = 128
    tm = 128
    while tm <= min(hw, 2048):
        if hw % tm == 0 and 6 * tm * hw * 4 <= budget:
            best = tm
        tm += 128
    return best


def cirkd_mini_batch_cross_image_pair(feat_S, feat_T, temperature,
                                      pooling=False):
    """Forward of CriterionMiniBatchCrossImagePair.

    feat_S, feat_T: [B, C, H, W] (NCHW, matching the PyTorch module).
    Returns a scalar float32 loss.
    """
    if pooling:
        # TODO(synk): AvgPool2d(2,2, ceil_mode=True) pre-pooling path not implemented.
        raise NotImplementedError("pooling=True path not implemented")

    B, C, H, W = feat_S.shape
    HW = H * W

    def normalize_and_flatten(x):
        x = x.astype(jnp.float32)
        # F.normalize(p=2, dim=1): x / max(||x||_2 over C, eps)
        norm = jnp.sqrt(jnp.sum(x * x, axis=1, keepdims=True))
        x = x / jnp.maximum(norm, 1e-12)
        # NCHW -> [B, C, HW]: channel-first (C on sublanes, HW on lanes).
        return x.reshape(B, C, HW)

    S = normalize_and_flatten(feat_S)
    T = normalize_and_flatten(feat_T)

    TM = _pick_row_tile(HW)
    n_rt = HW // TM

    kernel = functools.partial(_kl_pair_kernel,
                               inv_temp=1.0 / float(temperature))

    feat_spec_i = pl.BlockSpec((pl.Squeezed(), C, TM), lambda i, r, j: (i, 0, r))
    feat_spec_j = pl.BlockSpec((pl.Squeezed(), C, HW), lambda i, r, j: (j, 0, 0))
    out_spec = pl.BlockSpec((pl.Squeezed(), pl.Squeezed(), 8, 128),
                            lambda i, r, j: (i, r, 0, 0))

    # Explicit VMEM budget: double-buffered input windows + (TM, HW) temporaries
    # + output/acc + headroom; capped at 48 MiB so it fits v7x physical VMEM.
    c_pad = ((C + 7) // 8) * 8
    hw_pad = ((HW + 127) // 128) * 128
    tm_pad = ((TM + 127) // 128) * 128
    vmem_est = (2 * 2 * 4 * c_pad * (tm_pad + hw_pad)   # 4 input windows, 2 bufs, f32
                + 6 * TM * hw_pad * 4                   # elementwise temporaries
                + 4 * 8 * 128 * 4                       # output block + acc scratch
                + (8 << 20))                            # headroom
    vmem_limit = int(min(max(vmem_est, 32 << 20), 48 << 20))

    out = pl.pallas_call(
        kernel,
        out_shape=jax.ShapeDtypeStruct((B, n_rt, 8, 128), jnp.float32),
        grid=(B, n_rt, B),
        in_specs=[feat_spec_i, feat_spec_j, feat_spec_i, feat_spec_j],
        out_specs=out_spec,
        scratch_shapes=[pltpu.VMEM((8, 128), jnp.float32)],
        compiler_params=pltpu.CompilerParams(
            dimension_semantics=("parallel", "parallel", "arbitrary"),
            vmem_limit_bytes=vmem_limit),
    )(S, S, T, T)

    # Each (i, r) block is a constant (8,128) tile holding that tile's partial sum.
    partials = out[:, :, 0, 0]
    return jnp.sum(partials) / (HW * B * B)


def _reference(feat_S, feat_T, temperature):
    """Pure-JAX reference mirroring the PyTorch semantics (for verification)."""
    B, C, H, W = feat_S.shape
    HW = H * W

    def norm_flat(x):
        x = x.astype(jnp.float32)
        n = jnp.sqrt(jnp.sum(x * x, axis=1, keepdims=True))
        x = x / jnp.maximum(n, 1e-12)
        return x.reshape(B, C, HW).transpose(0, 2, 1)

    S = norm_flat(feat_S)
    T = norm_flat(feat_T)
    total = 0.0
    for i in range(B):
        for j in range(B):
            s_sim = (S[i] @ S[j].T) / temperature
            t_sim = (T[i] @ T[j].T) / temperature
            log_p_s = jax.nn.log_softmax(s_sim, axis=1)
            p_t = jax.nn.softmax(t_sim, axis=1)
            log_p_t = jax.nn.log_softmax(t_sim, axis=1)
            total = total + jnp.sum(p_t * (log_p_t - log_p_s)) / HW
    return total / (B * B)


if __name__ == "__main__":
    key = jax.random.PRNGKey(0)
    k1, k2 = jax.random.split(key)

    B, C, H, W = 2, 4, 16, 16
    temperature = 0.1

    feat_S = jax.random.normal(k1, (B, C, H, W), dtype=jnp.float32)
    feat_T = jax.random.normal(k2, (B, C, H, W), dtype=jnp.float32)

    loss = cirkd_mini_batch_cross_image_pair(feat_S, feat_T, temperature)
    loss = jax.block_until_ready(loss)

    ref = jax.block_until_ready(_reference(feat_S, feat_T, temperature))
    assert jnp.allclose(loss, ref, rtol=1e-4, atol=1e-5), (loss, ref)

    print("KERNEL_OK")
</pallas_src>

<mosaic_0001>
module attributes {stable_mosaic.version = 11 : i64} {
  func.func @_kl_pair_kernel(%arg0: i32, %arg1: i32, %arg2: i32, %arg3: memref<1x4x256xf32, #tpu.memory_space<vmem>>, %arg4: memref<1x4x256xf32, #tpu.memory_space<vmem>>, %arg5: memref<1x4x256xf32, #tpu.memory_space<vmem>>, %arg6: memref<1x4x256xf32, #tpu.memory_space<vmem>>, %arg7: memref<1x1x8x128xf32, #tpu.memory_space<vmem>>, %arg8: memref<8x128xf32, #tpu.memory_space<vmem>>) attributes {dimension_semantics = [#tpu.dimension_semantics<parallel>, #tpu.dimension_semantics<parallel>, #tpu.dimension_semantics<arbitrary>], iteration_bounds = array<i64: 2, 1, 2>, scalar_prefetch = 0 : i64, scratch_operands = 1 : i64, tpu.core_type = #tpu.core_type<tc>, window_params = [{transform_indices = @transform_0, window_bounds = array<i64: 1, 4, 256>}, {transform_indices = @transform_1, window_bounds = array<i64: 1, 4, 256>}, {transform_indices = @transform_2, window_bounds = array<i64: 1, 4, 256>}, {transform_indices = @transform_3, window_bounds = array<i64: 1, 4, 256>}, {transform_indices = @transform_4, window_bounds = array<i64: 1, 1, 8, 128>}]} {
    %c0_i32 = arith.constant 0 : i32
    %0 = arith.cmpi eq, %arg2, %c0_i32 : i32
    %1 = arith.extui %0 : i1 to i32
    %c0_i32_0 = arith.constant 0 : i32
    %2 = arith.cmpi ne, %1, %c0_i32_0 : i32
    scf.if %2 {
      %cst_26 = arith.constant 0.000000e+00 : f32
      %52 = vector.broadcast %cst_26 : f32 to vector<8x128xf32>
      %c0_27 = arith.constant 0 : index
      %c0_28 = arith.constant 0 : index
      %53 = vector.load %arg8[%c0_27, %c0_28] : memref<8x128xf32, #tpu.memory_space<vmem>>, vector<8x128xf32>
      tpu.vector_store %arg8[%c0_27, %c0_28], %52 {strides = array<i32>} : memref<8x128xf32, #tpu.memory_space<vmem>>, vector<8x128xf32>,
    } else {
    }
    %c0 = arith.constant 0 : index
    %c0_1 = arith.constant 0 : index
    %c0_2 = arith.constant 0 : index
    %3 = vector.load %arg3[%c0, %c0_1, %c0_2] : memref<1x4x256xf32, #tpu.memory_space<vmem>>, vector<1x4x256xf32>
    %4 = vector.shape_cast %3 : vector<1x4x256xf32> to vector<4x256xf32>
    %c0_3 = arith.constant 0 : index
    %c0_4 = arith.constant 0 : index
    %c0_5 = arith.constant 0 : index
    %5 = vector.load %arg4[%c0_3, %c0_4, %c0_5] : memref<1x4x256xf32, #tpu.memory_space<vmem>>, vector<1x4x256xf32>
    %6 = vector.shape_cast %5 : vector<1x4x256xf32> to vector<4x256xf32>
    %cst = arith.constant dense<0.000000e+00> : vector<256x256xf32>
    %7 = tpu.matmul %4, %6, %cst {dimension_numbers = #tpu.dot_dimension_numbers<[0], [0], [1], [1], [0, 1, 1, 1], [], []>} : vector<4x256xf32>, vector<4x256xf32>, vector<256x256xf32> -> vector<256x256xf32>
    %cst_6 = arith.constant 1.000000e+01 : f32
    %8 = vector.broadcast %cst_6 : f32 to vector<256x256xf32>
    %9 = arith.mulf %7, %8 : vector<256x256xf32>
    %c0_7 = arith.constant 0 : index
    %c0_8 = arith.constant 0 : index
    %c0_9 = arith.constant 0 : index
    %10 = vector.load %arg5[%c0_7, %c0_8, %c0_9] : memref<1x4x256xf32, #tpu.memory_space<vmem>>, vector<1x4x256xf32>
    %11 = vector.shape_cast %10 : vector<1x4x256xf32> to vector<4x256xf32>
    %c0_10 = arith.constant 0 : index
    %c0_11 = arith.constant 0 : index
    %c0_12 = arith.constant 0 : index
    %12 = vector.load %arg6[%c0_10, %c0_11, %c0_12] : memref<1x4x256xf32, #tpu.memory_space<vmem>>, vector<1x4x256xf32>
    %13 = vector.shape_cast %12 : vector<1x4x256xf32> to vector<4x256xf32>
    %cst_13 = arith.constant dense<0.000000e+00> : vector<256x256xf32>
    %14 = tpu.matmul %11, %13, %cst_13 {dimension_numbers = #tpu.dot_dimension_numbers<[0], [0], [1], [1], [0, 1, 1, 1], [], []>} : vector<4x256xf32>, vector<4x256xf32>, vector<256x256xf32> -> vector<256x256xf32>
    %cst_14 = arith.constant 1.000000e+01 : f32
    %15 = vector.broadcast %cst_14 : f32 to vector<256x256xf32>
    %16 = arith.mulf %14, %15 : vector<256x256xf32>
    %cst_15 = arith.constant dense<0xFF800000> : vector<256xf32>
    %17 = vector.multi_reduction <maximumf>, %9, %cst_15 [1] : vector<256x256xf32> to vector<256xf32>
    %18 = vector.shape_cast %17 : vector<256xf32> to vector<256x1xf32>
    %19 = vector.broadcast %18 : vector<256x1xf32> to vector<256x256xf32>
    %20 = arith.subf %9, %19 : vector<256x256xf32>
    %21 = math.exp %20 : vector<256x256xf32>
    %cst_16 = arith.constant dense<0.000000e+00> : vector<256xf32>
    %22 = vector.multi_reduction <add>, %21, %cst_16 [1] : vector<256x256xf32> to vector<256xf32>
    %23 = vector.shape_cast %22 : vector<256xf32> to vector<256x1xf32>
    %24 = math.log %23 : vector<256x1xf32>
    %cst_17 = arith.constant dense<0xFF800000> : vector<256xf32>
    %25 = vector.multi_reduction <maximumf>, %16, %cst_17 [1] : vector<256x256xf32> to vector<256xf32>
    %26 = vector.shape_cast %25 : vector<256xf32> to vector<256x1xf32>
    %27 = vector.broadcast %26 : vector<256x1xf32> to vector<256x256xf32>
    %28 = arith.subf %16, %27 : vector<256x256xf32>
    %29 = math.exp %28 : vector<256x256xf32>
    %cst_18 = arith.constant dense<0.000000e+00> : vector<256xf32>
    %30 = vector.multi_reduction <add>, %29, %cst_18 [1] : vector<256x256xf32> to vector<256xf32>
    %31 = vector.shape_cast %30 : vector<256xf32> to vector<256x1xf32>
    %32 = arith.subf %28, %20 : vector<256x256xf32>
    %33 = arith.mulf %29, %32 : vector<256x256xf32>
    %cst_19 = arith.constant dense<0.000000e+00> : vector<256xf32>
    %34 = vector.multi_reduction <add>, %33, %cst_19 [1] : vector<256x256xf32> to vector<256xf32>
    %35 = vector.shape_cast %34 : vector<256xf32> to vector<256x1xf32>
    %36 = tpu.reciprocal %31 : vector<256x1xf32> -> vector<256x1xf32>
    %37 = arith.mulf %35, %36 : vector<256x1xf32>
    %38 = math.log %31 : vector<256x1xf32>
    %39 = arith.subf %24, %38 : vector<256x1xf32>
    %40 = arith.addf %37, %39 : vector<256x1xf32>
    %c0_20 = arith.constant 0 : index
    %c0_21 = arith.constant 0 : index
    %41 = vector.load %arg8[%c0_20, %c0_21] : memref<8x128xf32, #tpu.memory_space<vmem>>, vector<8x128xf32>
    %42 = vector.shape_cast %40 : vector<256x1xf32> to vector<1x256x1xf32>
    %cst_22 = arith.constant dense<0.000000e+00> : vector<1xf32>
    %43 = vector.multi_reduction <add>, %42, %cst_22 [1, 2] : vector<1x256x1xf32> to vector<1xf32>
    %44 = vector.shape_cast %43 : vector<1xf32> to vector<1x1x1xf32>
    %45 = vector.extract %44[0, 0, 0] : f32 from vector<1x1x1xf32>
    %46 = vector.broadcast %45 : f32 to vector<8x128xf32>
    %47 = arith.addf %41, %46 : vector<8x128xf32>
    %c0_23 = arith.constant 0 : index
    %c0_24 = arith.constant 0 : index
    %48 = vector.load %arg8[%c0_23, %c0_24] : memref<8x128xf32, #tpu.memory_space<vmem>>, vector<8x128xf32>
    tpu.vector_store %arg8[%c0_23, %c0_24], %47 {strides = array<i32>} : memref<8x128xf32, #tpu.memory_space<vmem>>, vector<8x128xf32>,
    %c1_i32 = arith.constant 1 : i32
    %49 = arith.cmpi eq, %arg2, %c1_i32 : i32
    %50 = arith.extui %49 : i1 to i32
    %c0_i32_25 = arith.constant 0 : i32
    %51 = arith.cmpi ne, %50, %c0_i32_25 : i32
    scf.if %51 {
      %c0_26 = arith.constant 0 : index
      %c0_27 = arith.constant 0 : index
      %52 = vector.load %arg8[%c0_26, %c0_27] : memref<8x128xf32, #tpu.memory_space<vmem>>, vector<8x128xf32>
      %c0_28 = arith.constant 0 : index
      %c0_29 = arith.constant 0 : index
      %c0_30 = arith.constant 0 : index
      %c0_31 = arith.constant 0 : index
      %53 = vector.load %arg7[%c0_28, %c0_29, %c0_30, %c0_31] : memref<1x1x8x128xf32, #tpu.memory_space<vmem>>, vector<1x1x8x128xf32>
      %54 = vector.shape_cast %53 : vector<1x1x8x128xf32> to vector<8x128xf32>
      %55 = vector.shape_cast %52 : vector<8x128xf32> to vector<1x1x8x128xf32>
      tpu.vector_store %arg7[%c0_28, %c0_29, %c0_30, %c0_31], %55 {strides = array<i32>} : memref<1x1x8x128xf32, #tpu.memory_space<vmem>>, vector<1x1x8x128xf32>,
    } else {
    }
    return
  }
  func.func @transform_0(%arg0: i32, %arg1: i32, %arg2: i32) -> (i32, i32, i32) {
    %c0_i32 = arith.constant 0 : i32
    %c0_i32_0 = arith.constant 0 : i32
    return %arg0, %c0_i32, %arg1 : i32, i32, i32
  }
  func.func @transform_1(%arg0: i32, %arg1: i32, %arg2: i32) -> (i32, i32, i32) {
    %c0_i32 = arith.constant 0 : i32
    %c0_i32_0 = arith.constant 0 : i32
    %c0_i32_1 = arith.constant 0 : i32
    return %arg2, %c0_i32, %c0_i32_0 : i32, i32, i32
  }
  func.func @transform_2(%arg0: i32, %arg1: i32, %arg2: i32) -> (i32, i32, i32) {
    %c0_i32 = arith.constant 0 : i32
    %c0_i32_0 = arith.constant 0 : i32
    return %arg0, %c0_i32, %arg1 : i32, i32, i32
  }
  func.func @transform_3(%arg0: i32, %arg1: i32, %arg2: i32) -> (i32, i32, i32) {
    %c0_i32 = arith.constant 0 : i32
    %c0_i32_0 = arith.constant 0 : i32
    %c0_i32_1 = arith.constant 0 : i32
    return %arg2, %c0_i32, %c0_i32_0 : i32, i32, i32
  }
  func.func @transform_4(%arg0: i32, %arg1: i32, %arg2: i32) -> (i32, i32, i32, i32) {
    %c0_i32 = arith.constant 0 : i32
    %c0_i32_0 = arith.constant 0 : i32
    %c0_i32_1 = arith.constant 0 : i32
    return %arg0, %arg1, %c0_i32, %c0_i32_0 : i32, i32, i32, i32
  }
}

</mosaic_0001>

<bundles_post_ra>
// kernel: tpu_custom_call.1
= control target key start
LH: loop header
LB: loop body
LE: loop exit
PB: predicated region body
PF: predicated region fallthrough
CT: control target
= control target key end

     0   :  { %s7141_s0 = inlined_call_operand.hbm [shape: f32[2,4,256], index: 0, kind: input, shape index: {}]   ;;  %s7142_s1 = inlined_call_operand.hbm [shape: f32[2,4,256], index: 1, kind: input, shape index: {}]   ;;  %s7143_s2 = inlined_call_operand.hbm [shape: f32[2,4,256], index: 2, kind: input, shape index: {}]   ;;  %s7144_s3 = inlined_call_operand.hbm [shape: f32[2,4,256], index: 3, kind: input, shape index: {}]   ;;  %s7145_s4 = inlined_call_operand.hbm [shape: f32[2,1,8,128], index: 4, kind: output, shape index: {}]  }
   0x1   :  { %7276 = sst [smem:[#allocation116_spill]] %s7141_s0 }
   0x2   :  { %7277 = sst [smem:[#allocation117_spill]] %s7142_s1 }
   0x3   :  { %7278 = sst [smem:[#allocation118_spill]] %s7145_s4 }
   0x4   :  { %9 = vsyncpa [#allocation4], 0 }
   0x5   :  { %11 = vsyncpa [#allocation4 + $0x1], 0 }
   0x6   :  { %12 = vsyncpa [#allocation7], 0 }
   0x7   :  { %14 = vsyncpa [#allocation7 + $0x1], 0 }
   0x8   :  { %15 = vsyncpa [#allocation10], 0 }
   0x9   :  { %17 = vsyncpa [#allocation10 + $0x1], 0 }
   0xa   :  { %18 = vsyncpa [#allocation5], 0 }
   0xb   :  { %20 = vsyncpa [#allocation5 + $0x1], 0  ;;  %s4239_s15 = smov 0   ;;  %s4241_s16 = smov 0  }
   0xc   :  { %s4243_s17 = smov 0   ;;  %s4245_s18 = smov 0  }
   0xd   :  { %s4247_s19 = smov 0   ;;  %s4249_s20 = smov 0  }
   0xe   :  { %s4251_s21 = smov 0   ;;  %s4253_s22 = smov 0  }
   0xf   :  { %s4255_s23 = smov 0   ;;  %s4257_s24 = smov 0  }
  0x10   :  { %s4259_s25 = smov 0  }
  0x11 LB: > { %7279 = sst [smem:[#allocation17_spill]] %s4183_s18  ;;  %s4293_s26 = sadd.s32 4294967295, %s4211_s25   ;;  %s4211_s25 = sphi %s4259_s25, %s26_s25   ;;  %s4207_s24 = sphi %s4257_s24, %s7693_s24   ;;  %s4203_s23 = sphi %s4255_s23, %s7700_s23   ;;  %s4199_s22 = sphi %s4253_s22, %s7691_s22   ;;  %s4195_s21 = sphi %s4251_s21, %s7699_s21   ;;  %s4191_s20 = sphi %s4249_s20, %s7690_s20   ;;  %s4187_s19 = sphi %s4247_s19, %s7698_s19   ;;  %s4183_s18 = sphi %s4245_s18, %s7697_s18   ;;  %s4179_s17 = sphi %s4243_s17, %s7696_s17   ;;  %s4175_s16 = sphi %s4241_s16, %s7695_s16   ;;  %s4171_s15 = sphi %s4239_s15, %s7694_s15  }
  0x12   : > { %7280 = sst [smem:[#allocation18_spill]] %s4191_s20  ;;  %s38_s27 = sadd.s32 1, %s4203_s23 }
  0x13   : > { %7281 = sst [smem:[#allocation19_spill]] %s4195_s21  ;;  %p4296_p0 = scmp.ge.s32.totalorder %s38_s27, 2 }
  0x14   : > { %7282 = sst [smem:[#allocation20_spill]] %s4199_s22  ;;  %p62_p1 = scmp.eq.s32.totalorder %s4211_s25, 0 }
  0x15   : > { %7283 = sst [smem:[#allocation21_spill]] %s4207_s24  ;;  %p68_p2 = scmp.eq.s32.totalorder %s4293_s26, 0 }
  0x16   : > { %7284 = sst [smem:[#allocation22_spill]] %s4211_s25  ;;  %s80_s29 = sadd.s32 1, %s4179_s17 }
  0x17   : > { %s7702_s27 = smov (%p4296_p0, %s38_s27), 0  ;;  %p87_p3 = scmp.ne.s32.totalorder %s4179_s17, %s4175_s16 }
  0x18   : > { %7286 = sst [smem:[#allocation23_spill]] %s7702_s27  ;;  %p93_p4 = scmp.ne.s32.totalorder %s4175_s16, %s4171_s15 }
  0x19   : > { %s77_s30 = ssub.s32 %s4203_s23, %s7702_s27  ;;  %p4314_p6 = por %p87_p3, %p62_p1 }
  0x1a   : > { %p78_p5 = scmp.eq.s32.totalorder %s77_s30, 0  ;;  %p4320_p7 = por %p93_p4, %p68_p2 }
  0x1b   : > { %p7148_p8 = scmp.lt.s32.totalorder %s4211_s25, 4  ;;  %s221_s8 = sand.u32 1, %s4211_s25  }
  0x1c   : > { %s7288_s6 = scalar_select %p4320_p7, 1, 0 }
  0x1d   : > { %s4326_s7 = scalar_select %p78_p5, %s4179_s17, %s80_s29  }
  0x1e   : > { %7289 = sst [smem:[#allocation24_spill]] %s7288_s6  ;;  %s7146_s9 = sand.u32 1, %s4179_s17  }
  0x1f   : > { %7290 = sst [smem:[#allocation25_spill]] %s4326_s7  ;;  %s4332_s10 = sshll.u32 %s7146_s9, 3 }
  0x20   : > { %s7147_s11 = sshll.u32 %s4203_s23, 3  ;;  %s7291_s1 = sld [smem:[#allocation117_spill]] }
  0x21   : > { %s225_s15 = scalar_lea.vmem [#allocation6], %s4332_s10  ;;  %p4345_p9 = pnand %p7148_p8, %p4314_p6 }
  0x22   : > { %s234_s29 = sshll.u32 %s225_s15, 4  ;;  %p3240_p10 = scmp.ge.s32.totalorder %s4211_s25, 1  ;;  %s235_s29 = int_to_ptr.vmem [resolvable:$true] %s234_s29 }
  0x23   : > { %p281_p11 = scmp.lt.s32.totalorder %s4211_s25, 5  ;;  %s4351_s12 = scalar_lea.sflag [#allocation7], %s221_s8 }
  0x24   : > { %s3225_s5 = sadd.s32 4294967294, %s4211_s25   ;;  %s54_s15 = sadd.s32 1, %s4191_s20 }
  0x25   : > { %p4356_p12 = pnand %p3240_p10, %p281_p11  ;;  %p61_p13 = scmp.ne.s32.totalorder %s4191_s20, %s4187_s19 }
  0x26   : > { %s230_s14 = scalar_lea.hbm %s7291_s1, %s7147_s11  ;;  %p67_p4 = scmp.ne.s32.totalorder %s4187_s19, %s4183_s18 }
  0x27   : > { %s232_s30 = sshll.u32 %s230_s14, 4  ;;  %s45_s14 = sadd.s32 1, %s4207_s24  ;;  %s233_s30 = int_to_ptr.hbm [resolvable:$true] %s232_s30 }
  0x28   : > { %3406 = dma.hbm_to_vmem [thread:$0]  (!%p4345_p9), %s233_s30, 128, %s235_s29, %s4351_s12  }
  0x29   : > { %s7704_s14 = smov (!%p4296_p0, %s45_s14), %s4207_s24  ;;  %p4372_p5 = por %p62_p1, %p61_p13 }
  0x2a   : > { %p47_p3 = scmp.ge.s32.totalorder %s7704_s14, 2  ;;  %p173_p6 = scmp.eq.s32.totalorder %s4293_s26, 3 }
  0x2b   : > { %p4381_p10 = por %p68_p2, %p67_p4  ;;  %p179_p1 = scmp.eq.s32.totalorder %s3225_s5, 3 }
  0x2c   : > { %s7706_s14 = smov (%p47_p3, %s7704_s14), 0  ;;  %p4385_p0 = por %p173_p6, %p61_p13 }
  0x2d   : > { %7295 = sst [smem:[#allocation26_spill]] %s7706_s14  ;;  %s49_s30 = ssub.s32 %s4207_s24, %s7706_s14 }
  0x2e   : > { %s7297_s28 = scalar_select %p4385_p0, 1, 0 }
  0x2f   : > { %p52_p11 = scmp.eq.s32.totalorder %s49_s30, 0  ;;  %s199_s11 = sand.u32 1, %s4191_s20  }
  0x30   : > { %7298 = sst [smem:[#allocation27_spill]] %s7297_s28  ;;  %p4392_p8 = por %p179_p1, %p67_p4 }
  0x31   : > { %s4397_s27 = scalar_select %p52_p11, %s4191_s20, %s54_s15  }
  0x32   : > { %s7299_s1 = scalar_select %p4392_p8, 1, 0 }
  0x33   : > { %7301 = sst [smem:[#allocation29_spill]] %s4397_s27  ;;  %s3228_s7 = sshll.u32 %s199_s11, 3 }
  0x34   : > { %7300 = sst [smem:[#allocation28_spill]] %s7299_s1  ;;  %s3384_s18 = sshll.u32 %s4207_s24, 3 }
  0x35   : > { %s7302_s0 = sld [smem:[#allocation116_spill]]  ;;  %s203_s14 = scalar_lea.vmem [#allocation3], %s3228_s7 }
  0x36   : > { %s214_s5 = sshll.u32 %s203_s14, 4  ;;  %p7303_p2 = scmp.lt.s32.totalorder %s4211_s25, 4  ;;  %s215_s5 = int_to_ptr.vmem [resolvable:$true] %s214_s5 }
  0x37   : > { %s252_s24 = scalar_lea.hbm %s7143_s2, %s3384_s18  ;;  %s245_s27 = scalar_lea.vmem [#allocation8], %s3228_s7 }
  0x38   : > { %p3401_p13 = pnand %p7303_p2, %p4372_p5  ;;  %s256_s4 = sshll.u32 %s245_s27, 4  ;;  %s257_s4 = int_to_ptr.vmem [resolvable:$true] %s256_s4 }
  0x39   : > { %s254_s22 = sshll.u32 %s252_s24, 4  ;;  %s267_s1 = scalar_lea.vmem [#allocation9], %s4332_s10  ;;  %s255_s22 = int_to_ptr.hbm [resolvable:$true] %s254_s22 }
  0x3a   : > { %3409 = dma.hbm_to_vmem [thread:$0]  (!%p3401_p13), %s255_s22, 128, %s257_s4, %s4351_s12  }
  0x3b   : > { %s210_s21 = scalar_lea.hbm %s7302_s0, %s3384_s18  ;;  %s200_s0 = scalar_lea.sflag [#allocation4], %s199_s11 }
  0x3c   : > { %s212_s6 = sshll.u32 %s210_s21, 4  ;;  %s7304_s21 = sshll.u32 %s4203_s23, 3  ;;  %s213_s6 = int_to_ptr.hbm [resolvable:$true] %s212_s6 }
  0x3d   : > { %3403 = dma.hbm_to_vmem [thread:$0]  (!%p3401_p13), %s213_s6, 128, %s215_s5, %s200_s0  }
  0x3e   : > { %s272_s8 = scalar_lea.hbm %s7144_s3, %s7304_s21  ;;  %s276_s25 = sshll.u32 %s267_s1, 4  ;;  %s277_s25 = int_to_ptr.vmem [resolvable:$true] %s276_s25 }
  0x3f   : > { %s274_s28 = sshll.u32 %s272_s8, 4  ;;  %s7305_s18 = sand.u32 1, %s4179_s17   ;;  %s275_s28 = int_to_ptr.hbm [resolvable:$true] %s274_s28 }
  0x40   : > { %s264_s30 = scalar_lea.sflag [#allocation10], %s7305_s18  ;;  %285 = sbr.rel (%p4356_p12) target bundleno = 1391 (0x56f), region = 36 }
  0x41   : > { %3412 = dma.hbm_to_vmem [thread:$0]  (!%p4345_p9), %s275_s28, 128, %s277_s25, %s264_s30  }
  0x45   : > { %s4424_s0 = sand.u32 1, %s4187_s19  }
  0x46   : > { %s4427_s20 = sshll.u32 %s4424_s0, 3  ;;  %s288_s1 = scalar_lea.sflag [#allocation4], %s4424_s0 }
  0x47   : > { %s291_s24 = scalar_lea.vmem [#allocation3], %s4427_s20 }
  0x48   : > { %4150 = dma.done.wait (%p4381_p10), %s288_s1, 128  }
  0x49   : > { %4152 = vsyncadd (%p4381_p10), %s288_s1, 4294967168  ;;  %s297_s27 = sand.u32 1, %s4293_s26   ;;  %s299_s6 = sand.u32 1, %s4175_s16  }
  0x4a   : > { %s4437_s7 = sshll.u32 %s299_s6, 3  ;;  %s298_s9 = scalar_lea.sflag [#allocation7], %s297_s27 }
  0x4b   : > { %s301_s10 = scalar_lea.vmem [#allocation6], %s4437_s7 }
  0x4c   : > { %4154 = dma.done.wait (%p4320_p7), %s298_s9, 128  }
  0x4d   : > { %4156 = vsyncadd (%p4320_p7), %s298_s9, 4294967168  ;;  %s311_s11 = scalar_lea.vmem [#allocation8], %s4427_s20 }
  0x4e   : > { %4158 = dma.done.wait (%p4381_p10), %s298_s9, 128  }
  0x4f   : > { %4160 = vsyncadd (%p4381_p10), %s298_s9, 4294967168  ;;  %s318_s26 = scalar_lea.sflag [#allocation10], %s299_s6  ;;  %s321_s12 = scalar_lea.vmem [#allocation9], %s4437_s7 }
  0x50   : > { %4162 = dma.done.wait (%p4320_p7), %s318_s26, 128  }
  0x51   : > { %4164 = vsyncadd (%p4320_p7), %s318_s26, 4294967168  ;;  %s361_s13 = scalar_lea.vmem [#allocation11], %s4427_s20  ;;  %s7307_s28 = sld [smem:[#allocation19_spill]] }
  0x57   : > { %p3246_p9 = scmp.ne.s32.totalorder %s7307_s28, 0 }
  0x59   : > { %367 = sbr.rel (%p3246_p9) target bundleno = 96 (0x60), region = 56 }
  0x5e   : > { %v4213_v0 = vmov 0.0  }
  0x5f   : > { %368 = vst [vmem:[#allocation2] sm:$0xff] %v4213_v0 }
  0x60 PF: > { %v369_v1 = vld [vmem:[%s291_s24] sm:$0xff]  ;;  %v370_v2 = vld [vmem:[%s301_s10] sm:$0xff]  ;;  %vm542_vm0 = vcmask 1043456   ;;  %vm445_vm1 = vcmask 31744   ;;  %vm2968_vm14 = vcmask 7168   ;;  %s7681_s5 = sld [smem:[#allocation19_spill]] }
  0x61   : > { %372 = vst [vmem:[#allocation1] ss:$2 sm:$0xff] %v369_v1  ;;  %v837_v5 = vld [vmem:[%s311_s11] sm:$0xff]  ;;  %v838_v9 = vld [vmem:[%s321_s12] sm:$0xff] }
  0x66   : > { %p3379_p7 = scmp.ne.s32.totalorder %s7681_s5, 1 }
  0x68   : > { %v373_v3 = vld.sshfl [vmem:[#allocation1] sm:$0xff pattern:$0x75316420]  ;;  %v374_v4 = vld.sshfl [vmem:[#allocation1 + $0x8] sm:$0xff pattern:$0x75316420] }
  0x69   : > { %377 = vxpose.xlu0.b32.start.end [1/1] (short) %v373_v3, 128  ;;  %442 = vst [vmem:[#allocation1] ss:$2 sm:$0xff] %v370_v2 }
  0x70   : > { %v443_v6 = vld.sshfl [vmem:[#allocation1] sm:$0xff pattern:$0x75316420]  ;;  %v444_v7 = vld.sshfl [vmem:[#allocation1 + $0x8] sm:$0xff pattern:$0x75316420] }
  0x71   : > { %840 = vst [vmem:[#allocation1] ss:$2 sm:$0xff] %v837_v5  ;;  %3247 = vmatpush.msk.msra.mxu0 %vm542_vm0, %v443_v6  ;;  %3280 = vmatpush.msk.msra.mxu1 %vm542_vm0, %v444_v7 }
  0x78   : > { %v841_v8 = vld.sshfl [vmem:[#allocation1] sm:$0xff pattern:$0x75316420]  ;;  %v842_v10 = vld.sshfl [vmem:[#allocation1 + $0x8] sm:$0xff pattern:$0x75316420] }
  0x79   : > { %845 = vxpose.xlu1.b32.start.end [1/1] (short) %v841_v8, 128  ;;  %910 = vst [vmem:[#allocation1] ss:$2 sm:$0xff] %v838_v9 }
  0x80   : > { %v911_v11 = vld.sshfl [vmem:[#allocation1] sm:$0xff pattern:$0x75316420]  ;;  %v912_v12 = vld.sshfl [vmem:[#allocation1 + $0x8] sm:$0xff pattern:$0x75316420] }
  0x81   : > { %3313 = vmatpush.msk.msra.mxu2 %vm542_vm0, %v911_v11  ;;  %3346 = vmatpush.msk.msra.mxu3 %vm542_vm0, %v912_v12 }
  0xe9   : > { %409 = vxpose.xlu0.b32.start.end [1/1] (short) %v374_v4, 128 }
  0xf9   : > { %877 = vxpose.xlu1.b32.start.end [1/1] (short) %v842_v10, 128 }
 0x10d   : > { %v393_v13 = vpop.trf.xlu0 }
 0x10e   : > { %3248 = vmatmul.msk.f32.vlgmr.msra.gmra.mxu0 %vm445_vm1, %v393_v13  ;;  %3281 = vmatmul.msk.f32.vlgmr.msra.gmra.mxu1 %vm445_vm1, %v393_v13 }
 0x115   : > { %v394_v14 = vpop.trf.xlu0 }
 0x116   : > { %3249 = vmatmul.msk.f32.gmra.mxu0 %vm445_vm1, %v394_v14  ;;  %3282 = vmatmul.msk.f32.gmra.mxu1 %vm445_vm1, %v394_v14 }
 0x11d   : > { %v395_v15 = vpop.trf.xlu0  ;;  %v861_v16 = vpop.trf.xlu1 }
 0x11e   : > { %3250 = vmatmul.msk.f32.gmra.mxu0 %vm445_vm1, %v395_v15  ;;  %3283 = vmatmul.msk.f32.gmra.mxu1 %vm445_vm1, %v395_v15 }
 0x11f   : > { %3314 = vmatmul.msk.f32.vlgmr.msra.gmra.mxu2 %vm445_vm1, %v861_v16  ;;  %3347 = vmatmul.msk.f32.vlgmr.msra.gmra.mxu3 %vm445_vm1, %v861_v16 }
 0x125   : > { %v396_v17 = vpop.trf.xlu0  ;;  %v862_v18 = vpop.trf.xlu1 }
 0x126   : > { %3251 = vmatmul.msk.f32.gmra.mxu0 %vm445_vm1, %v396_v17  ;;  %3284 = vmatmul.msk.f32.gmra.mxu1 %vm445_vm1, %v396_v17 }
 0x127   : > { %3315 = vmatmul.msk.f32.gmra.mxu2 %vm445_vm1, %v862_v18  ;;  %3348 = vmatmul.msk.f32.gmra.mxu3 %vm445_vm1, %v862_v18 }
 0x12d   : > { %v397_v19 = vpop.trf.xlu0  ;;  %v863_v20 = vpop.trf.xlu1 }
 0x12e   : > { %3252 = vmatmul.msk.f32.gmra.mxu0 %vm445_vm1, %v397_v19  ;;  %3285 = vmatmul.msk.f32.gmra.mxu1 %vm445_vm1, %v397_v19 }
 0x12f   : > { %3316 = vmatmul.msk.f32.gmra.mxu2 %vm445_vm1, %v863_v20  ;;  %3349 = vmatmul.msk.f32.gmra.mxu3 %vm445_vm1, %v863_v20 }
 0x135   : > { %v398_v21 = vpop.trf.xlu0  ;;  %v864_v22 = vpop.trf.xlu1 }
 0x136   : > { %3253 = vmatmul.msk.f32.gmra.mxu0 %vm445_vm1, %v398_v21  ;;  %3286 = vmatmul.msk.f32.gmra.mxu1 %vm445_vm1, %v398_v21 }
 0x137   : > { %3317 = vmatmul.msk.f32.gmra.mxu2 %vm445_vm1, %v864_v22  ;;  %3350 = vmatmul.msk.f32.gmra.mxu3 %vm445_vm1, %v864_v22 }
 0x13d   : > { %v399_v23 = vpop.trf.xlu0  ;;  %v865_v24 = vpop.trf.xlu1 }
 0x13e   : > { %3254 = vmatmul.msk.f32.gmra.mxu0 %vm445_vm1, %v399_v23  ;;  %3287 = vmatmul.msk.f32.gmra.mxu1 %vm445_vm1, %v399_v23 }
 0x13f   : > { %3318 = vmatmul.msk.f32.gmra.mxu2 %vm445_vm1, %v865_v24  ;;  %3351 = vmatmul.msk.f32.gmra.mxu3 %vm445_vm1, %v865_v24 }
 0x145   : > { %v400_v25 = vpop.trf.xlu0  ;;  %v866_v26 = vpop.trf.xlu1 }
 0x146   : > { %3255 = vmatmul.msk.f32.gmra.mxu0 %vm445_vm1, %v400_v25  ;;  %3288 = vmatmul.msk.f32.gmra.mxu1 %vm445_vm1, %v400_v25 }
 0x147   : > { %3319 = vmatmul.msk.f32.gmra.mxu2 %vm445_vm1, %v866_v26  ;;  %3352 = vmatmul.msk.f32.gmra.mxu3 %vm445_vm1, %v866_v26 }
 0x14d   : > { %v401_v27 = vpop.trf.xlu0  ;;  %v867_v28 = vpop.trf.xlu1 }
 0x14e   : > { %3256 = vmatmul.msk.f32.gmra.mxu0 %vm445_vm1, %v401_v27  ;;  %3289 = vmatmul.msk.f32.gmra.mxu1 %vm445_vm1, %v401_v27 }
 0x14f   : > { %3320 = vmatmul.msk.f32.gmra.mxu2 %vm445_vm1, %v867_v28  ;;  %3353 = vmatmul.msk.f32.gmra.mxu3 %vm445_vm1, %v867_v28 }
 0x155   : > { %v402_v29 = vpop.trf.xlu0  ;;  %v868_v30 = vpop.trf.xlu1 }
 0x156   : > { %3257 = vmatmul.msk.f32.gmra.mxu0 %vm445_vm1, %v402_v29  ;;  %3290 = vmatmul.msk.f32.gmra.mxu1 %vm445_vm1, %v402_v29 }
 0x157   : > { %3321 = vmatmul.msk.f32.gmra.mxu2 %vm445_vm1, %v868_v30  ;;  %3354 = vmatmul.msk.f32.gmra.mxu3 %vm445_vm1, %v868_v30 }
 0x15d   : > { %v403_v31 = vpop.trf.xlu0  ;;  %v869_v32 = vpop.trf.xlu1 }
 0x15e   : > { %3258 = vmatmul.msk.f32.gmra.mxu0 %vm445_vm1, %v403_v31  ;;  %3291 = vmatmul.msk.f32.gmra.mxu1 %vm445_vm1, %v403_v31 }
 0x15f   : > { %3322 = vmatmul.msk.f32.gmra.mxu2 %vm445_vm1, %v869_v32  ;;  %3355 = vmatmul.msk.f32.gmra.mxu3 %vm445_vm1, %v869_v32 }
 0x165   : > { %v404_v33 = vpop.trf.xlu0  ;;  %v870_v34 = vpop.trf.xlu1 }
 0x166   : > { %3259 = vmatmul.msk.f32.gmra.mxu0 %vm445_vm1, %v404_v33  ;;  %3292 = vmatmul.msk.f32.gmra.mxu1 %vm445_vm1, %v404_v33 }
 0x167   : > { %3323 = vmatmul.msk.f32.gmra.mxu2 %vm445_vm1, %v870_v34  ;;  %3356 = vmatmul.msk.f32.gmra.mxu3 %vm445_vm1, %v870_v34 }
 0x16d   : > { %v405_v35 = vpop.trf.xlu0  ;;  %v871_v36 = vpop.trf.xlu1 }
 0x16e   : > { %3260 = vmatmul.msk.f32.gmra.mxu0 %vm445_vm1, %v405_v35  ;;  %3293 = vmatmul.msk.f32.gmra.mxu1 %vm445_vm1, %v405_v35 }
 0x16f   : > { %3324 = vmatmul.msk.f32.gmra.mxu2 %vm445_vm1, %v871_v36  ;;  %3357 = vmatmul.msk.f32.gmra.mxu3 %vm445_vm1, %v871_v36 }
 0x175   : > { %v406_v37 = vpop.trf.xlu0  ;;  %v872_v38 = vpop.trf.xlu1 }
 0x176   : > { %3261 = vmatmul.msk.f32.gmra.mxu0 %vm445_vm1, %v406_v37  ;;  %3294 = vmatmul.msk.f32.gmra.mxu1 %vm445_vm1, %v406_v37 }
 0x177   : > { %3325 = vmatmul.msk.f32.gmra.mxu2 %vm445_vm1, %v872_v38  ;;  %3358 = vmatmul.msk.f32.gmra.mxu3 %vm445_vm1, %v872_v38 }
 0x17d   : > { %v407_v39 = vpop.trf.xlu0  ;;  %v873_v40 = vpop.trf.xlu1 }
 0x17e   : > { %3262 = vmatmul.msk.f32.gmra.mxu0 %vm445_vm1, %v407_v39  ;;  %3295 = vmatmul.msk.f32.gmra.mxu1 %vm445_vm1, %v407_v39 }
 0x17f   : > { %3326 = vmatmul.msk.f32.gmra.mxu2 %vm445_vm1, %v873_v40  ;;  %3359 = vmatmul.msk.f32.gmra.mxu3 %vm445_vm1, %v873_v40 }
 0x185   : > { %v408_v41 = vpop.trf.xlu0  ;;  %v874_v42 = vpop.trf.xlu1 }
 0x186   : > { %3263 = vmatmul.msk.f32.gmra.mxu0 %vm445_vm1, %v408_v41  ;;  %3296 = vmatmul.msk.f32.gmra.mxu1 %vm445_vm1, %v408_v41 }
 0x187   : > { %3327 = vmatmul.msk.f32.gmra.mxu2 %vm445_vm1, %v874_v42  ;;  %3360 = vmatmul.msk.f32.gmra.mxu3 %vm445_vm1, %v874_v42 }
 0x18b   : > { %v564_v43 = vpop.f32.mrf.mxu0  ;;  %v677_v44 = vpop.f32.mrf.mxu1 }
 0x18c   : > { %v4516_v45 = vmul.f32 10.0, %v564_v43  ;;  %v4518_v46 = vmul.f32 10.0, %v677_v44 }
 0x18d   : > { %v425_v47 = vpop.trf.xlu0  ;;  %v875_v48 = vpop.trf.xlu1 }
 0x18e   : > { %3264 = vmatmul.msk.f32.gmra.mxu0 %vm445_vm1, %v425_v47  ;;  %3297 = vmatmul.msk.f32.gmra.mxu1 %vm445_vm1, %v425_v47  ;;  %v1303_v49 = vmax.f32 %v4516_v45, %v4518_v46 }
 0x18f   : > { %3328 = vmatmul.msk.f32.gmra.mxu2 %vm445_vm1, %v875_v48  ;;  %3361 = vmatmul.msk.f32.gmra.mxu3 %vm445_vm1, %v875_v48 }
 0x190   : > { %1304 = vmax.xlane.f32.xlu2 %v1303_v49 }
 0x193   : > { %v567_v50 = vpop.f32.mrf.mxu0  ;;  %v680_v51 = vpop.f32.mrf.mxu1 }
 0x194   : > { %v4526_v52 = vmul.f32 10.0, %v567_v50  ;;  %v4528_v53 = vmul.f32 10.0, %v680_v51 }
 0x195   : > { %v426_v54 = vpop.trf.xlu0  ;;  %v876_v55 = vpop.trf.xlu1 }
 0x196   : > { %3265 = vmatmul.msk.f32.gmra.mxu0 %vm445_vm1, %v426_v54  ;;  %3298 = vmatmul.msk.f32.gmra.mxu1 %vm445_vm1, %v426_v54  ;;  %v1306_v56 = vmax.f32 %v4526_v52, %v4528_v53 }
 0x197   : > { %3329 = vmatmul.msk.f32.gmra.mxu2 %vm445_vm1, %v876_v55  ;;  %3362 = vmatmul.msk.f32.gmra.mxu3 %vm445_vm1, %v876_v55 }
 0x198   : > { %1307 = vmax.xlane.f32.xlu2 %v1306_v56 }
 0x19b   : > { %v570_v57 = vpop.f32.mrf.mxu0  ;;  %v683_v58 = vpop.f32.mrf.mxu1 }
 0x19c   : > { %v4536_v59 = vmul.f32 10.0, %v570_v57  ;;  %v4538_v60 = vmul.f32 10.0, %v683_v58 }
 0x19d   : > { %v427_v61 = vpop.trf.xlu0  ;;  %v893_v62 = vpop.trf.xlu1 }
 0x19e   : > { %3266 = vmatmul.msk.f32.gmra.mxu0 %vm445_vm1, %v427_v61  ;;  %3299 = vmatmul.msk.f32.gmra.mxu1 %vm445_vm1, %v427_v61  ;;  %v1309_v63 = vmax.f32 %v4536_v59, %v4538_v60 }
 0x19f   : > { %3330 = vmatmul.msk.f32.gmra.mxu2 %vm445_vm1, %v893_v62  ;;  %3363 = vmatmul.msk.f32.gmra.mxu3 %vm445_vm1, %v893_v62 }
 0x1a0   : > { %1310 = vmax.xlane.f32.xlu2 %v1309_v63 }
 0x1a2   : > { %v4546_v0 = vpop.f32.mrf.mxu2  ;;  %v4548_v1 = vpop.f32.mrf.mxu3 }
 0x1a3   : > { %v573_v2 = vpop.f32.mrf.mxu0  ;;  %v686_v3 = vpop.f32.mrf.mxu1 }
 0x1a4   : > { %v4550_v4 = vmul.f32 10.0, %v573_v2  ;;  %v4552_v5 = vmul.f32 10.0, %v686_v3 }
 0x1a5   : > { %v894_v6 = vpop.trf.xlu1  ;;  %v428_v22 = vpop.trf.xlu0 }
 0x1a6   : > { %v1312_v7 = vmax.f32 %v4550_v4, %v4552_v5  ;;  %3267 = vmatmul.msk.f32.gmra.mxu0 %vm445_vm1, %v428_v22  ;;  %3300 = vmatmul.msk.f32.gmra.mxu1 %vm445_vm1, %v428_v22 }
 0x1a7   : > { %3331 = vmatmul.msk.f32.gmra.mxu2 %vm445_vm1, %v894_v6  ;;  %3364 = vmatmul.msk.f32.gmra.mxu3 %vm445_vm1, %v894_v6 }
 0x1a8   : > { %1313 = vmax.xlane.f32.xlu2 %v1312_v7 }
 0x1aa   : > { %v4558_v8 = vpop.f32.mrf.mxu2  ;;  %v4560_v9 = vpop.f32.mrf.mxu3 }
 0x1ab   : > { %v576_v10 = vpop.f32.mrf.mxu0  ;;  %v689_v11 = vpop.f32.mrf.mxu1 }
 0x1ac   : > { %v4562_v12 = vmul.f32 10.0, %v576_v10  ;;  %v4564_v13 = vmul.f32 10.0, %v689_v11 }
 0x1ad   : > { %v895_v14 = vpop.trf.xlu1  ;;  %v429_v49 = vpop.trf.xlu0 }
 0x1ae   : > { %v1315_v15 = vmax.f32 %v4562_v12, %v4564_v13  ;;  %3268 = vmatmul.msk.f32.gmra.mxu0 %vm445_vm1, %v429_v49  ;;  %3301 = vmatmul.msk.f32.gmra.mxu1 %vm445_vm1, %v429_v49 }
 0x1af   : > { %3332 = vmatmul.msk.f32.gmra.mxu2 %vm445_vm1, %v895_v14  ;;  %3365 = vmatmul.msk.f32.gmra.mxu3 %vm445_vm1, %v895_v14 }
 0x1b0   : > { %1316 = vmax.xlane.f32.xlu2 %v1315_v15 }
 0x1b2   : > { %v4570_v16 = vpop.f32.mrf.mxu2  ;;  %v4572_v17 = vpop.f32.mrf.mxu3 }
 0x1b3   : > { %v579_v18 = vpop.f32.mrf.mxu0  ;;  %v692_v19 = vpop.f32.mrf.mxu1 }
 0x1b4   : > { %v4574_v20 = vmul.f32 10.0, %v579_v18  ;;  %v4576_v21 = vmul.f32 10.0, %v692_v19 }
 0x1b5   : > { %v896_v23 = vpop.trf.xlu1  ;;  %v430_v14 = vpop.trf.xlu0 }
 0x1b6   : > { %v1318_v24 = vmax.f32 %v4574_v20, %v4576_v21  ;;  %3269 = vmatmul.msk.f32.gmra.mxu0 %vm445_vm1, %v430_v14  ;;  %3302 = vmatmul.msk.f32.gmra.mxu1 %vm445_vm1, %v430_v14 }
 0x1b7   : > { %3333 = vmatmul.msk.f32.gmra.mxu2 %vm445_vm1, %v896_v23  ;;  %3366 = vmatmul.msk.f32.gmra.mxu3 %vm445_vm1, %v896_v23 }
 0x1b8   : > { %1319 = vmax.xlane.f32.xlu2 %v1318_v24 }
 0x1ba   : > { %v4584_v25 = vpop.f32.mrf.mxu2  ;;  %v4586_v26 = vpop.f32.mrf.mxu3 }
 0x1bb   : > { %v582_v27 = vpop.f32.mrf.mxu0  ;;  %v695_v28 = vpop.f32.mrf.mxu1 }
 0x1bc   : > { %v4588_v29 = vmul.f32 10.0, %v582_v27  ;;  %v4590_v30 = vmul.f32 10.0, %v695_v28 }
 0x1bd   : > { %v897_v31 = vpop.trf.xlu1 }
 0x1be   : > { %v1321_v32 = vmax.f32 %v4588_v29, %v4590_v30 }
 0x1bf   : > { %3334 = vmatmul.msk.f32.gmra.mxu2 %vm445_vm1, %v897_v31  ;;  %3367 = vmatmul.msk.f32.gmra.mxu3 %vm445_vm1, %v897_v31 }
 0x1c0   : > { %1322 = vmax.xlane.f32.xlu2 %v1321_v32 }
 0x1c2   : > { %v4596_v33 = vpop.f32.mrf.mxu2  ;;  %v4598_v34 = vpop.f32.mrf.mxu3 }
 0x1c3   : > { %v585_v35 = vpop.f32.mrf.mxu0  ;;  %v698_v36 = vpop.f32.mrf.mxu1 }
 0x1c4   : > { %v4600_v37 = vmul.f32 10.0, %v585_v35  ;;  %v4602_v38 = vmul.f32 10.0, %v698_v36 }
 0x1c5   : > { %v898_v39 = vpop.trf.xlu1 }
 0x1c6   : > { %v1324_v40 = vmax.f32 %v4600_v37, %v4602_v38 }
 0x1c7   : > { %3335 = vmatmul.msk.f32.gmra.mxu2 %vm445_vm1, %v898_v39  ;;  %3368 = vmatmul.msk.f32.gmra.mxu3 %vm445_vm1, %v898_v39 }
 0x1c8   : > { %1325 = vmax.xlane.f32.xlu2 %v1324_v40 }
 0x1ca   : > { %v4608_v41 = vpop.f32.mrf.mxu2  ;;  %v4610_v42 = vpop.f32.mrf.mxu3 }
 0x1cb   : > { %v588_v43 = vpop.f32.mrf.mxu0  ;;  %v701_v44 = vpop.f32.mrf.mxu1 }
 0x1cc   : > { %v4612_v47 = vmul.f32 10.0, %v588_v43  ;;  %v4614_v48 = vmul.f32 10.0, %v701_v44 }
 0x1cd   : > { %v899_v50 = vpop.trf.xlu1 }
 0x1ce   : > { %7308 = vst [vmem:[#allocation30_spill] sm:$0xff] %v4612_v47  ;;  %v1327_v51 = vmax.f32 %v4612_v47, %v4614_v48 }
 0x1cf   : > { %7309 = vst [vmem:[#allocation31_spill] sm:$0xff] %v4614_v48  ;;  %3336 = vmatmul.msk.f32.gmra.mxu2 %vm445_vm1, %v899_v50  ;;  %3369 = vmatmul.msk.f32.gmra.mxu3 %vm445_vm1, %v899_v50 }
 0x1d0   : > { %1328 = vmax.xlane.f32.xlu2 %v1327_v51  ;;  %v431_v51 = vpop.trf.xlu0 }
 0x1d1   : > { %3270 = vmatmul.msk.f32.gmra.mxu0 %vm445_vm1, %v431_v51  ;;  %3303 = vmatmul.msk.f32.gmra.mxu1 %vm445_vm1, %v431_v51 }
 0x1d2   : > { %v4622_v54 = vpop.f32.mrf.mxu2  ;;  %v4624_v55 = vpop.f32.mrf.mxu3 }
 0x1d3   : > { %v591_v56 = vpop.f32.mrf.mxu0  ;;  %v704_v57 = vpop.f32.mrf.mxu1  ;;  %v4817_v47 = vmul.f32 10.0, %v4622_v54 }
 0x1d4   : > { %v4626_v58 = vmul.f32 10.0, %v591_v56  ;;  %v4628_v61 = vmul.f32 10.0, %v704_v57 }
 0x1d5   : > { %v900_v62 = vpop.trf.xlu1  ;;  %7331 = vst [vmem:[#allocation53_spill] sm:$0xff] %v4817_v47 }
 0x1d6   : > { %7310 = vst [vmem:[#allocation32_spill] sm:$0xff] %v4626_v58  ;;  %v1330_v63 = vmax.f32 %v4626_v58, %v4628_v61 }
 0x1d7   : > { %7311 = vst [vmem:[#allocation33_spill] sm:$0xff] %v4628_v61  ;;  %3337 = vmatmul.msk.f32.gmra.mxu2 %vm445_vm1, %v900_v62  ;;  %3370 = vmatmul.msk.f32.gmra.mxu3 %vm445_vm1, %v900_v62 }
 0x1d8   : > { %1331 = vmax.xlane.f32.xlu2 %v1330_v63 }
 0x1da   : > { %v4634_v2 = vpop.f32.mrf.mxu2  ;;  %v4636_v3 = vpop.f32.mrf.mxu3 }
 0x1db   : > { %v594_v6 = vpop.f32.mrf.mxu0  ;;  %v707_v7 = vpop.f32.mrf.mxu1 }
 0x1dc   : > { %v4638_v10 = vmul.f32 10.0, %v594_v6  ;;  %v4640_v11 = vmul.f32 10.0, %v707_v7 }
 0x1dd   : > { %v901_v15 = vpop.trf.xlu1 }
 0x1de   : > { %7312 = vst [vmem:[#allocation34_spill] sm:$0xff] %v4638_v10  ;;  %v1333_v18 = vmax.f32 %v4638_v10, %v4640_v11 }
 0x1df   : > { %7313 = vst [vmem:[#allocation35_spill] sm:$0xff] %v4640_v11  ;;  %3338 = vmatmul.msk.f32.gmra.mxu2 %vm445_vm1, %v901_v15  ;;  %3371 = vmatmul.msk.f32.gmra.mxu3 %vm445_vm1, %v901_v15 }
 0x1e0   : > { %1334 = vmax.xlane.f32.xlu2 %v1333_v18 }
 0x1e2   : > { %v4648_v19 = vpop.f32.mrf.mxu2  ;;  %v4650_v22 = vpop.f32.mrf.mxu3 }
 0x1e3   : > { %v597_v23 = vpop.f32.mrf.mxu0  ;;  %v710_v24 = vpop.f32.mrf.mxu1 }
 0x1e4   : > { %v4652_v27 = vmul.f32 10.0, %v597_v23  ;;  %v4654_v28 = vmul.f32 10.0, %v710_v24 }
 0x1e5   : > { %v902_v31 = vpop.trf.xlu1 }
 0x1e6   : > { %7314 = vst [vmem:[#allocation36_spill] sm:$0xff] %v4652_v27  ;;  %v1336_v32 = vmax.f32 %v4652_v27, %v4654_v28 }
 0x1e7   : > { %7315 = vst [vmem:[#allocation37_spill] sm:$0xff] %v4654_v28  ;;  %3339 = vmatmul.msk.f32.gmra.mxu2 %vm445_vm1, %v902_v31  ;;  %3372 = vmatmul.msk.f32.gmra.mxu3 %vm445_vm1, %v902_v31 }
 0x1e8   : > { %1337 = vmax.xlane.f32.xlu2 %v1336_v32 }
 0x1ea   : > { %v4660_v35 = vpop.f32.mrf.mxu2  ;;  %v4662_v36 = vpop.f32.mrf.mxu3 }
 0x1eb   : > { %v600_v39 = vpop.f32.mrf.mxu0  ;;  %v713_v40 = vpop.f32.mrf.mxu1 }
 0x1ec   : > { %v4664_v43 = vmul.f32 10.0, %v600_v39  ;;  %v4666_v44 = vmul.f32 10.0, %v713_v40 }
 0x1ed   : > { %v903_v49 = vpop.trf.xlu1 }
 0x1ee   : > { %7316 = vst [vmem:[#allocation38_spill] sm:$0xff] %v4664_v43  ;;  %v1339_v50 = vmax.f32 %v4664_v43, %v4666_v44 }
 0x1ef   : > { %7317 = vst [vmem:[#allocation39_spill] sm:$0xff] %v4666_v44  ;;  %3340 = vmatmul.msk.f32.gmra.mxu2 %vm445_vm1, %v903_v49  ;;  %3373 = vmatmul.msk.f32.gmra.mxu3 %vm445_vm1, %v903_v49 }
 0x1f0   : > { %1340 = vmax.xlane.f32.xlu2 %v1339_v50 }
 0x1f2   : > { %v4674_v56 = vpop.f32.mrf.mxu2  ;;  %v4676_v57 = vpop.f32.mrf.mxu3 }
 0x1f3   : > { %v603_v62 = vpop.f32.mrf.mxu0  ;;  %v716_v63 = vpop.f32.mrf.mxu1 }
 0x1f4   : > { %v4678_v6 = vmul.f32 10.0, %v603_v62  ;;  %v4680_v7 = vmul.f32 10.0, %v716_v63 }
 0x1f5   : > { %v904_v14 = vpop.trf.xlu1 }
 0x1f6   : > { %7318 = vst [vmem:[#allocation40_spill] sm:$0xff] %v4678_v6  ;;  %v1342_v15 = vmax.f32 %v4678_v6, %v4680_v7 }
 0x1f7   : > { %7319 = vst [vmem:[#allocation41_spill] sm:$0xff] %v4680_v7  ;;  %3341 = vmatmul.msk.f32.gmra.mxu2 %vm445_vm1, %v904_v14  ;;  %3374 = vmatmul.msk.f32.gmra.mxu3 %vm445_vm1, %v904_v14 }
 0x1f8   : > { %1343 = vmax.xlane.f32.xlu2 %v1342_v15 }
 0x1fa   : > { %v4686_v18 = vpop.f32.mrf.mxu2  ;;  %v4688_v23 = vpop.f32.mrf.mxu3 }
 0x1fb   : > { %v606_v24 = vpop.f32.mrf.mxu0  ;;  %v719_v31 = vpop.f32.mrf.mxu1 }
 0x1fc   : > { %v4690_v32 = vmul.f32 10.0, %v606_v24  ;;  %v4692_v39 = vmul.f32 10.0, %v719_v31 }
 0x1fd   : > { %v905_v40 = vpop.trf.xlu1 }
 0x1fe   : > { %v1345_v49 = vmax.f32 %v4690_v32, %v4692_v39 }
 0x1ff   : > { %3342 = vmatmul.msk.f32.gmra.mxu2 %vm445_vm1, %v905_v40  ;;  %3375 = vmatmul.msk.f32.gmra.mxu3 %vm445_vm1, %v905_v40 }
 0x200   : > { %1346 = vmax.xlane.f32.xlu2 %v1345_v49  ;;  %v432_v49 = vpop.trf.xlu0 }
 0x201   : > { %3271 = vmatmul.msk.f32.gmra.mxu0 %vm445_vm1, %v432_v49  ;;  %3304 = vmatmul.msk.f32.gmra.mxu1 %vm445_vm1, %v432_v49 }
 0x202   : > { %v4698_v50 = vpop.f32.mrf.mxu2  ;;  %v4700_v51 = vpop.f32.mrf.mxu3 }
 0x203   : > { %v722_v62 = vpop.f32.mrf.mxu1  ;;  %v1305_v63 = vpop.xlane.xlu2 %1304 }
 0x204   : > { %v4702_v14 = vmul.f32 10.0, %v722_v62  ;;  %v609_v15 = vpop.f32.mrf.mxu0  ;;  %v4705_v24 = vsub.f32 %v4516_v45, %v1305_v63  ;;  %v4710_v7 = vsub.f32 %v4518_v46, %v1305_v63 }
 0x205   : > { %v4707_v31 = vmul.f32 10.0, %v609_v15 }
 0x206   : > { %7320 = vst [vmem:[#allocation42_spill] sm:$0xff] %v4702_v14  ;;  %v1463_v62 = vmul.f32 1.442695, %v4705_v24  ;;  %v1465_v6 = vmul.f32 1.442695, %v4710_v7 }
 0x207   : > { %7321 = vst [vmem:[#allocation43_spill] sm:$0xff] %v4707_v31  ;;  %v1348_v40 = vmax.f32 %v4707_v31, %v4702_v14  ;;  %v906_v31 = vpop.trf.xlu1 }
 0x208   : > { %3509 = vpow2.f32 %v1463_v62  ;;  %3343 = vmatmul.msk.f32.gmra.mxu2 %vm445_vm1, %v906_v31  ;;  %3376 = vmatmul.msk.f32.gmra.mxu3 %vm445_vm1, %v906_v31  ;;  %v433_v61 = vpop.trf.xlu0 }
 0x209   : > { %1349 = vmax.xlane.f32.xlu2 %v1348_v40  ;;  %3511 = vpow2.f32 %v1465_v6  ;;  %3272 = vmatmul.msk.f32.gmra.mxu0 %vm445_vm1, %v433_v61 }
 0x20a   : > { %v4718_v45 = vpop.f32.mrf.mxu2  ;;  %v4720_v15 = vpop.f32.mrf.mxu3  ;;  %3305 = vmatmul.msk.f32.gmra.mxu1 %vm445_vm1, %v433_v61 }
 0x20b   : > { %v725_v28 = vpop.f32.mrf.mxu1  ;;  %v1308_v46 = vpop.xlane.xlu2 %1307 }
 0x20c   : > { %v4722_v63 = vmul.f32 10.0, %v725_v28  ;;  %v612_v27 = vpop.f32.mrf.mxu0  ;;  %v4725_v11 = vsub.f32 %v4526_v52, %v1308_v46  ;;  %v4730_v40 = vsub.f32 %v4528_v53, %v1308_v46 }
 0x20d   : > { %v4727_v10 = vmul.f32 10.0, %v612_v27 }
 0x20e   : > { %7322 = vst [vmem:[#allocation44_spill] sm:$0xff] %v4725_v11  ;;  %v1467_v14 = vmul.f32 1.442695, %v4725_v11  ;;  %v1469_v28 = vmul.f32 1.442695, %v4730_v40  ;;  %v3510_v52 = vpop.eup %3509 }
 0x20f   : > { %7323 = vst [vmem:[#allocation45_spill] sm:$0xff] %v4730_v40  ;;  %v1351_v49 = vmax.f32 %v4727_v10, %v4722_v63  ;;  %v3512_v6 = vpop.eup %3511  ;;  %v907_v31 = vpop.trf.xlu1 }
 0x210   : > { %3513 = vpow2.f32 %v1467_v14  ;;  %v1591_v40 = vadd.f32 %v3512_v6, %v3510_v52  ;;  %3344 = vmatmul.msk.f32.gmra.mxu2 %vm445_vm1, %v907_v31  ;;  %3377 = vmatmul.msk.f32.gmra.mxu3 %vm445_vm1, %v907_v31  ;;  %v4759_v14 = vmul.f32 10.0, %v4546_v0 }
 0x211   : > { %1352 = vmax.xlane.f32.xlu2 %v1351_v49  ;;  %3515 = vpow2.f32 %v1469_v28  ;;  %v4762_v28 = vmul.f32 10.0, %v4548_v1 }
 0x212   : > { %v4736_v44 = vpop.f32.mrf.mxu2  ;;  %v4738_v62 = vpop.f32.mrf.mxu3 }
 0x213   : > { %v728_v53 = vpop.f32.mrf.mxu1  ;;  %v4742_v27 = vpop.xlane.xlu2 %1310  ;;  %v1751_v31 = vmax.f32 %v4759_v14, %v4762_v28 }
 0x214   : > { %v4744_v46 = vmul.f32 10.0, %v728_v53  ;;  %v615_v11 = vpop.f32.mrf.mxu0 }
 0x215   : > { %v4746_v49 = vmul.f32 10.0, %v615_v11 }
 0x216   : > { %7324 = vst [vmem:[#allocation46_spill] sm:$0xff] %v4744_v46  ;;  %v3514_v11 = vpop.eup %3513 }
 0x217   : > { %7325 = vst [vmem:[#allocation47_spill] sm:$0xff] %v4746_v49  ;;  %v1354_v43 = vmax.f32 %v4746_v49, %v4744_v46 }
 0x219   : > { %1592 = vadd.xlane.f32.xlu2 %v1591_v40  ;;  %1355 = vmax.xlane.f32.xlu0 %v1354_v43  ;;  %v3516_v43 = vpop.eup %3515 }
 0x21a   : > { %v4752_v58 = vpop.f32.mrf.mxu2  ;;  %v4754_v53 = vpop.f32.mrf.mxu3  ;;  %v1594_v49 = vadd.f32 %v3516_v43, %v3514_v11  ;;  %v4785_v11 = vmul.f32 10.0, %v4584_v25  ;;  %v4788_v43 = vmul.f32 10.0, %v4586_v26  ;;  %v4811_v26 = vmul.f32 10.0, %v4608_v41 }
 0x21b   : > { %v731_v52 = vpop.f32.mrf.mxu1  ;;  %v4764_v61 = vpop.xlane.xlu2 %1313 }
 0x21c   : > { %v4766_v40 = vmul.f32 10.0, %v731_v52  ;;  %v618_v6 = vpop.f32.mrf.mxu0  ;;  %v4779_v52 = vmul.f32 10.0, %v4570_v16 }
 0x21d   : > { %v4768_v46 = vmul.f32 10.0, %v618_v6  ;;  %v4782_v6 = vmul.f32 10.0, %v4572_v17  ;;  %v1760_v17 = vmax.f32 %v4785_v11, %v4788_v43 }
 0x21e   : > { %7326 = vst [vmem:[#allocation48_spill] sm:$0xff] %v4766_v40 }
 0x21f   : > { %7327 = vst [vmem:[#allocation49_spill] sm:$0xff] %v4768_v46  ;;  %v1357_v0 = vmax.f32 %v4768_v46, %v4766_v40  ;;  %v1757_v16 = vmax.f32 %v4779_v52, %v4782_v6  ;;  %v4814_v46 = vmul.f32 10.0, %v4610_v42 }
 0x221   : > { %1595 = vadd.xlane.f32.xlu2 %v1594_v49  ;;  %1752 = vmax.xlane.f32.xlu0 %v1751_v31  ;;  %v4793_v49 = vmul.f32 10.0, %v4558_v8  ;;  %v4796_v31 = vmul.f32 10.0, %v4560_v9  ;;  %7330 = vst [vmem:[#allocation52_spill] sm:$0xff] %v4814_v46  ;;  %v1766_v41 = vmax.f32 %v4811_v26, %v4814_v46  ;;  %v4846_v46 = vmul.f32 10.0, %v4662_v36 }
 0x222   : > { %1358 = vmax.xlane.f32.xlu1 %v1357_v0  ;;  %v4774_v1 = vpop.f32.mrf.mxu2  ;;  %v4776_v48 = vpop.f32.mrf.mxu3 }
 0x223   : > { %v4790_v40 = vpop.xlane.xlu2 %1316  ;;  %7328 = vst [vmem:[#allocation50_spill] sm:$0xff] %v4793_v49  ;;  %v434_v0 = vpop.trf.xlu0  ;;  %v1754_v25 = vmax.f32 %v4793_v49, %v4796_v31  ;;  %v4843_v49 = vmul.f32 10.0, %v4660_v35 }
 0x224   : > { %7329 = vst [vmem:[#allocation51_spill] sm:$0xff] %v4796_v31  ;;  %3273 = vmatmul.msk.f32.gmra.mxu0 %vm445_vm1, %v434_v0  ;;  %3306 = vmatmul.msk.f32.gmra.mxu1 %vm445_vm1, %v434_v0  ;;  %v4820_v31 = vmul.f32 10.0, %v4624_v55 }
 0x226   : > { %7332 = vst [vmem:[#allocation54_spill] sm:$0xff] %v4820_v31  ;;  %v1769_v42 = vmax.f32 %v4817_v47, %v4820_v31  ;;  %v4873_v47 = vmul.f32 10.0, %v4698_v50 }
 0x229   : > { %1758 = vmax.xlane.f32.xlu2 %v1757_v16  ;;  %1761 = vmax.xlane.f32.xlu0 %v1760_v17  ;;  %v4825_v16 = vmul.f32 10.0, %v4596_v33  ;;  %v4828_v17 = vmul.f32 10.0, %v4598_v34  ;;  %v4837_v33 = vmul.f32 10.0, %v4648_v19  ;;  %v4840_v34 = vmul.f32 10.0, %v4650_v22 }
 0x22a   : > { %1755 = vmax.xlane.f32.xlu1 %v1754_v25  ;;  %v4806_v8 = vpop.f32.mrf.mxu2  ;;  %v4808_v9 = vpop.f32.mrf.mxu3  ;;  %v1778_v22 = vmax.f32 %v4843_v49, %v4846_v46 }
 0x22b   : > { %v4822_v0 = vpop.xlane.xlu2 %1319  ;;  %7333 = vst [vmem:[#allocation55_spill] sm:$0xff] %v4825_v16  ;;  %v1763_v54 = vmax.f32 %v4825_v16, %v4828_v17  ;;  %v1775_v19 = vmax.f32 %v4837_v33, %v4840_v34 }
 0x22c   : > { %7334 = vst [vmem:[#allocation56_spill] sm:$0xff] %v4828_v17  ;;  %v4876_v17 = vmul.f32 10.0, %v4700_v51 }
 0x231   : > { %1767 = vmax.xlane.f32.xlu2 %v1766_v41  ;;  %1770 = vmax.xlane.f32.xlu0 %v1769_v42  ;;  %v4851_v41 = vmul.f32 10.0, %v4634_v2  ;;  %v4854_v42 = vmul.f32 10.0, %v4636_v3  ;;  %v4867_v2 = vmul.f32 10.0, %v4686_v18  ;;  %v4870_v3 = vmul.f32 10.0, %v4688_v23 }
 0x232   : > { %1764 = vmax.xlane.f32.xlu1 %v1763_v54  ;;  %v1084_v55 = vpop.f32.mrf.mxu2  ;;  %v1197_v25 = vpop.f32.mrf.mxu3  ;;  %v4890_v18 = vsub.f32 %v4536_v59, %v4742_v27  ;;  %v4894_v23 = vsub.f32 %v4538_v60, %v4742_v27  ;;  %v4907_v59 = vmul.f32 10.0, %v4738_v62  ;;  %v4910_v60 = vmul.f32 10.0, %v4752_v58 }
 0x233   : > { %v4848_v31 = vpop.xlane.xlu2 %1322  ;;  %v1772_v35 = vmax.f32 %v4851_v41, %v4854_v42  ;;  %7335 = vst [vmem:[#allocation57_spill] sm:$0xff] %v4867_v2  ;;  %v1784_v50 = vmax.f32 %v4867_v2, %v4870_v3  ;;  %v4913_v27 = vmul.f32 10.0, %v4754_v53  ;;  %v4925_v53 = vmul.f32 10.0, %v4718_v45 }
 0x234   : > { %7336 = vst [vmem:[#allocation58_spill] sm:$0xff] %v4870_v3  ;;  %v908_v3 = vpop.trf.xlu1  ;;  %v4938_v45 = vmul.f32 10.0, %v1084_v55  ;;  %v4952_v55 = vsub.f32 %v4550_v4, %v4764_v61 }
 0x235   : > { %7339 = vst [vmem:[#allocation61_spill] sm:$0xff] %v4890_v18  ;;  %3345 = vmatmul.msk.f32.gmra.mxu2 %vm445_vm1, %v908_v3  ;;  %3378 = vmatmul.msk.f32.gmra.mxu3 %vm445_vm1, %v908_v3 }
 0x236   : > { %7340 = vst [vmem:[#allocation62_spill] sm:$0xff] %v4894_v23  ;;  %v1475_v4 = vmul.f32 1.442695, %v4952_v55 }
 0x237   : > { %7342 = vst [vmem:[#allocation64_spill] sm:$0xff] %v4907_v59 }
 0x238   : > { %7343 = vst [vmem:[#allocation65_spill] sm:$0xff] %v4925_v53 }
 0x239   : > { %1776 = vmax.xlane.f32.xlu2 %v1775_v19  ;;  %1779 = vmax.xlane.f32.xlu0 %v1778_v22  ;;  %v435_v19 = vpop.trf.xlu0  ;;  %v4881_v22 = vmul.f32 10.0, %v4674_v56  ;;  %v1787_v56 = vmax.f32 %v4873_v47, %v4876_v17 }
 0x23a   : > { %1773 = vmax.xlane.f32.xlu1 %v1772_v35  ;;  %v4862_v36 = vpop.f32.mrf.mxu2  ;;  %v4864_v54 = vpop.f32.mrf.mxu3  ;;  %v4884_v35 = vmul.f32 10.0, %v4676_v57  ;;  %3274 = vmatmul.msk.f32.gmra.mxu0 %vm445_vm1, %v435_v19  ;;  %v4901_v57 = vmul.f32 10.0, %v4736_v44  ;;  %v1473_v44 = vmul.f32 1.442695, %v4894_v23  ;;  %v4940_v23 = vmul.f32 10.0, %v1197_v25 }
 0x23b   : > { %v4878_v16 = vpop.xlane.xlu2 %1325  ;;  %7337 = vst [vmem:[#allocation59_spill] sm:$0xff] %v4881_v22  ;;  %3307 = vmatmul.msk.f32.gmra.mxu1 %vm445_vm1, %v435_v19  ;;  %v1471_v19 = vmul.f32 1.442695, %v4890_v18 }
 0x23c   : > { %7338 = vst [vmem:[#allocation60_spill] sm:$0xff] %v4884_v35  ;;  %v1781_v51 = vmax.f32 %v4881_v22, %v4884_v35 }
 0x23d   : > { %7341 = vst [vmem:[#allocation63_spill] sm:$0xff] %v4901_v57  ;;  %3517 = vpow2.f32 %v1471_v19  ;;  %v4946_v19 = vmul.f32 10.0, %v4776_v48  ;;  %v1805_v48 = vmax.f32 %v4938_v45, %v4940_v23 }
 0x23e   : > { %3519 = vpow2.f32 %v1473_v44  ;;  %7345 = vst [vmem:[#allocation67_spill] sm:$0xff] %v4940_v23 }
 0x23f   : > { %7347 = vst [vmem:[#allocation69_spill] sm:$0xff] %v4946_v19  ;;  %3521 = vpow2.f32 %v1475_v4 }
 0x241   : > { %1785 = vmax.xlane.f32.xlu2 %v1784_v50  ;;  %1788 = vmax.xlane.f32.xlu0 %v1787_v56  ;;  %v436_v58 = vpop.trf.xlu0  ;;  %v4928_v50 = vmul.f32 10.0, %v4720_v15  ;;  %v1793_v56 = vmax.f32 %v4901_v57, %v4907_v59  ;;  %v4943_v15 = vmul.f32 10.0, %v4774_v1  ;;  %v4960_v1 = vsub.f32 %v4552_v5, %v4764_v61 }
 0x242   : > { %1782 = vmax.xlane.f32.xlu1 %v1781_v51  ;;  %v4916_v2 = vpop.f32.mrf.mxu2  ;;  %v4918_v35 = vpop.f32.mrf.mxu3  ;;  %3275 = vmatmul.msk.f32.gmra.mxu0 %vm445_vm1, %v436_v58  ;;  %v1796_v51 = vmax.f32 %v4910_v60, %v4913_v27  ;;  %v4975_v61 = vmul.f32 10.0, %v4862_v36 }
 0x243   : > { %v4921_v62 = vpop.xlane.xlu2 %1328  ;;  %7344 = vst [vmem:[#allocation66_spill] sm:$0xff] %v4928_v50  ;;  %3308 = vmatmul.msk.f32.gmra.mxu1 %vm445_vm1, %v436_v58  ;;  %v1790_v3 = vmax.f32 %v4925_v53, %v4928_v50  ;;  %v3518_v57 = vpop.eup %3517  ;;  %v1799_v25 = vmax.f32 %v4943_v15, %v4946_v19  ;;  %v1477_v5 = vmul.f32 1.442695, %v4960_v1  ;;  %v4978_v19 = vmul.f32 10.0, %v4864_v54 }
 0x244   : > { %7346 = vst [vmem:[#allocation68_spill] sm:$0xff] %v4943_v15  ;;  %v3520_v50 = vpop.eup %3519 }
 0x245   : > { %3523 = vpow2.f32 %v1477_v5  ;;  %v1808_v54 = vmax.f32 %v4975_v61, %v4978_v19  ;;  %v3522_v4 = vpop.eup %3521 }
 0x249   : > { %1794 = vmax.xlane.f32.xlu2 %v1793_v56  ;;  %1797 = vmax.xlane.f32.xlu0 %v1796_v51  ;;  %v437_v22 = vpop.trf.xlu0  ;;  %v734_v56 = vpop.f32.mrf.mxu1 }
 0x24a   : > { %1791 = vmax.xlane.f32.xlu1 %v1790_v3  ;;  %v1093_v58 = vpop.f32.mrf.mxu2  ;;  %v1206_v59 = vpop.f32.mrf.mxu3  ;;  %3276 = vmatmul.msk.f32.gmra.mxu0 %vm445_vm1, %v437_v22  ;;  %v1597_v3 = vadd.f32 %v3520_v50, %v3518_v57  ;;  %v4965_v53 = vmul.f32 10.0, %v734_v56 }
 0x24b   : > { %v4948_v44 = vpop.xlane.xlu2 %1331  ;;  %3309 = vmatmul.msk.f32.gmra.mxu1 %vm445_vm1, %v437_v22  ;;  %v621_v51 = vpop.f32.mrf.mxu0  ;;  %v4967_v22 = vmul.f32 10.0, %v1093_v58  ;;  %v4969_v18 = vmul.f32 10.0, %v1206_v59 }
 0x24c   : > { %7348 = vst [vmem:[#allocation70_spill] sm:$0xff] %v4965_v53  ;;  %v4971_v23 = vmul.f32 10.0, %v621_v51 }
 0x24d   : > { %7349 = vst [vmem:[#allocation71_spill] sm:$0xff] %v4967_v22  ;;  %v1814_v59 = vmax.f32 %v4967_v22, %v4969_v18 }
 0x24e   : > { %7350 = vst [vmem:[#allocation72_spill] sm:$0xff] %v4969_v18  ;;  %v1360_v36 = vmax.f32 %v4971_v23, %v4965_v53  ;;  %v3524_v18 = vpop.eup %3523 }
 0x24f   : > { %7351 = vst [vmem:[#allocation73_spill] sm:$0xff] %v4971_v23 }
 0x251   : > { %1598 = vadd.xlane.f32.xlu2 %v1597_v3  ;;  %1806 = vmax.xlane.f32.xlu0 %v1805_v48  ;;  %v438_v56 = vpop.trf.xlu0 }
 0x252   : > { %1800 = vmax.xlane.f32.xlu1 %v1799_v25  ;;  %v1096_v57 = vpop.f32.mrf.mxu2  ;;  %v1209_v50 = vpop.f32.mrf.mxu3  ;;  %3277 = vmatmul.msk.f32.gmra.mxu0 %vm445_vm1, %v438_v56 }
 0x253   : > { %v4980_v48 = vpop.xlane.xlu2 %1334  ;;  %3310 = vmatmul.msk.f32.gmra.mxu1 %vm445_vm1, %v438_v56  ;;  %v4990_v58 = vmul.f32 10.0, %v1096_v57  ;;  %v4992_v25 = vmul.f32 10.0, %v1209_v50  ;;  %v1600_v57 = vadd.f32 %v3524_v18, %v3522_v4  ;;  %v5005_v50 = vmul.f32 10.0, %v4806_v8  ;;  %v624_v4 = vpop.f32.mrf.mxu0 }
 0x254   : > { %v5016_v18 = vsub.f32 %v4562_v12, %v4790_v40  ;;  %v5031_v12 = vmul.f32 10.0, %v624_v4 }
 0x255   : > { %7352 = vst [vmem:[#allocation74_spill] sm:$0xff] %v4990_v58  ;;  %v1817_v5 = vmax.f32 %v4990_v58, %v4992_v25 }
 0x256   : > { %7353 = vst [vmem:[#allocation75_spill] sm:$0xff] %v4992_v25  ;;  %v1479_v25 = vmul.f32 1.442695, %v5016_v18 }
 0x257   : > { %7354 = vst [vmem:[#allocation76_spill] sm:$0xff] %v5005_v50 }
 0x258   : > { %7356 = vst [vmem:[#allocation78_spill] sm:$0xff] %v5016_v18  ;;  %3525 = vpow2.f32 %v1479_v25 }
 0x259   : > { %1815 = vmax.xlane.f32.xlu0 %v1814_v59  ;;  %1361 = vmax.xlane.f32.xlu2 %v1360_v36  ;;  %v439_v15 = vpop.trf.xlu0  ;;  %v5008_v59 = vmul.f32 10.0, %v4808_v9  ;;  %v5022_v9 = vsub.f32 %v4564_v13, %v4790_v40  ;;  %7361 = vst [vmem:[#allocation83_spill] sm:$0xff] %v5031_v12 }
 0x25a   : > { %1809 = vmax.xlane.f32.xlu1 %v1808_v54  ;;  %v4994_v51 = vpop.f32.mrf.mxu2  ;;  %v4996_v3 = vpop.f32.mrf.mxu3  ;;  %3278 = vmatmul.msk.f32.gmra.mxu0 %vm445_vm1, %v439_v15 }
 0x25b   : > { %v4998_v56 = vpop.xlane.xlu2 %1337  ;;  %3311 = vmatmul.msk.f32.gmra.mxu1 %vm445_vm1, %v439_v15  ;;  %7355 = vst [vmem:[#allocation77_spill] sm:$0xff] %v5008_v59  ;;  %v1802_v8 = vmax.f32 %v5005_v50, %v5008_v59  ;;  %v737_v15 = vpop.f32.mrf.mxu1  ;;  %v1481_v58 = vmul.f32 1.442695, %v5022_v9 }
 0x25c   : > { %7357 = vst [vmem:[#allocation79_spill] sm:$0xff] %v5022_v9 }
 0x25d   : > { %3527 = vpow2.f32 %v1481_v58  ;;  %v5062_v58 = vsub.f32 %v4576_v21, %v4822_v0 }
 0x25e   : > { %v3526_v18 = vpop.eup %3525 }
 0x261   : > { %1601 = vadd.xlane.f32.xlu2 %v1600_v57  ;;  %v440_v53 = vpop.trf.xlu0 }
 0x262   : > { %1818 = vmax.xlane.f32.xlu1 %v1817_v5  ;;  %v1102_v36 = vpop.f32.mrf.mxu2  ;;  %v1215_v54 = vpop.f32.mrf.mxu3  ;;  %3279 = vmatmul.msk.f32.gmra.mxu0 %vm445_vm1, %v440_v53 }
 0x263   : > { %v5010_v22 = vpop.xlane.xlu2 %1340  ;;  %3312 = vmatmul.msk.f32.gmra.mxu1 %vm445_vm1, %v440_v53  ;;  %v5024_v5 = vmul.f32 10.0, %v1102_v36  ;;  %v5026_v57 = vmul.f32 10.0, %v1215_v54  ;;  %v5029_v53 = vmul.f32 10.0, %v737_v15 }
 0x265   : > { %7358 = vst [vmem:[#allocation80_spill] sm:$0xff] %v5024_v5  ;;  %v1823_v13 = vmax.f32 %v5024_v5, %v5026_v57 }
 0x266   : > { %7359 = vst [vmem:[#allocation81_spill] sm:$0xff] %v5026_v57  ;;  %v3528_v57 = vpop.eup %3527 }
 0x267   : > { %7360 = vst [vmem:[#allocation82_spill] sm:$0xff] %v5029_v53  ;;  %1824 = vmax.xlane.f32.xlu0 %v1823_v13  ;;  %v5058_v13 = vsub.f32 %v4574_v20, %v4822_v0  ;;  %v1603_v5 = vadd.f32 %v3528_v57, %v3526_v18 }
 0x269   : > { %1803 = vmax.xlane.f32.xlu2 %v1802_v8  ;;  %v1363_v8 = vmax.f32 %v5031_v12, %v5029_v53 }
 0x26a   : > { %v1105_v59 = vpop.f32.mrf.mxu2  ;;  %v1218_v50 = vpop.f32.mrf.mxu3 }
 0x26b   : > { %v5036_v40 = vpop.xlane.xlu2 %1343  ;;  %v5038_v36 = vmul.f32 10.0, %v1105_v59  ;;  %v5040_v54 = vmul.f32 10.0, %v1218_v50 }
 0x26c   : > { %7362 = vst [vmem:[#allocation84_spill] sm:$0xff] %v5036_v40 }
 0x26d   : > { %7363 = vst [vmem:[#allocation85_spill] sm:$0xff] %v5038_v36  ;;  %v1826_v15 = vmax.f32 %v5038_v36, %v5040_v54  ;;  %v627_v36 = vpop.f32.mrf.mxu0 }
 0x26e   : > { %7364 = vst [vmem:[#allocation86_spill] sm:$0xff] %v5040_v54  ;;  %v740_v54 = vpop.f32.mrf.mxu1  ;;  %v5069_v20 = vmul.f32 10.0, %v627_v36 }
 0x26f   : > { %1827 = vmax.xlane.f32.xlu1 %v1826_v15 }
 0x270   : > { %7368 = vst [vmem:[#allocation90_spill] sm:$0xff] %v5069_v20 }
 0x271   : > { %1364 = vmax.xlane.f32.xlu2 %v1363_v8 }
 0x272   : > { %v5046_v4 = vpop.f32.mrf.mxu2  ;;  %v5048_v9 = vpop.f32.mrf.mxu3 }
 0x273   : > { %7365 = vst [vmem:[#allocation87_spill] sm:$0xff] %v5046_v4  ;;  %v1347_v59 = vpop.xlane.xlu2 %1346 }
 0x274   : > { %7366 = vst [vmem:[#allocation88_spill] sm:$0xff] %v5048_v9  ;;  %v5051_v50 = vsub.f32 %v4690_v32, %v1347_v59  ;;  %v5054_v25 = vsub.f32 %v4692_v39, %v1347_v59  ;;  %v1483_v32 = vmul.f32 1.442695, %v5058_v13  ;;  %v5067_v39 = vmul.f32 10.0, %v740_v54 }
 0x275   : > { %v1485_v59 = vmul.f32 1.442695, %v5062_v58 }
 0x276   : > { %v1519_v8 = vmul.f32 1.442695, %v5051_v50  ;;  %v1521_v15 = vmul.f32 1.442695, %v5054_v25  ;;  %7367 = vst [vmem:[#allocation89_spill] sm:$0xff] %v5067_v39  ;;  %v1366_v18 = vmax.f32 %v5069_v20, %v5067_v39  ;;  %v5088_v39 = vsub.f32 %v4588_v29, %v4848_v31 }
 0x278   : > { %3529 = vpow2.f32 %v1519_v8  ;;  %7373 = vst [vmem:[#allocation95_spill] sm:$0xff] %v5088_v39 }
 0x279   : > { %3531 = vpow2.f32 %v1521_v15  ;;  %1604 = vadd.xlane.f32.xlu2 %v1603_v5 }
 0x27a   : > { %v1111_v21 = vpop.f32.mrf.mxu2  ;;  %v1224_v0 = vpop.f32.mrf.mxu3  ;;  %3533 = vpow2.f32 %v1483_v32 }
 0x27b   : > { %v5072_v40 = vmul.f32 10.0, %v1111_v21  ;;  %v5074_v9 = vmul.f32 10.0, %v1224_v0  ;;  %3535 = vpow2.f32 %v1485_v59 }
 0x27c   : > { %v5076_v4 = vpop.xlane.xlu2 %1349 }
 0x27d   : > { %7369 = vst [vmem:[#allocation91_spill] sm:$0xff] %v5072_v40  ;;  %v1832_v5 = vmax.f32 %v5072_v40, %v5074_v9 }
 0x27e   : > { %7370 = vst [vmem:[#allocation92_spill] sm:$0xff] %v5074_v9  ;;  %v3530_v57 = vpop.eup %3529 }
 0x27f   : > { %v3532_v36 = vpop.eup %3531  ;;  %1833 = vmax.xlane.f32.xlu0 %v1832_v5  ;;  %v743_v5 = vpop.f32.mrf.mxu1 }
 0x280   : > { %v1633_v54 = vadd.f32 %v3532_v36, %v3530_v57  ;;  %v3534_v21 = vpop.eup %3533  ;;  %v630_v57 = vpop.f32.mrf.mxu0 }
 0x281   : > { %1367 = vmax.xlane.f32.xlu2 %v1366_v18  ;;  %v3536_v32 = vpop.eup %3535  ;;  %v5094_v18 = vsub.f32 %v4590_v30, %v4848_v31 }
 0x282   : > { %1634 = vadd.xlane.f32.xlu1 %v1633_v54  ;;  %v1114_v8 = vpop.f32.mrf.mxu2  ;;  %v1227_v15 = vpop.f32.mrf.mxu3  ;;  %v1606_v36 = vadd.f32 %v3536_v32, %v3534_v21  ;;  %v1487_v54 = vmul.f32 1.442695, %v5088_v39 }
 0x283   : > { %v5082_v0 = vmul.f32 10.0, %v1114_v8  ;;  %v5084_v53 = vmul.f32 10.0, %v1227_v15  ;;  %7374 = vst [vmem:[#allocation96_spill] sm:$0xff] %v5094_v18  ;;  %v5097_v8 = vmul.f32 10.0, %v743_v5  ;;  %v5099_v15 = vmul.f32 10.0, %v630_v57 }
 0x284   : > { %v1353_v12 = vpop.xlane.xlu2 %1352  ;;  %v1489_v29 = vmul.f32 1.442695, %v5094_v18  ;;  %3537 = vpow2.f32 %v1487_v54 }
 0x285   : > { %7371 = vst [vmem:[#allocation93_spill] sm:$0xff] %v5082_v0  ;;  %v1835_v59 = vmax.f32 %v5082_v0, %v5084_v53  ;;  %v1369_v30 = vmax.f32 %v5099_v15, %v5097_v8  ;;  %v5113_v18 = vsub.f32 %v4727_v10, %v1353_v12 }
 0x286   : > { %7372 = vst [vmem:[#allocation94_spill] sm:$0xff] %v5084_v53  ;;  %3539 = vpow2.f32 %v1489_v29  ;;  %v5119_v29 = vmul.f32 10.0, %v4918_v35 }
 0x287   : > { %1836 = vmax.xlane.f32.xlu0 %v1835_v59  ;;  %7375 = vst [vmem:[#allocation97_spill] sm:$0xff] %v5097_v8  ;;  %v1527_v10 = vmul.f32 1.442695, %v5113_v18 }
 0x288   : > { %7376 = vst [vmem:[#allocation98_spill] sm:$0xff] %v5099_v15 }
 0x289   : > { %1607 = vadd.xlane.f32.xlu2 %v1606_v36  ;;  %7380 = vst [vmem:[#allocation102_spill] sm:$0xff] %v5113_v18 }
 0x28a   : > { %v3538_v31 = vpop.eup %3537  ;;  %7382 = vst [vmem:[#allocation104_spill] sm:$0xff] %v5119_v29 }
 0x28c   : > { %v5102_v9 = vpop.xlane.xlu2 %1592  ;;  %v5104_v53 = vpop.xlane.xlu0 %1355 }
 0x28d   : > { %7377 = vst [vmem:[#allocation99_spill] sm:$0xff] %v5102_v9  ;;  %v3540_v21 = vpop.eup %3539  ;;  %v5116_v9 = vmul.f32 10.0, %v4916_v2 }
 0x28e   : > { %7378 = vst [vmem:[#allocation100_spill] sm:$0xff] %v5104_v53  ;;  %v1609_v0 = vadd.f32 %v3540_v21, %v3538_v31 }
 0x28f   : > { %7381 = vst [vmem:[#allocation103_spill] sm:$0xff] %v5116_v9 }
 0x291   : > { %1370 = vmax.xlane.f32.xlu2 %v1369_v30  ;;  %v5122_v30 = vsub.f32 %v4722_v63, %v1353_v12  ;;  %v1811_v63 = vmax.f32 %v5116_v9, %v5119_v29  ;;  %v5138_v12 = vsub.f32 %v4602_v38, %v4878_v16  ;;  %v5203_v29 = vpop.f32.mrf.mxu3 }
 0x293   : > { %7383 = vst [vmem:[#allocation105_spill] sm:$0xff] %v5122_v30  ;;  %v1529_v2 = vmul.f32 1.442695, %v5122_v30  ;;  %v1493_v40 = vmul.f32 1.442695, %v5138_v12 }
 0x294   : > { %v5108_v32 = vpop.xlane.xlu2 %1595  ;;  %v1753_v59 = vpop.xlane.xlu0 %1752 }
 0x295   : > { %7379 = vst [vmem:[#allocation101_spill] sm:$0xff] %v5108_v32  ;;  %v1847_v5 = vsub.f32 %v4759_v14, %v1753_v59  ;;  %v1848_v57 = vsub.f32 %v4762_v28, %v1753_v59  ;;  %v1359_v36 = vpop.xlane.xlu1 %1358  ;;  %v5126_v14 = vsub.f32 %v4600_v37, %v4878_v16  ;;  %v746_v37 = vpop.f32.mrf.mxu1 }
 0x296   : > { %v5148_v38 = vmul.f32 10.0, %v746_v37 }
 0x297   : > { %v1911_v39 = vmul.f32 1.442695, %v1847_v5  ;;  %v1913_v54 = vmul.f32 1.442695, %v1848_v57 }
 0x298   : > { %7385 = vst [vmem:[#allocation107_spill] sm:$0xff] %v5148_v38 }
 0x299   : > { %3541 = vpow2.f32 %v1911_v39  ;;  %1610 = vadd.xlane.f32.xlu2 %v1609_v0  ;;  %v633_v39 = vpop.f32.mrf.mxu0 }
 0x29a   : > { %3543 = vpow2.f32 %v1913_v54  ;;  %v1491_v54 = vmul.f32 1.442695, %v5126_v14  ;;  %v5150_v16 = vmul.f32 10.0, %v633_v39  ;;  %v7390_v39 = vld [vmem:[#allocation49_spill] sm:$0xff] }
 0x29b   : > { %3545 = vpow2.f32 %v1527_v10  ;;  %v2136_v10 = vsub.f32 %v1848_v57, %v4710_v7  ;;  %v7389_v57 = vld [vmem:[#allocation30_spill] sm:$0xff]  ;;  %7394 = vst [vmem:[#allocation49_spill] sm:$0xff] %v5203_v29 }
 0x29c   : > { %v1759_v28 = vpop.xlane.xlu2 %1758  ;;  %v1762_v31 = vpop.xlane.xlu0 %1761  ;;  %3547 = vpow2.f32 %v1529_v2  ;;  %7386 = vst [vmem:[#allocation108_spill] sm:$0xff] %v5150_v16  ;;  %v1372_v7 = vmax.f32 %v5150_v16, %v5148_v38 }
 0x29d   : > { %v1853_v21 = vsub.f32 %v4785_v11, %v1762_v31  ;;  %v1854_v35 = vsub.f32 %v4788_v43, %v1762_v31  ;;  %v5132_v59 = vpop.xlane.xlu1 %1755  ;;  %v2135_v11 = vsub.f32 %v1847_v5, %v4705_v24  ;;  %v5143_v43 = vsub.f32 %v4779_v52, %v1759_v28  ;;  %v5201_v16 = vpop.f32.mrf.mxu2 }
 0x29e   : > { %7384 = vst [vmem:[#allocation106_spill] sm:$0xff] %v5132_v59  ;;  %v5146_v32 = vsub.f32 %v4782_v6, %v1759_v28 }
 0x29f   : > { %v3542_v0 = vpop.eup %3541  ;;  %v1923_v31 = vmul.f32 1.442695, %v1853_v21  ;;  %v1925_v18 = vmul.f32 1.442695, %v1854_v35  ;;  %v1919_v52 = vmul.f32 1.442695, %v5143_v43 }
 0x2a0   : > { %v3544_v30 = vpop.eup %3543  ;;  %v5154_v24 = vmul.f32 %v3542_v0, %v2135_v11  ;;  %7393 = vst [vmem:[#allocation30_spill] sm:$0xff] %v5201_v16 }
 0x2a1   : > { %1812 = vmax.xlane.f32.xlu2 %v1811_v63  ;;  %v2039_v53 = vadd.f32 %v3544_v30, %v3542_v0  ;;  %3549 = vpow2.f32 %v1923_v31  ;;  %v5161_v28 = vmul.f32 %v3544_v30, %v2136_v10  ;;  %v3546_v2 = vpop.eup %3545  ;;  %v1921_v63 = vmul.f32 1.442695, %v5146_v32  ;;  %v7391_v30 = vld [vmem:[#allocation48_spill] sm:$0xff]  ;;  %v7392_v10 = vld [vmem:[#allocation31_spill] sm:$0xff] }
 0x2a2   : > { %3551 = vpow2.f32 %v1925_v18  ;;  %v5170_v18 = vsub.f32 %v7389_v57, %v4921_v62  ;;  %v5173_v0 = vsub.f32 %v7390_v39, %v1359_v36  ;;  %v5176_v11 = vsub.f32 %v7391_v30, %v1359_v36 }
 0x2a3   : > { %2040 = vadd.xlane.f32.xlu1 %v2039_v53  ;;  %3553 = vpow2.f32 %v1491_v54  ;;  %v3548_v53 = vpop.eup %3547  ;;  %v2141_v54 = vsub.f32 %v1853_v21, %v4952_v55 }
 0x2a4   : > { %v5157_v5 = vpop.xlane.xlu2 %1767  ;;  %v5159_v6 = vpop.xlane.xlu0 %1770  ;;  %3555 = vpow2.f32 %v1493_v40  ;;  %v2142_v40 = vsub.f32 %v1854_v35, %v4960_v1  ;;  %v1639_v38 = vadd.f32 %v3548_v53, %v3546_v2 }
 0x2a5   : > { %7387 = vst [vmem:[#allocation109_spill] sm:$0xff] %v5159_v6  ;;  %v5164_v37 = vpop.xlane.xlu1 %1764  ;;  %3557 = vpow2.f32 %v1919_v52  ;;  %v5181_v6 = vsub.f32 %v7392_v10, %v4921_v62  ;;  %v1535_v52 = vmul.f32 1.442695, %v5173_v0  ;;  %v1537_v62 = vmul.f32 1.442695, %v5176_v11  ;;  %v749_v10 = vpop.f32.mrf.mxu1 }
 0x2a6   : > { %7388 = vst [vmem:[#allocation110_spill] sm:$0xff] %v5164_v37  ;;  %3559 = vpow2.f32 %v1921_v63  ;;  %v1495_v37 = vmul.f32 1.442695, %v5170_v18  ;;  %v1120_v20 = vpop.f32.mrf.mxu2 }
 0x2a7   : > { %v3550_v31 = vpop.eup %3549  ;;  %v1497_v35 = vmul.f32 1.442695, %v5181_v6 }
 0x2a8   : > { %v3552_v57 = vpop.eup %3551  ;;  %v5185_v39 = vmul.f32 %v3550_v31, %v2141_v54  ;;  %3561 = vpow2.f32 %v1495_v37 }
 0x2a9   : > { %1373 = vmax.xlane.f32.xlu2 %v1372_v7  ;;  %v3554_v36 = vpop.eup %3553  ;;  %v5188_v30 = vmul.f32 %v3552_v57, %v2142_v40  ;;  %v2048_v55 = vadd.f32 %v3552_v57, %v3550_v31  ;;  %v636_v40 = vpop.f32.mrf.mxu0  ;;  %3563 = vpow2.f32 %v1535_v52  ;;  %v5212_v52 = vsub.f32 %v4811_v26, %v5157_v5 }
 0x2aa   : > { %v3556_v21 = vpop.eup %3555  ;;  %3565 = vpow2.f32 %v1537_v62 }
 0x2ab   : > { %1640 = vadd.xlane.f32.xlu1 %v1639_v38  ;;  %2049 = vadd.xlane.f32.xlu0 %v2048_v55  ;;  %v5194_v54 = vpop.eup %3557  ;;  %v1612_v38 = vadd.f32 %v3556_v21, %v3554_v36  ;;  %3567 = vpow2.f32 %v1497_v35  ;;  %v7398_v35 = vld [vmem:[#allocation52_spill] sm:$0xff] }
 0x2ac   : > { %v5191_v63 = vpop.xlane.xlu2 %1776  ;;  %v1780_v1 = vpop.xlane.xlu0 %1779 }
 0x2ad   : > { %v1774_v7 = vpop.xlane.xlu1 %1773  ;;  %v1865_v2 = vsub.f32 %v4843_v49, %v1780_v1  ;;  %v1866_v53 = vsub.f32 %v4846_v46, %v1780_v1  ;;  %v5199_v57 = vpop.eup %3559  ;;  %v5206_v46 = vmul.f32 10.0, %v749_v10  ;;  %v7397_v10 = vld [vmem:[#allocation32_spill] sm:$0xff] }
 0x2ae   : > { %v1861_v31 = vsub.f32 %v4851_v41, %v1774_v7  ;;  %v1862_v37 = vsub.f32 %v4854_v42, %v1774_v7  ;;  %v5208_v41 = vmul.f32 10.0, %v636_v40  ;;  %v2045_v36 = vadd.f32 %v5199_v57, %v5194_v54  ;;  %v3562_v62 = vpop.eup %3561 }
 0x2af   : > { %v1947_v55 = vmul.f32 1.442695, %v1865_v2  ;;  %v1949_v9 = vmul.f32 1.442695, %v1866_v53  ;;  %7395 = vst [vmem:[#allocation48_spill] sm:$0xff] %v5206_v46  ;;  %v3564_v7 = vpop.eup %3563  ;;  %v1417_v40 = vsub.f32 %v7397_v10, %v4948_v44  ;;  %v7399_v10 = vld [vmem:[#allocation33_spill] sm:$0xff] }
 0x2b0   : > { %v1939_v49 = vmul.f32 1.442695, %v1861_v31  ;;  %7396 = vst [vmem:[#allocation31_spill] sm:$0xff] %v5208_v41  ;;  %v1941_v21 = vmul.f32 1.442695, %v1862_v37  ;;  %v3566_v29 = vpop.eup %3565  ;;  %v1418_v8 = vsub.f32 %v7399_v10, %v4948_v44  ;;  %v2149_v44 = vsub.f32 %v1861_v31, %v5126_v14 }
 0x2b1   : > { %1613 = vadd.xlane.f32.xlu2 %v1612_v38  ;;  %3569 = vpow2.f32 %v1947_v55  ;;  %v5222_v38 = vsub.f32 %v7398_v35, %v5157_v5  ;;  %v1375_v55 = vmax.f32 %v5208_v41, %v5206_v46  ;;  %v3568_v5 = vpop.eup %3567  ;;  %v2153_v35 = vsub.f32 %v1865_v2, %v1417_v40 }
 0x2b2   : > { %3571 = vpow2.f32 %v1949_v9  ;;  %v1931_v9 = vmul.f32 1.442695, %v5212_v52  ;;  %v2154_v41 = vsub.f32 %v1866_v53, %v1418_v8  ;;  %v5247_v2 = vadd.f32 %v5161_v28, %v5154_v24 }
 0x2b3   : > { %2046 = vadd.xlane.f32.xlu1 %v2045_v36  ;;  %3573 = vpow2.f32 %v1939_v49  ;;  %v1933_v46 = vmul.f32 1.442695, %v5222_v38  ;;  %v5262_v24 = vmul.f32 10.0, %v1120_v20 }
 0x2b4   : > { %v5216_v42 = vpop.xlane.xlu2 %1785  ;;  %v1789_v1 = vpop.xlane.xlu0 %1788  ;;  %3575 = vpow2.f32 %v1941_v21  ;;  %v1645_v21 = vadd.f32 %v3566_v29, %v3564_v7  ;;  %7402 = vst [vmem:[#allocation33_spill] sm:$0xff] %v5247_v2  ;;  %v2150_v29 = vsub.f32 %v1862_v37, %v5138_v12  ;;  %v7405_v37 = vld [vmem:[#allocation38_spill] sm:$0xff] }
 0x2b5   : > { %v5224_v26 = vpop.xlane.xlu1 %1782  ;;  %v1871_v36 = vsub.f32 %v4873_v47, %v1789_v1  ;;  %v5231_v16 = vsub.f32 %v4876_v17, %v1789_v1  ;;  %v1233_v47 = vpop.f32.mrf.mxu3  ;;  %3577 = vpow2.f32 %v1931_v9  ;;  %7403 = vst [vmem:[#allocation111_spill] sm:$0xff] %v5262_v24  ;;  %v1499_v9 = vmul.f32 1.442695, %v1417_v40 }
 0x2b6   : > { %v5264_v28 = vmul.f32 10.0, %v1233_v47  ;;  %v5271_v10 = vsub.f32 %v7405_v37, %v5010_v22  ;;  %v752_v40 = vpop.f32.mrf.mxu1  ;;  %v1615_v47 = vadd.f32 %v3568_v5, %v3562_v62 }
 0x2b7   : > { %v1959_v49 = vmul.f32 1.442695, %v1871_v36  ;;  %v1961_v15 = vmul.f32 1.442695, %v5231_v16  ;;  %v5236_v59 = vpop.eup %3569  ;;  %v5300_v37 = vmul.f32 10.0, %v752_v40 }
 0x2b8   : > { %7400 = vst [vmem:[#allocation32_spill] sm:$0xff] %v5236_v59  ;;  %v5239_v23 = vpop.eup %3571  ;;  %v5242_v17 = vmul.f32 %v5236_v59, %v2153_v35  ;;  %v7420_v59 = vld [vmem:[#allocation67_spill] sm:$0xff] }
 0x2b9   : > { %1376 = vmax.xlane.f32.xlu2 %v1375_v55  ;;  %7401 = vst [vmem:[#allocation52_spill] sm:$0xff] %v5239_v23  ;;  %v5249_v1 = vpop.eup %3573  ;;  %v5252_v53 = vmul.f32 %v5239_v23, %v2154_v41  ;;  %3579 = vpow2.f32 %v1959_v49  ;;  %v1501_v41 = vmul.f32 1.442695, %v1418_v8  ;;  %v639_v8 = vpop.f32.mrf.mxu0 }
 0x2ba   : > { %v5255_v7 = vpop.eup %3575  ;;  %v5258_v55 = vmul.f32 %v5249_v1, %v2149_v44  ;;  %3581 = vpow2.f32 %v1961_v15  ;;  %7404 = vst [vmem:[#allocation112_spill] sm:$0xff] %v5264_v28  ;;  %v5275_v15 = vsub.f32 %v4837_v33, %v5191_v63  ;;  %v2159_v33 = vsub.f32 %v1871_v36, %v5271_v10 }
 0x2bb   : > { %1646 = vadd.xlane.f32.xlu1 %v1645_v21  ;;  %3583 = vpow2.f32 %v1933_v46  ;;  %v5267_v12 = vmul.f32 %v5255_v7, %v2150_v29  ;;  %v7406_v46 = vld [vmem:[#allocation39_spill] sm:$0xff]  ;;  %v5289_v44 = vpop.eup %3577  ;;  %7409 = vst [vmem:[#allocation113_spill] sm:$0xff] %v5300_v37  ;;  %v5302_v62 = vmul.f32 10.0, %v639_v8  ;;  %v5308_v36 = vsub.f32 %v4840_v34, %v5191_v63  ;;  %v7414_v8 = vld [vmem:[#allocation42_spill] sm:$0xff]  ;;  %v7415_v34 = vld [vmem:[#allocation61_spill] sm:$0xff] }
 0x2bc   : > { %v5260_v14 = vpop.xlane.xlu2 %1794  ;;  %v1798_v31 = vpop.xlane.xlu0 %1797  ;;  %v5285_v49 = vsub.f32 %v7406_v46, %v5010_v22  ;;  %3585 = vpow2.f32 %v1499_v9  ;;  %v1943_v46 = vmul.f32 1.442695, %v5275_v15  ;;  %v2139_v63 = vsub.f32 %v5143_v43, %v7415_v34 }
 0x2bd   : > { %v5278_v35 = vsub.f32 %v4910_v60, %v1798_v31  ;;  %v5281_v20 = vsub.f32 %v4913_v27, %v1798_v31  ;;  %v5287_v21 = vpop.xlane.xlu1 %1791  ;;  %v1841_v27 = vmax.f32 %v5262_v24, %v5264_v28  ;;  %7410 = vst [vmem:[#allocation114_spill] sm:$0xff] %v5302_v62  ;;  %3587 = vpow2.f32 %v1501_v41 }
 0x2be   : > { %7407 = vst [vmem:[#allocation38_spill] sm:$0xff] %v5287_v21  ;;  %v2160_v22 = vsub.f32 %v5231_v16, %v5285_v49  ;;  %v7412_v16 = vld [vmem:[#allocation43_spill] sm:$0xff]  ;;  %v7417_v21 = vld [vmem:[#allocation60_spill] sm:$0xff]  ;;  %v1378_v34 = vmax.f32 %v5302_v62, %v5300_v37 }
 0x2bf   : > { %v1971_v29 = vmul.f32 1.442695, %v5278_v35  ;;  %v1973_v60 = vmul.f32 1.442695, %v5281_v20  ;;  %v5296_v31 = vpop.eup %3579  ;;  %v5318_v40 = vsub.f32 %v7412_v16, %v5076_v4  ;;  %v5335_v23 = vsub.f32 %v7417_v21, %v5224_v26 }
 0x2c0   : > { %7408 = vst [vmem:[#allocation39_spill] sm:$0xff] %v5296_v31  ;;  %v5304_v5 = vpop.eup %3581  ;;  %v5312_v28 = vmul.f32 %v5296_v31, %v2159_v33  ;;  %v7416_v33 = vld [vmem:[#allocation59_spill] sm:$0xff] }
 0x2c1   : > { %1616 = vadd.xlane.f32.xlu2 %v1615_v47  ;;  %7411 = vst [vmem:[#allocation115_spill] sm:$0xff] %v5304_v5  ;;  %v5314_v9 = vpop.eup %3583  ;;  %v5322_v47 = vsub.f32 %v7414_v8, %v5076_v4  ;;  %v5325_v41 = vmul.f32 %v5304_v5, %v2160_v22  ;;  %3589 = vpow2.f32 %v1971_v29  ;;  %v5331_v24 = vsub.f32 %v7416_v33, %v5224_v26  ;;  %v7419_v8 = vld [vmem:[#allocation62_spill] sm:$0xff]  ;;  %v7421_v26 = vld [vmem:[#allocation57_spill] sm:$0xff]  ;;  %v7423_v31 = vld [vmem:[#allocation63_spill] sm:$0xff] }
 0x2c2   : > { %7413 = vst [vmem:[#allocation43_spill] sm:$0xff] %v5318_v40  ;;  %3591 = vpow2.f32 %v1973_v60  ;;  %v2140_v22 = vsub.f32 %v5146_v32, %v7419_v8  ;;  %v1945_v33 = vmul.f32 1.442695, %v5308_v36  ;;  %v5348_v21 = vsub.f32 %v7421_v26, %v5216_v42  ;;  %v7422_v32 = vld [vmem:[#allocation58_spill] sm:$0xff] }
 0x2c3   : > { %1842 = vmax.xlane.f32.xlu1 %v1841_v27  ;;  %3593 = vpow2.f32 %v1943_v46  ;;  %v2054_v60 = vadd.f32 %v5314_v9, %v5289_v44  ;;  %v3586_v27 = vpop.eup %3585  ;;  %v5354_v8 = vsub.f32 %v7422_v32, %v5216_v42  ;;  %v1951_v46 = vmul.f32 1.442695, %v5331_v24 }
 0x2c4   : > { %v5337_v16 = vpop.xlane.xlu2 %1598  ;;  %v1807_v4 = vpop.xlane.xlu0 %1806  ;;  %v1953_v37 = vmul.f32 1.442695, %v5335_v23  ;;  %v2165_v26 = vsub.f32 %v5278_v35, %v5318_v40  ;;  %v5366_v42 = vsub.f32 %v7423_v31, %v5260_v14  ;;  %v2166_v32 = vsub.f32 %v5281_v20, %v5322_v47  ;;  %v7426_v35 = vld [vmem:[#allocation64_spill] sm:$0xff] }
 0x2c5   : > { %7418 = vst [vmem:[#allocation42_spill] sm:$0xff] %v5337_v16  ;;  %v1883_v29 = vsub.f32 %v4938_v45, %v1807_v4  ;;  %v1884_v43 = vsub.f32 %v7420_v59, %v1807_v4  ;;  %v3588_v16 = vpop.eup %3587  ;;  %v1123_v31 = vpop.f32.mrf.mxu2  ;;  %v2204_v20 = vmul.f32 %v5199_v57, %v2140_v22  ;;  %v7428_v22 = vld [vmem:[#allocation34_spill] sm:$0xff] }
 0x2c6   : > { %v1236_v40 = vpop.f32.mrf.mxu3  ;;  %v1967_v57 = vmul.f32 1.442695, %v5366_v42 }
 0x2c7   : > { %v1983_v45 = vmul.f32 1.442695, %v1883_v29  ;;  %v1985_v59 = vmul.f32 1.442695, %v1884_v43  ;;  %v2171_v4 = vsub.f32 %v1883_v29, %v5173_v0  ;;  %v2172_v62 = vsub.f32 %v1884_v43, %v5176_v11  ;;  %v5362_v5 = vpop.eup %3589  ;;  %v5370_v0 = vpop.xlane.xlu1 %1800 }
 0x2c8   : > { %7424 = vst [vmem:[#allocation61_spill] sm:$0xff] %v5370_v0  ;;  %v2203_v29 = vmul.f32 %v5194_v54, %v2139_v63  ;;  %v5373_v2 = vpop.eup %3591  ;;  %v5377_v11 = vsub.f32 %v7426_v35, %v5260_v14  ;;  %v5380_v43 = vmul.f32 %v5362_v5, %v2165_v26  ;;  %v5387_v54 = vmul.f32 10.0, %v1123_v31  ;;  %v7429_v31 = vld [vmem:[#allocation35_spill] sm:$0xff] }
 0x2c9   : > { %3595 = vpow2.f32 %v1983_v45  ;;  %1379 = vmax.xlane.f32.xlu2 %v1378_v34  ;;  %7425 = vst [vmem:[#allocation59_spill] sm:$0xff] %v5373_v2  ;;  %v1955_v45 = vmul.f32 1.442695, %v5348_v21  ;;  %v5385_v34 = vmul.f32 %v5373_v2, %v2166_v32  ;;  %v5389_v63 = vmul.f32 10.0, %v1236_v40  ;;  %v5391_v0 = vpop.eup %3593 }
 0x2ca   : > { %3597 = vpow2.f32 %v1985_v59  ;;  %v1957_v14 = vmul.f32 1.442695, %v5354_v8  ;;  %v5396_v26 = vadd.f32 %v2204_v20, %v2203_v29  ;;  %v1419_v32 = vsub.f32 %v7428_v22, %v4980_v48  ;;  %v7431_v22 = vld [vmem:[#allocation37_spill] sm:$0xff] }
 0x2cb   : > { %7427 = vst [vmem:[#allocation60_spill] sm:$0xff] %v5389_v63  ;;  %3599 = vpow2.f32 %v1951_v46  ;;  %2055 = vadd.xlane.f32.xlu1 %v2054_v60  ;;  %v1969_v40 = vmul.f32 1.442695, %v5377_v11  ;;  %v1420_v2 = vsub.f32 %v7429_v31, %v4980_v48  ;;  %v1618_v60 = vadd.f32 %v3588_v16, %v3586_v27 }
 0x2cc   : > { %v5394_v59 = vpop.xlane.xlu2 %1361  ;;  %3601 = vpow2.f32 %v1953_v37  ;;  %v1844_v46 = vmax.f32 %v5387_v54, %v5389_v63  ;;  %v5417_v20 = vmul.f32 10.0, %v4996_v3  ;;  %v2145_v27 = vsub.f32 %v5212_v52, %v5058_v13 }
 0x2cd   : > { %3603 = vpow2.f32 %v1945_v33  ;;  %v5414_v33 = vmul.f32 10.0, %v4994_v51  ;;  %v1505_v51 = vmul.f32 1.442695, %v1420_v2  ;;  %v5438_v31 = vsub.f32 %v7431_v22, %v4998_v56  ;;  %v755_v22 = vpop.f32.mrf.mxu1 }
 0x2ce   : > { %3605 = vpow2.f32 %v1955_v45  ;;  %1845 = vmax.xlane.f32.xlu0 %v1844_v46  ;;  %v1503_v45 = vmul.f32 1.442695, %v1419_v32  ;;  %v2155_v13 = vsub.f32 %v5331_v24, %v1419_v32  ;;  %v2156_v52 = vsub.f32 %v5335_v23, %v1420_v2 }
 0x2cf   : > { %v5402_v35 = vpop.eup %3595  ;;  %3607 = vpow2.f32 %v1957_v14  ;;  %v7430_v14 = vld [vmem:[#allocation36_spill] sm:$0xff]  ;;  %v2209_v46 = vmul.f32 %v5289_v44, %v2145_v27  ;;  %v2158_v44 = vsub.f32 %v5354_v8, %v5438_v31  ;;  %v2164_v8 = vsub.f32 %v5377_v11, %v5054_v25 }
 0x2d0   : > { %v5408_v29 = vpop.eup %3597  ;;  %v5411_v37 = vmul.f32 %v5402_v35, %v2171_v4  ;;  %3609 = vpow2.f32 %v1967_v57  ;;  %v5430_v3 = vsub.f32 %v7430_v14, %v4998_v56  ;;  %v1820_v56 = vmax.f32 %v5414_v33, %v5417_v20 }
 0x2d1   : > { %v5420_v48 = vmul.f32 %v5408_v29, %v2172_v62  ;;  %1619 = vadd.xlane.f32.xlu2 %v1618_v60  ;;  %v5422_v16 = vpop.eup %3599  ;;  %3611 = vpow2.f32 %v1969_v40  ;;  %v2146_v62 = vsub.f32 %v5222_v38, %v5062_v58  ;;  %v1810_v40 = vpop.xlane.xlu1 %1809  ;;  %v2151_v58 = vsub.f32 %v5275_v15, %v5170_v18 }
 0x2d2   : > { %v5426_v4 = vpop.eup %3601  ;;  %v2152_v38 = vsub.f32 %v5308_v36, %v5181_v6  ;;  %v2157_v2 = vsub.f32 %v5348_v21, %v5430_v3  ;;  %v2219_v32 = vmul.f32 %v5422_v16, %v2155_v13  ;;  %v642_v15 = vpop.f32.mrf.mxu0  ;;  %v2163_v36 = vsub.f32 %v5366_v42, %v5051_v50 }
 0x2d3   : > { %v5434_v57 = vpop.eup %3603  ;;  %v2210_v24 = vmul.f32 %v5314_v9, %v2146_v62  ;;  %v2220_v18 = vmul.f32 %v5426_v4, %v2156_v52  ;;  %v1885_v9 = vsub.f32 %v4975_v61, %v1810_v40  ;;  %v5471_v21 = vadd.f32 %v5267_v12, %v5258_v55 }
 0x2d4   : > { %v5442_v60 = vpop.xlane.xlu2 %1601  ;;  %v5445_v14 = vpop.eup %3605  ;;  %v1886_v13 = vsub.f32 %v4978_v19, %v1810_v40  ;;  %v5478_v52 = vmul.f32 10.0, %v755_v22  ;;  %v5482_v50 = vadd.f32 %v5188_v30, %v5185_v39  ;;  %v5484_v61 = vmul.f32 10.0, %v642_v15 }
 0x2d5   : > { %7432 = vst [vmem:[#allocation62_spill] sm:$0xff] %v5442_v60  ;;  %v5454_v23 = vpop.eup %3607  ;;  %v5467_v27 = vadd.f32 %v2210_v24, %v2209_v46  ;;  %v2215_v42 = vmul.f32 %v5391_v0, %v2151_v58  ;;  %v2216_v55 = vmul.f32 %v5434_v57, %v2152_v38  ;;  %v2221_v12 = vmul.f32 %v5445_v14, %v2157_v2 }
 0x2d6   : > { %v5462_v6 = vpop.eup %3609  ;;  %3613 = vpow2.f32 %v1503_v45  ;;  %v2222_v25 = vmul.f32 %v5454_v23, %v2158_v44  ;;  %v5492_v19 = vadd.f32 %v5252_v53, %v5242_v17  ;;  %v5494_v11 = vadd.f32 %v2220_v18, %v2219_v32  ;;  %v7443_v18 = vld [vmem:[#allocation83_spill] sm:$0xff] }
 0x2d7   : > { %v5473_v62 = vpop.eup %3611  ;;  %v1987_v39 = vmul.f32 1.442695, %v1885_v9  ;;  %v5496_v30 = vadd.f32 %v2216_v55, %v2215_v42  ;;  %v2227_v40 = vmul.f32 %v5462_v6, %v2163_v36  ;;  %v1989_v58 = vmul.f32 1.442695, %v1886_v13  ;;  %v7444_v36 = vld [vmem:[#allocation82_spill] sm:$0xff] }
 0x2d8   : > { %7433 = vst [vmem:[#allocation67_spill] sm:$0xff] %v5492_v19  ;;  %v2228_v46 = vmul.f32 %v5473_v62, %v2164_v8  ;;  %v5506_v45 = vadd.f32 %v5325_v41, %v5312_v28  ;;  %v5510_v17 = vadd.f32 %v5385_v34, %v5380_v43  ;;  %3615 = vpow2.f32 %v1505_v51  ;;  %v7440_v41 = vld [vmem:[#allocation73_spill] sm:$0xff]  ;;  %v7441_v43 = vld [vmem:[#allocation70_spill] sm:$0xff] }
 0x2d9   : > { %1821 = vmax.xlane.f32.xlu2 %v1820_v56  ;;  %7434 = vst [vmem:[#allocation57_spill] sm:$0xff] %v5494_v11  ;;  %v5502_v56 = vadd.f32 %v2222_v25, %v2221_v12  ;;  %v1381_v53 = vmax.f32 %v5484_v61, %v5478_v52  ;;  %3617 = vpow2.f32 %v1987_v39  ;;  %v5518_v2 = vadd.f32 %v5420_v48, %v5411_v37  ;;  %v758_v37 = vpop.f32.mrf.mxu1  ;;  %v7487_v11 = vld [vmem:[#allocation43_spill] sm:$0xff] }
 0x2da   : > { %7436 = vst [vmem:[#allocation63_spill] sm:$0xff] %v5506_v45  ;;  %v5514_v22 = vadd.f32 %v2228_v46, %v2227_v40  ;;  %3619 = vpow2.f32 %v1989_v58  ;;  %v5522_v44 = vsub.f32 %v7440_v41, %v5394_v59  ;;  %v5526_v34 = vsub.f32 %v7441_v43, %v5394_v59  ;;  %v645_v55 = vpop.f32.mrf.mxu0  ;;  %v7467_v45 = vld [vmem:[#allocation40_spill] sm:$0xff] }
 0x2db   : > { %7435 = vst [vmem:[#allocation58_spill] sm:$0xff] %v5502_v56  ;;  %v1507_v40 = vmul.f32 1.442695, %v5430_v3  ;;  %v1509_v46 = vmul.f32 1.442695, %v5438_v31  ;;  %v5544_v58 = vmul.f32 10.0, %v758_v37 }
 0x2dc   : > { %v5500_v38 = vpop.xlane.xlu2 %1803  ;;  %7437 = vst [vmem:[#allocation64_spill] sm:$0xff] %v5510_v17  ;;  %v3614_v24 = vpop.eup %3613  ;;  %v2173_v12 = vsub.f32 %v1885_v9, %v5522_v44  ;;  %v2174_v25 = vsub.f32 %v1886_v13, %v5526_v34  ;;  %v7463_v17 = vld [vmem:[#allocation45_spill] sm:$0xff]  ;;  %v7497_v56 = vld [vmem:[#allocation47_spill] sm:$0xff] }
 0x2dd   : > { %7438 = vst [vmem:[#allocation34_spill] sm:$0xff] %v5514_v22 }
 0x2de   : > { %7439 = vst [vmem:[#allocation35_spill] sm:$0xff] %v5518_v2  ;;  %v3616_v28 = vpop.eup %3615 }
 0x2df   : > { %v5528_v32 = vpop.eup %3617  ;;  %v1621_v42 = vadd.f32 %v3616_v28, %v3614_v24 }
 0x2e0   : > { %7442 = vst [vmem:[#allocation36_spill] sm:$0xff] %v5528_v32  ;;  %v5536_v48 = vpop.eup %3619  ;;  %v2237_v24 = vmul.f32 %v5528_v32, %v2173_v12  ;;  %v7449_v12 = vld [vmem:[#allocation72_spill] sm:$0xff] }
 0x2e1   : > { %1382 = vmax.xlane.f32.xlu2 %v1381_v53  ;;  %7445 = vst [vmem:[#allocation37_spill] sm:$0xff] %v5536_v48  ;;  %v5546_v53 = vmul.f32 10.0, %v645_v55  ;;  %v2238_v9 = vmul.f32 %v5536_v48, %v2174_v25  ;;  %v7479_v32 = vld [vmem:[#allocation108_spill] sm:$0xff] }
 0x2e2   : > { %v648_v60 = vpop.f32.mrf.mxu0 }
 0x2e3   : > { %v5550_v13 = vadd.f32 %v2238_v9, %v2237_v24  ;;  %v1384_v3 = vmax.f32 %v5546_v53, %v5544_v58  ;;  %v761_v9 = vpop.f32.mrf.mxu1 }
 0x2e4   : > { %v1365_v51 = vpop.xlane.xlu2 %1364 }
 0x2e5   : > { %v5531_v15 = vsub.f32 %v7443_v18, %v1365_v51  ;;  %v5534_v8 = vsub.f32 %v7444_v36, %v1365_v51  ;;  %7446 = vst [vmem:[#allocation73_spill] sm:$0xff] %v5550_v13  ;;  %v1816_v18 = vpop.xlane.xlu0 %1815 }
 0x2e6   : > { %v1890_v25 = vsub.f32 %v7449_v12, %v1816_v18 }
 0x2e7   : > { %v1543_v59 = vmul.f32 1.442695, %v5531_v15  ;;  %v1545_v39 = vmul.f32 1.442695, %v5534_v8 }
 0x2e9   : > { %3621 = vpow2.f32 %v1543_v59  ;;  %1622 = vadd.xlane.f32.xlu2 %v1621_v42  ;;  %v7448_v42 = vld [vmem:[#allocation71_spill] sm:$0xff]  ;;  %v7450_v59 = vld [vmem:[#allocation90_spill] sm:$0xff] }
 0x2ea   : > { %3623 = vpow2.f32 %v1545_v39  ;;  %v1889_v55 = vsub.f32 %v7448_v42, %v1816_v18  ;;  %v5563_v42 = vmul.f32 10.0, %v761_v9  ;;  %v5565_v18 = vmul.f32 10.0, %v648_v60 }
 0x2eb   : > { %3625 = vpow2.f32 %v1507_v40  ;;  %v7451_v40 = vld [vmem:[#allocation89_spill] sm:$0xff] }
 0x2ec   : > { %v5552_v28 = vpop.xlane.xlu2 %1604  ;;  %3627 = vpow2.f32 %v1509_v46 }
 0x2ed   : > { %7447 = vst [vmem:[#allocation70_spill] sm:$0xff] %v5552_v28 }
 0x2ef   : > { %v3622_v31 = vpop.eup %3621 }
 0x2f0   : > { %v3624_v41 = vpop.eup %3623 }
 0x2f1   : > { %1385 = vmax.xlane.f32.xlu2 %v1384_v3  ;;  %v1651_v43 = vadd.f32 %v3624_v41, %v3622_v31  ;;  %v3626_v51 = vpop.eup %3625  ;;  %v1511_v41 = vmul.f32 1.442695, %v5271_v10  ;;  %v1995_v10 = vmul.f32 1.442695, %v1889_v55 }
 0x2f2   : > { %v3628_v36 = vpop.eup %3627 }
 0x2f3   : > { %1652 = vadd.xlane.f32.xlu0 %v1651_v43  ;;  %v1624_v24 = vadd.f32 %v3628_v36, %v3626_v51  ;;  %v2060_v43 = vadd.f32 %v5255_v7, %v5249_v1  ;;  %v7452_v51 = vld [vmem:[#allocation106_spill] sm:$0xff]  ;;  %v1387_v1 = vmax.f32 %v5565_v18, %v5563_v42 }
 0x2f4   : > { %v1368_v37 = vpop.xlane.xlu2 %1367  ;;  %v7453_v36 = vld [vmem:[#allocation50_spill] sm:$0xff] }
 0x2f5   : > { %v1441_v39 = vsub.f32 %v7450_v59, %v1368_v37  ;;  %v1442_v46 = vsub.f32 %v7451_v40, %v1368_v37  ;;  %v1513_v37 = vmul.f32 1.442695, %v5285_v49  ;;  %v1849_v12 = vsub.f32 %v7453_v36, %v7452_v51  ;;  %v7454_v59 = vld [vmem:[#allocation51_spill] sm:$0xff] }
 0x2f6   : > { %v1997_v40 = vmul.f32 1.442695, %v1890_v25 }
 0x2f7   : > { %v1547_v2 = vmul.f32 1.442695, %v1441_v39  ;;  %v1549_v13 = vmul.f32 1.442695, %v1442_v46  ;;  %v2177_v3 = vsub.f32 %v1889_v55, %v1441_v39  ;;  %v2178_v31 = vsub.f32 %v1890_v25, %v1442_v46  ;;  %v7456_v55 = vld [vmem:[#allocation33_spill] sm:$0xff] }
 0x2f8   : > { %v1850_v39 = vsub.f32 %v7454_v59, %v7452_v51  ;;  %v1915_v7 = vmul.f32 1.442695, %v1849_v12 }
 0x2f9   : > { %3629 = vpow2.f32 %v1547_v2  ;;  %1625 = vadd.xlane.f32.xlu2 %v1624_v24 }
 0x2fa   : > { %3631 = vpow2.f32 %v1549_v13  ;;  %v1917_v49 = vmul.f32 1.442695, %v1850_v39 }
 0x2fb   : > { %2061 = vadd.xlane.f32.xlu0 %v2060_v43  ;;  %3633 = vpow2.f32 %v1511_v41  ;;  %v1819_v43 = vpop.xlane.xlu1 %1818 }
 0x2fc   : > { %v5572_v2 = vpop.xlane.xlu2 %1607  ;;  %3635 = vpow2.f32 %v1513_v37 }
 0x2fd   : > { %7455 = vst [vmem:[#allocation83_spill] sm:$0xff] %v5572_v2  ;;  %3637 = vpow2.f32 %v1995_v10  ;;  %v7464_v2 = vld [vmem:[#allocation75_spill] sm:$0xff] }
 0x2fe   : > { %3639 = vpow2.f32 %v1997_v40 }
 0x2ff   : > { %v3630_v60 = vpop.eup %3629  ;;  %3641 = vpow2.f32 %v1915_v7 }
 0x300   : > { %v3632_v46 = vpop.eup %3631  ;;  %3643 = vpow2.f32 %v1917_v49 }
 0x301   : > { %1388 = vmax.xlane.f32.xlu2 %v1387_v1  ;;  %v1654_v13 = vadd.f32 %v3632_v46, %v3630_v60  ;;  %v3634_v24 = vpop.eup %3633  ;;  %v7459_v1 = vld [vmem:[#allocation87_spill] sm:$0xff]  ;;  %v7460_v60 = vld [vmem:[#allocation88_spill] sm:$0xff]  ;;  %v7461_v46 = vld [vmem:[#allocation74_spill] sm:$0xff] }
 0x302   : > { %v3636_v9 = vpop.eup %3635  ;;  %v5588_v7 = vmul.f32 10.0, %v7459_v1  ;;  %v5591_v49 = vmul.f32 10.0, %v7460_v60  ;;  %v7466_v1 = vld [vmem:[#allocation84_spill] sm:$0xff] }
 0x303   : > { %2264 = vadd.xlane.f32.xlu0 %v7456_v55  ;;  %1655 = vadd.xlane.f32.xlu1 %v1654_v13  ;;  %v5577_v41 = vpop.eup %3637  ;;  %v1627_v51 = vadd.f32 %v3636_v9, %v3634_v24  ;;  %v1891_v13 = vsub.f32 %v7461_v46, %v1819_v43  ;;  %v2063_v24 = vadd.f32 %v5434_v57, %v5391_v0  ;;  %v7462_v55 = vld [vmem:[#allocation44_spill] sm:$0xff] }
 0x304   : > { %v1371_v25 = vpop.xlane.xlu2 %1370  ;;  %7457 = vst [vmem:[#allocation82_spill] sm:$0xff] %v5577_v41  ;;  %v5579_v37 = vpop.eup %3639  ;;  %v2241_v59 = vmul.f32 %v5577_v41, %v2177_v3  ;;  %v2137_v9 = vsub.f32 %v1849_v12, %v7462_v55  ;;  %v2138_v3 = vsub.f32 %v1850_v39, %v7463_v17  ;;  %v5603_v48 = vsub.f32 %v7467_v45, %v7466_v1  ;;  %v7470_v17 = vld [vmem:[#allocation41_spill] sm:$0xff] }
 0x305   : > { %7458 = vst [vmem:[#allocation71_spill] sm:$0xff] %v5579_v37  ;;  %v5581_v36 = vpop.eup %3641  ;;  %v2242_v10 = vmul.f32 %v5579_v37, %v2178_v31  ;;  %v1892_v31 = vsub.f32 %v7464_v2, %v1819_v43  ;;  %v1999_v0 = vmul.f32 1.442695, %v1891_v13  ;;  %v1829_v57 = vmax.f32 %v5588_v7, %v5591_v49  ;;  %v764_v2 = vpop.f32.mrf.mxu1  ;;  %v7473_v55 = vld [vmem:[#allocation97_spill] sm:$0xff] }
 0x306   : > { %v5585_v40 = vpop.eup %3643  ;;  %7468 = vst [vmem:[#allocation90_spill] sm:$0xff] %v5603_v48  ;;  %v2201_v60 = vmul.f32 %v5581_v36, %v2137_v9  ;;  %v5613_v12 = vsub.f32 %v7470_v17, %v7466_v1  ;;  %v651_v43 = vpop.f32.mrf.mxu0  ;;  %v1515_v45 = vmul.f32 1.442695, %v5603_v48  ;;  %v5620_v9 = vsub.f32 %v7473_v55, %v1371_v25  ;;  %v7486_v48 = vld [vmem:[#allocation81_spill] sm:$0xff] }
 0x307   : > { %v5599_v28 = vadd.f32 %v2242_v10, %v2241_v59  ;;  %v2001_v39 = vmul.f32 1.442695, %v1892_v31  ;;  %v7472_v59 = vld [vmem:[#allocation98_spill] sm:$0xff]  ;;  %3645 = vpow2.f32 %v1999_v0  ;;  %v7475_v0 = vld [vmem:[#allocation104_spill] sm:$0xff]  ;;  %v1523_v37 = vmul.f32 1.442695, %v7487_v11 }
 0x308   : > { %7471 = vst [vmem:[#allocation106_spill] sm:$0xff] %v5613_v12  ;;  %v5617_v10 = vsub.f32 %v7472_v59, %v1371_v25  ;;  %v1517_v1 = vmul.f32 1.442695, %v5613_v12  ;;  %v2180_v59 = vsub.f32 %v1892_v31, %v5620_v9  ;;  %v7490_v11 = vld [vmem:[#allocation110_spill] sm:$0xff] }
 0x309   : > { %1628 = vadd.xlane.f32.xlu2 %v1627_v51  ;;  %7465 = vst [vmem:[#allocation72_spill] sm:$0xff] %v5599_v28  ;;  %v2202_v51 = vmul.f32 %v5585_v40, %v2138_v3  ;;  %v5622_v3 = vmul.f32 10.0, %v764_v2  ;;  %3647 = vpow2.f32 %v2001_v39 }
 0x30a   : > { %3649 = vpow2.f32 %v1515_v45  ;;  %v2179_v17 = vsub.f32 %v1891_v13, %v5617_v10 }
 0x30b   : > { %2064 = vadd.xlane.f32.xlu1 %v2063_v24  ;;  %v2266_v24 = vadd.f32 %v2202_v51, %v2201_v60  ;;  %v7474_v60 = vld [vmem:[#allocation103_spill] sm:$0xff]  ;;  %3651 = vpow2.f32 %v1517_v1 }
 0x30c   : > { %v5607_v46 = vpop.xlane.xlu2 %1610 }
 0x30d   : > { %7469 = vst [vmem:[#allocation89_spill] sm:$0xff] %v5607_v46  ;;  %v5624_v46 = vmul.f32 10.0, %v651_v43  ;;  %v5633_v2 = vpop.eup %3645 }
 0x30e   : > { %7476 = vst [vmem:[#allocation50_spill] sm:$0xff] %v5633_v2  ;;  %v2243_v31 = vmul.f32 %v5633_v2, %v2179_v17  ;;  %v7485_v2 = vld [vmem:[#allocation48_spill] sm:$0xff] }
 0x30f   : > { %v5637_v13 = vpop.eup %3647 }
 0x310   : > { %7477 = vst [vmem:[#allocation51_spill] sm:$0xff] %v5637_v13 }
 0x311   : > { %1830 = vmax.xlane.f32.xlu2 %v1829_v57  ;;  %v1390_v57 = vmax.f32 %v5624_v46, %v5622_v3 }
 0x313   : > { %2267 = vadd.xlane.f32.xlu1 %v2266_v24  ;;  %v3650_v24 = vpop.eup %3649 }
 0x314   : > { %v1813_v28 = vpop.xlane.xlu2 %1812 }
 0x315   : > { %v1887_v51 = vsub.f32 %v7474_v60, %v1813_v28  ;;  %v1888_v25 = vsub.f32 %v7475_v0, %v1813_v28  ;;  %v2244_v28 = vmul.f32 %v5637_v13, %v2180_v59  ;;  %v3652_v60 = vpop.eup %3651  ;;  %v1825_v13 = vpop.xlane.xlu0 %1824 }
 0x317   : > { %v1991_v43 = vmul.f32 1.442695, %v1887_v51  ;;  %v1993_v55 = vmul.f32 1.442695, %v1888_v25  ;;  %v2175_v39 = vsub.f32 %v1887_v51, %v5531_v15  ;;  %v2176_v45 = vsub.f32 %v1888_v25, %v5534_v8  ;;  %v7480_v15 = vld [vmem:[#allocation107_spill] sm:$0xff]  ;;  %v767_v8 = vpop.f32.mrf.mxu1  ;;  %v654_v25 = vpop.f32.mrf.mxu0 }
 0x318   : > { %v5641_v0 = vadd.f32 %v2244_v28, %v2243_v31  ;;  %v5659_v28 = vmul.f32 10.0, %v654_v25 }
 0x319   : > { %3653 = vpow2.f32 %v1991_v43  ;;  %1391 = vmax.xlane.f32.xlu2 %v1390_v57  ;;  %v1630_v57 = vadd.f32 %v3652_v60, %v3650_v24 }
 0x31a   : > { %3655 = vpow2.f32 %v1993_v55  ;;  %7478 = vst [vmem:[#allocation33_spill] sm:$0xff] %v5641_v0 }
 0x31c   : > { %v1374_v1 = vpop.xlane.xlu2 %1373 }
 0x31d   : > { %v5644_v22 = vsub.f32 %v7479_v32, %v1374_v1  ;;  %v5647_v51 = vsub.f32 %v7480_v15, %v1374_v1  ;;  %v5657_v32 = vmul.f32 10.0, %v767_v8 }
 0x31f   : > { %v5649_v12 = vpop.eup %3653  ;;  %v1555_v17 = vmul.f32 1.442695, %v5644_v22  ;;  %v1557_v59 = vmul.f32 1.442695, %v5647_v51  ;;  %v1393_v15 = vmax.f32 %v5659_v28, %v5657_v32 }
 0x320   : > { %7481 = vst [vmem:[#allocation87_spill] sm:$0xff] %v5649_v12  ;;  %v5653_v43 = vpop.eup %3655  ;;  %v2239_v55 = vmul.f32 %v5649_v12, %v2175_v39  ;;  %v657_v12 = vpop.f32.mrf.mxu0 }
 0x321   : > { %7482 = vst [vmem:[#allocation88_spill] sm:$0xff] %v5653_v43  ;;  %v2240_v31 = vmul.f32 %v5653_v43, %v2176_v45  ;;  %3657 = vpow2.f32 %v1555_v17  ;;  %1631 = vadd.xlane.f32.xlu2 %v1630_v57  ;;  %v7483_v45 = vld [vmem:[#allocation80_spill] sm:$0xff]  ;;  %v7484_v57 = vld [vmem:[#allocation31_spill] sm:$0xff]  ;;  %v770_v43 = vpop.f32.mrf.mxu1 }
 0x322   : > { %3659 = vpow2.f32 %v1557_v59  ;;  %v1895_v17 = vsub.f32 %v7483_v45, %v1825_v13  ;;  %v1896_v59 = vsub.f32 %v7486_v48, %v1825_v13  ;;  %v5675_v45 = vmul.f32 10.0, %v770_v43  ;;  %v7491_v13 = vld [vmem:[#allocation55_spill] sm:$0xff] }
 0x324   : > { %v5661_v1 = vpop.xlane.xlu2 %1613  ;;  %7489 = vst [vmem:[#allocation44_spill] sm:$0xff] %v5675_v45  ;;  %v2009_v48 = vmul.f32 1.442695, %v1896_v59 }
 0x327   : > { %v3658_v0 = vpop.eup %3657 }
 0x328   : > { %v3660_v24 = vpop.eup %3659 }
 0x329   : > { %1394 = vmax.xlane.f32.xlu2 %v1393_v15  ;;  %v1660_v60 = vadd.f32 %v3660_v24, %v3658_v0  ;;  %v2042_v0 = vadd.f32 %v5585_v40, %v5581_v36  ;;  %v1525_v15 = vmul.f32 1.442695, %v5322_v47  ;;  %v5673_v24 = vadd.f32 %v2240_v31, %v2239_v55  ;;  %v7492_v47 = vld [vmem:[#allocation56_spill] sm:$0xff]  ;;  %v1828_v40 = vpop.xlane.xlu1 %1827 }
 0x32a   : > { %v1856_v36 = vsub.f32 %v7492_v47, %v7490_v11 }
 0x32b   : > { %1661 = vadd.xlane.f32.xlu0 %v1660_v60  ;;  %7488 = vst [vmem:[#allocation74_spill] sm:$0xff] %v5673_v24  ;;  %v2007_v60 = vmul.f32 1.442695, %v1895_v17 }
 0x32c   : > { %v1377_v39 = vpop.xlane.xlu2 %1376  ;;  %v1929_v43 = vmul.f32 1.442695, %v1856_v36 }
 0x32d   : > { %v1447_v8 = vsub.f32 %v7484_v57, %v1377_v39  ;;  %v1448_v25 = vsub.f32 %v7485_v2, %v1377_v39  ;;  %v5677_v2 = vmul.f32 10.0, %v657_v12  ;;  %v1855_v39 = vsub.f32 %v7491_v13, %v7490_v11 }
 0x32f   : > { %v1559_v41 = vmul.f32 1.442695, %v1447_v8  ;;  %v1561_v19 = vmul.f32 1.442695, %v1448_v25  ;;  %v2183_v57 = vsub.f32 %v1895_v17, %v1447_v8  ;;  %v7500_v17 = vld [vmem:[#allocation46_spill] sm:$0xff] }
 0x331   : > { %3661 = vpow2.f32 %v1559_v41  ;;  %2043 = vadd.xlane.f32.xlu2 %v2042_v0  ;;  %v1396_v41 = vmax.f32 %v5677_v2, %v5675_v45  ;;  %v2184_v0 = vsub.f32 %v1896_v59, %v1448_v25  ;;  %v7502_v59 = vld [vmem:[#allocation85_spill] sm:$0xff]  ;;  %v7505_v45 = vld [vmem:[#allocation30_spill] sm:$0xff] }
 0x332   : > { %3663 = vpow2.f32 %v1561_v19  ;;  %v1927_v19 = vmul.f32 1.442695, %v1855_v39 }
 0x333   : > { %3665 = vpow2.f32 %v1523_v37  ;;  %2270 = vadd.xlane.f32.xlu0 %v5396_v26  ;;  %v7493_v26 = vld [vmem:[#allocation39_spill] sm:$0xff] }
 0x334   : > { %3667 = vpow2.f32 %v1525_v15  ;;  %v5684_v55 = vpop.xlane.xlu2 %1616  ;;  %v7494_v15 = vld [vmem:[#allocation115_spill] sm:$0xff] }
 0x335   : > { %3669 = vpow2.f32 %v2007_v60  ;;  %v2075_v13 = vadd.f32 %v7494_v15, %v7493_v26  ;;  %v7496_v60 = vld [vmem:[#allocation100_spill] sm:$0xff]  ;;  %v7503_v26 = vld [vmem:[#allocation86_spill] sm:$0xff]  ;;  %v5706_v15 = vpop.xlane.xlu1 %1634 }
 0x336   : > { %3671 = vpow2.f32 %v2009_v48  ;;  %v5694_v63 = vsub.f32 %v7497_v56, %v7496_v60  ;;  %v5700_v8 = vsub.f32 %v7500_v17, %v7496_v60  ;;  %v1898_v56 = vsub.f32 %v7503_v26, %v1828_v40  ;;  %7504 = vst [vmem:[#allocation41_spill] sm:$0xff] %v5706_v15 }
 0x337   : > { %v3662_v12 = vpop.eup %3661  ;;  %3673 = vpow2.f32 %v1927_v19  ;;  %v5711_v60 = vmul.f32 10.0, %v7505_v45  ;;  %v7511_v45 = vld [vmem:[#allocation79_spill] sm:$0xff] }
 0x338   : > { %v3664_v37 = vpop.eup %3663  ;;  %7498 = vst [vmem:[#allocation75_spill] sm:$0xff] %v5694_v63  ;;  %3675 = vpow2.f32 %v1929_v43  ;;  %v1531_v19 = vmul.f32 1.442695, %v5694_v63  ;;  %v7507_v43 = vld [vmem:[#allocation49_spill] sm:$0xff]  ;;  %v2013_v15 = vmul.f32 1.442695, %v1898_v56 }
 0x339   : > { %v3666_v31 = vpop.eup %3665  ;;  %1397 = vmax.xlane.f32.xlu2 %v1396_v41  ;;  %v1663_v11 = vadd.f32 %v3664_v37, %v3662_v12  ;;  %7501 = vst [vmem:[#allocation40_spill] sm:$0xff] %v5700_v8  ;;  %v1897_v41 = vsub.f32 %v7502_v59, %v1828_v40  ;;  %v5714_v17 = vmul.f32 10.0, %v7507_v43  ;;  %v5716_v59 = vpop.xlane.xlu0 %1833  ;;  %v2072_v40 = vadd.f32 %v5454_v23, %v5445_v14  ;;  %v7513_v14 = vld [vmem:[#allocation114_spill] sm:$0xff] }
 0x33a   : > { %v3668_v47 = vpop.eup %3667  ;;  %7506 = vst [vmem:[#allocation98_spill] sm:$0xff] %v5711_v60  ;;  %3677 = vpow2.f32 %v1531_v19 }
 0x33b   : > { %v5690_v24 = vpop.eup %3669  ;;  %2076 = vadd.xlane.f32.xlu0 %v2075_v13  ;;  %1664 = vadd.xlane.f32.xlu1 %v1663_v11  ;;  %v1636_v13 = vadd.f32 %v3668_v47, %v3666_v31  ;;  %v1533_v11 = vmul.f32 1.442695, %v5700_v8  ;;  %7508 = vst [vmem:[#allocation97_spill] sm:$0xff] %v5714_v17  ;;  %v7510_v31 = vld [vmem:[#allocation78_spill] sm:$0xff]  ;;  %v2144_v8 = vsub.f32 %v1856_v36, %v7511_v45 }
 0x33c   : > { %7495 = vst [vmem:[#allocation45_spill] sm:$0xff] %v5690_v24  ;;  %v5696_v48 = vpop.eup %3671  ;;  %v1380_v25 = vpop.xlane.xlu2 %1379  ;;  %v2247_v12 = vmul.f32 %v5690_v24, %v2183_v57  ;;  %v2011_v24 = vmul.f32 1.442695, %v1897_v41  ;;  %v2143_v47 = vsub.f32 %v1855_v39, %v7510_v31  ;;  %v1838_v63 = vmax.f32 %v5711_v60, %v5714_v17 }
 0x33d   : > { %7499 = vst [vmem:[#allocation84_spill] sm:$0xff] %v5696_v48  ;;  %v2248_v37 = vmul.f32 %v5696_v48, %v2184_v0  ;;  %v3674_v57 = vpop.eup %3673  ;;  %3679 = vpow2.f32 %v1533_v11  ;;  %v5729_v23 = vsub.f32 %v7513_v14, %v1380_v25  ;;  %v5734_v39 = vpop.xlane.xlu1 %2040 }
 0x33e   : > { %v3676_v26 = vpop.eup %3675  ;;  %v2207_v43 = vmul.f32 %v3674_v57, %v2143_v47  ;;  %3681 = vpow2.f32 %v2011_v24  ;;  %vm2364_vm3 = vweird.f32 %v5734_v39 }
 0x33f   : > { %v5720_v0 = vadd.f32 %v2248_v37, %v2247_v12  ;;  %v7514_v12 = vld [vmem:[#allocation113_spill] sm:$0xff]  ;;  %3683 = vpow2.f32 %v2013_v15  ;;  %v2185_v19 = vsub.f32 %v1897_v41, %v5729_v23 }
 0x340   : > { %v5732_v37 = vsub.f32 %v7514_v12, %v1380_v25  ;;  %v3678_v36 = vpop.eup %3677 }
 0x341   : > { %1637 = vadd.xlane.f32.xlu2 %v1636_v13  ;;  %7509 = vst [vmem:[#allocation103_spill] sm:$0xff] %v5720_v0  ;;  %v2208_v13 = vmul.f32 %v3676_v26, %v2144_v8  ;;  %v5738_v47 = vpop.xlane.xlu0 %1836 }
 0x342   : > { %v2186_v11 = vsub.f32 %v1898_v56, %v5732_v37 }
 0x343   : > { %2073 = vadd.xlane.f32.xlu1 %v2072_v40  ;;  %v2275_v40 = vadd.f32 %v2208_v13, %v2207_v43  ;;  %v3680_v31 = vpop.eup %3679 }
 0x344   : > { %v5726_v48 = vpop.xlane.xlu2 %1619  ;;  %v5740_v24 = vpop.eup %3681  ;;  %v1642_v56 = vadd.f32 %v3680_v31, %v3678_v36  ;;  %v7520_v36 = vld [vmem:[#allocation109_spill] sm:$0xff] }
 0x345   : > { %7512 = vst [vmem:[#allocation104_spill] sm:$0xff] %v5726_v48  ;;  %v5742_v8 = vpop.eup %3683  ;;  %v2249_v15 = vmul.f32 %v5740_v24, %v2185_v19  ;;  %v5750_v0 = vpop.xlane.xlu1 %1640  ;;  %v7521_v31 = vld [vmem:[#allocation53_spill] sm:$0xff] }
 0x346   : > { %7515 = vst [vmem:[#allocation108_spill] sm:$0xff] %v5740_v24  ;;  %v2250_v45 = vmul.f32 %v5742_v8, %v2186_v11  ;;  %v1541_v11 = vmul.f32 1.442695, %v5526_v34 }
 0x347   : > { %7516 = vst [vmem:[#allocation107_spill] sm:$0xff] %v5742_v8 }
 0x348   : > { %7517 = vst [vmem:[#allocation80_spill] sm:$0xff] %v5750_v0  ;;  %v5753_v19 = vadd.f32 %v2250_v45, %v2249_v15 }
 0x349   : > { %1839 = vmax.xlane.f32.xlu2 %v1838_v63 }
 0x34a   : > { %7518 = vst [vmem:[#allocation31_spill] sm:$0xff] %v5753_v19  ;;  %v7527_v19 = vld [vmem:[#allocation92_spill] sm:$0xff] }
 0x34b   : > { %2276 = vadd.xlane.f32.xlu1 %v2275_v40  ;;  %v1539_v40 = vmul.f32 1.442695, %v5522_v44 }
 0x34c   : > { %v1822_v25 = vpop.xlane.xlu2 %1821 }
 0x34d   : > { %v1893_v14 = vsub.f32 %v5414_v33, %v1822_v25  ;;  %v1894_v41 = vsub.f32 %v5417_v20, %v1822_v25  ;;  %v5756_v33 = vpop.xlane.xlu0 %2049  ;;  %v5760_v25 = vsub.f32 %v7521_v31, %v7520_v36  ;;  %v7526_v31 = vld [vmem:[#allocation91_spill] sm:$0xff] }
 0x34e   : > { %7519 = vst [vmem:[#allocation48_spill] sm:$0xff] %v5756_v33 }
 0x34f   : > { %v2003_v63 = vmul.f32 1.442695, %v1893_v14  ;;  %v2005_v43 = vmul.f32 1.442695, %v1894_v41  ;;  %v2181_v13 = vsub.f32 %v1893_v14, %v5644_v22  ;;  %v2182_v12 = vsub.f32 %v1894_v41, %v5647_v51  ;;  %v7522_v51 = vld [vmem:[#allocation54_spill] sm:$0xff] }
 0x350   : > { %v5770_v15 = vsub.f32 %v7522_v51, %v7520_v36  ;;  %v2051_v41 = vadd.f32 %v3676_v26, %v3674_v57  ;;  %v5791_v51 = vsub.f32 %v7526_v31, %v5716_v59 }
 0x351   : > { %3685 = vpow2.f32 %v2003_v63  ;;  %1643 = vadd.xlane.f32.xlu2 %v1642_v56  ;;  %v1935_v63 = vmul.f32 1.442695, %v5760_v25 }
 0x352   : > { %3687 = vpow2.f32 %v2005_v43  ;;  %v1937_v43 = vmul.f32 1.442695, %v5770_v15 }
 0x353   : > { %3689 = vpow2.f32 %v1539_v40  ;;  %v5782_v40 = vpop.xlane.xlu1 %2046 }
 0x354   : > { %v1383_v20 = vpop.xlane.xlu2 %1382  ;;  %3691 = vpow2.f32 %v1541_v11  ;;  %vm2392_vm7 = vweird.f32 %v5782_v40 }
 0x355   : > { %v5763_v22 = vsub.f32 %v5484_v61, %v1383_v20  ;;  %v5766_v44 = vsub.f32 %v5478_v52, %v1383_v20  ;;  %v5787_v26 = vpop.xlane.xlu0 %1845 }
 0x357   : > { %v5772_v34 = vpop.eup %3685  ;;  %v1567_v45 = vmul.f32 1.442695, %v5763_v22  ;;  %v1569_v14 = vmul.f32 1.442695, %v5766_v44 }
 0x358   : > { %7523 = vst [vmem:[#allocation81_spill] sm:$0xff] %v5772_v34  ;;  %v5776_v56 = vpop.eup %3687  ;;  %v2245_v61 = vmul.f32 %v5772_v34, %v2181_v13 }
 0x359   : > { %7524 = vst [vmem:[#allocation43_spill] sm:$0xff] %v5776_v56  ;;  %v2246_v52 = vmul.f32 %v5776_v56, %v2182_v12  ;;  %3693 = vpow2.f32 %v1567_v45  ;;  %2052 = vadd.xlane.f32.xlu2 %v2051_v41  ;;  %v3690_v11 = vpop.eup %3689 }
 0x35a   : > { %3695 = vpow2.f32 %v1569_v14  ;;  %v3692_v20 = vpop.eup %3691 }
 0x35b   : > { %3697 = vrcp.f32 %v5734_v39  ;;  %v1648_v36 = vadd.f32 %v3692_v20, %v3690_v11  ;;  %v5804_v20 = vpop.xlane.xlu1 %1646  ;;  %v5813_v24 = vadd.f32 %v2246_v52, %v2245_v61 }
 0x35c   : > { %v5785_v57 = vpop.xlane.xlu2 %1622  ;;  %3699 = vpow2.f32 %v1935_v63  ;;  %v1902_v63 = vsub.f32 %v7527_v19, %v5716_v59  ;;  %7528 = vst [vmem:[#allocation55_spill] sm:$0xff] %v5804_v20  ;;  %v1551_v20 = vmul.f32 1.442695, %v5617_v10 }
 0x35d   : > { %7525 = vst [vmem:[#allocation110_spill] sm:$0xff] %v5785_v57  ;;  %3701 = vpow2.f32 %v1937_v43  ;;  %v2019_v43 = vmul.f32 1.442695, %v5791_v51 }
 0x35e   : > { %v2021_v19 = vmul.f32 1.442695, %v1902_v63  ;;  %7531 = vst [vmem:[#allocation39_spill] sm:$0xff] %v5813_v24  ;;  %v2370_v24 = vand.u32 2147483648, %v5734_v39 }
 0x35f   : > { %v3694_v13 = vpop.eup %3693 }
 0x360   : > { %v3696_v12 = vpop.eup %3695 }
 0x361   : > { %v5793_v45 = vpop.eup %3697  ;;  %1649 = vadd.xlane.f32.xlu2 %v1648_v36  ;;  %v1669_v14 = vadd.f32 %v3696_v12, %v3694_v13  ;;  %v7530_v12 = vld [vmem:[#allocation99_spill] sm:$0xff] }
 0x362   : > { %v5795_v41 = vpop.eup %3699  ;;  %v2360_v11 = vmul.f32 %v5793_v45, %v5734_v39  ;;  %3703 = vlog2.f32 %v7530_v12  ;;  %vm2365_vm2 = vweird.f32 %v5793_v45 }
 0x363   : > { %1670 = vadd.xlane.f32.xlu0 %v1669_v14  ;;  %v5797_v0 = vpop.eup %3701  ;;  %3705 = vpow2.f32 %v2019_v43  ;;  %v5824_v10 = vpop.xlane.xlu1 %1842  ;;  %vm2366_vm4 = vmor %vm2364_vm3, %vm2365_vm2 }
 0x364   : > { %v1386_v31 = vpop.xlane.xlu2 %1385  ;;  %v2057_v59 = vadd.f32 %v5797_v0, %v5795_v41  ;;  %v2361_v8 = vsub.f32 1.0, %v2360_v11  ;;  %v7534_v11 = vld [vmem:[#allocation52_spill] sm:$0xff] }
 0x365   : > { %v1453_v57 = vsub.f32 %v5546_v53, %v1386_v31  ;;  %v1454_v13 = vsub.f32 %v5544_v58, %v1386_v31  ;;  %v1553_v58 = vmul.f32 1.442695, %v5620_v9 }
 0x366   : > { %v5808_v36 = vpop.xlane.xlu0 %1652  ;;  %v2362_v43 = vmul.f32 %v5793_v45, %v2361_v8 }
 0x367   : > { %7529 = vst [vmem:[#allocation56_spill] sm:$0xff] %v5808_v36  ;;  %v1571_v14 = vmul.f32 1.442695, %v1453_v57  ;;  %v1573_v48 = vmul.f32 1.442695, %v1454_v13 }
 0x368   : > { %v3704_v31 = vpop.eup %3703 }
 0x369   : > { %3707 = vpow2.f32 %v1571_v14  ;;  %2058 = vadd.xlane.f32.xlu2 %v2057_v59  ;;  %v5822_v61 = vpop.eup %3705  ;;  %v7535_v14 = vld [vmem:[#allocation59_spill] sm:$0xff]  ;;  %v1688_v56 = vmul.f32 0.6931472, %v3704_v31 }
 0x36a   : > { %3709 = vpow2.f32 %v1573_v48  ;;  %v7533_v48 = vld [vmem:[#allocation32_spill] sm:$0xff]  ;;  %v2084_v59 = vadd.f32 %v7535_v14, %v5362_v5  ;;  %v7536_v5 = vld [vmem:[#allocation93_spill] sm:$0xff] }
 0x36b   : > { %2279 = vadd.xlane.f32.xlu0 %v5467_v27  ;;  %3711 = vlog2.f32 %v5734_v39  ;;  %v2066_v27 = vadd.f32 %v7534_v11, %v7533_v48  ;;  %v2368_v48 = vand.u32 2147483647, %v5734_v39  ;;  %v2371_v39 = vor.u32 1.1754944e-38, %v2370_v24 }
 0x36c   : > { %3713 = vpow2.f32 %v2021_v19  ;;  %v5819_v53 = vpop.xlane.xlu2 %1625  ;;  %v2363_v19 = vadd.f32 %v5793_v45, %v2362_v43  ;;  %v1903_v43 = vsub.f32 %v7536_v5, %v5738_v47 }
 0x36d   : > { %7532 = vst [vmem:[#allocation115_spill] sm:$0xff] %v5819_v53  ;;  %3715 = vpow2.f32 %v1551_v20  ;;  %v2189_v20 = vsub.f32 %v5791_v51, %v1453_v57  ;;  %v7537_v57 = vld [vmem:[#allocation94_spill] sm:$0xff]  ;;  %vm2369_vm5 = vcmp.eq.f32.partialorder %v2368_v48, 8.507059e+37  ;;  %v5847_v53 = vpop.xlane.xlu1 %2055 }
 0x36e   : > { %3717 = vpow2.f32 %v1553_v58  ;;  %v5826_v52 = vpop.xlane.xlu0 %2061  ;;  %v2190_v58 = vsub.f32 %v1902_v63, %v1454_v13  ;;  %v1904_v51 = vsub.f32 %v7537_v57, %v5738_v47  ;;  %v2367_v13 = vsel %vm2366_vm4, %v5793_v45, %v2363_v19 }
 0x36f   : > { %v3708_v9 = vpop.eup %3707  ;;  %v2023_v5 = vmul.f32 1.442695, %v1903_v43  ;;  %v2081_v45 = vadd.f32 %v5473_v62, %v5462_v6  ;;  %v2069_v6 = vadd.f32 %v5426_v4, %v5422_v16  ;;  %v1563_v62 = vmul.f32 1.442695, %v5729_v23  ;;  %v7539_v16 = vld [vmem:[#allocation38_spill] sm:$0xff]  ;;  %v7540_v4 = vld [vmem:[#allocation65_spill] sm:$0xff] }
 0x370   : > { %v3710_v12 = vpop.eup %3709  ;;  %v2025_v17 = vmul.f32 1.442695, %v1904_v51  ;;  %v5880_v23 = vsub.f32 %v7540_v4, %v7539_v16  ;;  %vm2434_vm1 = vweird.f32 %v5847_v53 }
 0x371   : > { %v3712_v8 = vpop.eup %3711  ;;  %2067 = vadd.xlane.f32.xlu2 %v2066_v27  ;;  %v1672_v36 = vadd.f32 %v3710_v12, %v3708_v9  ;;  %v2253_v27 = vmul.f32 %v5822_v61, %v2189_v20  ;;  %3719 = vpow2.f32 %v2023_v5 }
 0x372   : > { %v5836_v33 = vpop.eup %3713  ;;  %v2840_v9 = vmul.f32 0.6931472, %v3712_v8  ;;  %3721 = vpow2.f32 %v2025_v17 }
 0x373   : > { %v3716_v11 = vpop.eup %3715  ;;  %2085 = vadd.xlane.f32.xlu0 %v2084_v59  ;;  %1673 = vadd.xlane.f32.xlu1 %v1672_v36  ;;  %v2254_v12 = vmul.f32 %v5836_v33, %v2190_v58  ;;  %v2372_v59 = vsel %vm2369_vm5, %v2371_v39, %v2367_v13  ;;  %3723 = vlog2.f32 %v5661_v1  ;;  %v1963_v39 = vmul.f32 1.442695, %v5880_v23 }
 0x374   : > { %v3718_v14 = vpop.eup %3717  ;;  %v1389_v63 = vpop.xlane.xlu2 %1388  ;;  %v2903_v60 = vsub.f32 %v1688_v56, %v2840_v9  ;;  %3725 = vlog2.f32 %v5826_v52 }
 0x375   : > { %v1657_v36 = vadd.f32 %v3718_v14, %v3716_v11  ;;  %v5851_v19 = vadd.f32 %v2254_v12, %v2253_v27  ;;  %v5856_v24 = vsub.f32 %v5565_v18, %v1389_v63  ;;  %3727 = vpow2.f32 %v1563_v62 }
 0x376   : > { %v2265_v34 = vpop.xlane.xlu0 %2264  ;;  %v5869_v17 = vpop.xlane.xlu1 %1655 }
 0x377   : > { %v2807_v47 = vmul.f32 %v2372_v59, %v2265_v34  ;;  %v5862_v34 = vsub.f32 %v5563_v42, %v1389_v63  ;;  %7538 = vst [vmem:[#allocation100_spill] sm:$0xff] %v5869_v17  ;;  %v5871_v18 = vpop.eup %3719  ;;  %v1565_v42 = vmul.f32 1.442695, %v5732_v37  ;;  %v7541_v37 = vld [vmem:[#allocation66_spill] sm:$0xff] }
 0x378   : > { %v5874_v1 = vpop.eup %3721 }
 0x379   : > { %1658 = vadd.xlane.f32.xlu2 %v1657_v36  ;;  %v5853_v8 = vadd.f32 %v2903_v60, %v2807_v47  ;;  %v2191_v60 = vsub.f32 %v1903_v43, %v5856_v24  ;;  %v2192_v56 = vsub.f32 %v1904_v51, %v5862_v34  ;;  %v3724_v20 = vpop.eup %3723  ;;  %3729 = vpow2.f32 %v1565_v42 }
 0x37a   : > { %v3726_v58 = vpop.eup %3725  ;;  %v5892_v63 = vmul.f32 0.6931472, %v3724_v20  ;;  %3731 = vrcp.f32 %v5782_v40 }
 0x37b   : > { %2082 = vadd.xlane.f32.xlu1 %v2081_v45  ;;  %v2255_v48 = vmul.f32 %v5871_v18, %v2191_v60  ;;  %v2256_v43 = vmul.f32 %v5874_v1, %v2192_v56  ;;  %v5886_v51 = vmul.f32 0.6931472, %v3726_v58  ;;  %v3728_v5 = vpop.eup %3727 }
 0x37c   : > { %v5858_v31 = vpop.xlane.xlu2 %1628 }
 0x37e   : > { %v5904_v36 = vpop.xlane.xlu1 %2064 }
 0x381   : > { %2070 = vadd.xlane.f32.xlu2 %v2069_v6 }
 0x383   : > { %2285 = vadd.xlane.f32.xlu1 %v5471_v21  ;;  %v5890_v21 = vsub.f32 %v7541_v37, %v7539_v16 }
 0x384   : > { %v1831_v11 = vpop.xlane.xlu2 %1830 }
 0x385   : > { %v1899_v14 = vsub.f32 %v5588_v7, %v1831_v11  ;;  %v1900_v57 = vsub.f32 %v5591_v49, %v1831_v11  ;;  %v5901_v49 = vadd.f32 %v2256_v43, %v2255_v48  ;;  %v1965_v59 = vmul.f32 1.442695, %v5890_v21  ;;  %v7542_v48 = vld [vmem:[#allocation61_spill] sm:$0xff]  ;;  %v7543_v11 = vld [vmem:[#allocation68_spill] sm:$0xff] }
 0x386   : > { %v5932_v43 = vsub.f32 %v7543_v11, %v7542_v48 }
 0x387   : > { %v2015_v13 = vmul.f32 1.442695, %v1899_v14  ;;  %v2017_v9 = vmul.f32 1.442695, %v1900_v57  ;;  %v2187_v27 = vsub.f32 %v1899_v14, %v5763_v22  ;;  %v2188_v12 = vsub.f32 %v1900_v57, %v5766_v44  ;;  %v3730_v22 = vpop.eup %3729 }
 0x388   : > { %v1666_v60 = vadd.f32 %v3730_v22, %v3728_v5  ;;  %v7544_v5 = vld [vmem:[#allocation95_spill] sm:$0xff]  ;;  %v7545_v22 = vld [vmem:[#allocation96_spill] sm:$0xff] }
 0x389   : > { %3733 = vpow2.f32 %v2015_v13  ;;  %2273 = vadd.xlane.f32.xlu2 %v5482_v50  ;;  %v5914_v50 = vpop.eup %3731  ;;  %v1577_v13 = vmul.f32 1.442695, %v5862_v34  ;;  %v7549_v34 = vld [vmem:[#allocation76_spill] sm:$0xff] }
 0x38a   : > { %3735 = vpow2.f32 %v2017_v9  ;;  %v2388_v16 = vmul.f32 %v5914_v50, %v5782_v40  ;;  %vm2393_vm6 = vweird.f32 %v5914_v50 }
 0x38b   : > { %3737 = vlog2.f32 %v5684_v55  ;;  %vm5998_vm8 = vmor %vm2392_vm7, %vm2393_vm6 }
 0x38c   : > { %3739 = vpow2.f32 %v1963_v39  ;;  %v1392_v44 = vpop.xlane.xlu2 %1391 }
 0x38d   : > { %v5908_v47 = vsub.f32 %v5624_v46, %v1392_v44  ;;  %v5911_v45 = vsub.f32 %v5622_v3, %v1392_v44  ;;  %3741 = vlog2.f32 %v5904_v36  ;;  %v2148_v44 = vsub.f32 %v5770_v15, %v7545_v22 }
 0x38e   : > { %3743 = vpow2.f32 %v1965_v59  ;;  %v2147_v59 = vsub.f32 %v5760_v25, %v7544_v5  ;;  %v7547_v25 = vld [vmem:[#allocation42_spill] sm:$0xff] }
 0x38f   : > { %v5916_v6 = vpop.eup %3733  ;;  %v1579_v62 = vmul.f32 1.442695, %v5908_v47  ;;  %v1581_v55 = vmul.f32 1.442695, %v5911_v45 }
 0x390   : > { %v5920_v56 = vpop.eup %3735  ;;  %v2251_v46 = vmul.f32 %v5916_v6, %v2187_v27  ;;  %v2211_v11 = vmul.f32 %v5795_v41, %v2147_v59 }
 0x391   : > { %v3738_v42 = vpop.eup %3737  ;;  %v2252_v3 = vmul.f32 %v5920_v56, %v2188_v12  ;;  %3745 = vpow2.f32 %v1579_v62  ;;  %1667 = vadd.xlane.f32.xlu2 %v1666_v60  ;;  %v2389_v12 = vsub.f32 1.0, %v2388_v16  ;;  %v1975_v62 = vmul.f32 1.442695, %v5932_v43 }
 0x392   : > { %v5924_v20 = vpop.eup %3739  ;;  %3747 = vpow2.f32 %v1581_v55  ;;  %v5934_v14 = vmul.f32 0.6931472, %v3738_v42  ;;  %v7546_v55 = vld [vmem:[#allocation69_spill] sm:$0xff]  ;;  %v1575_v42 = vmul.f32 1.442695, %v5856_v24  ;;  %v2212_v16 = vmul.f32 %v5797_v0, %v2148_v44 }
 0x393   : > { %v3742_v58 = vpop.eup %3741  ;;  %v5951_v60 = vsub.f32 %v7546_v55, %v7542_v48  ;;  %3749 = vlog2.f32 %v5782_v40  ;;  %v2390_v15 = vmul.f32 %v5914_v50, %v2389_v12  ;;  %v7548_v48 = vld [vmem:[#allocation111_spill] sm:$0xff]  ;;  %v7550_v12 = vld [vmem:[#allocation112_spill] sm:$0xff]  ;;  %v7552_v55 = vld [vmem:[#allocation77_spill] sm:$0xff] }
 0x394   : > { %v5928_v4 = vpop.eup %3743  ;;  %v5936_v57 = vpop.xlane.xlu2 %1631  ;;  %v5938_v37 = vmul.f32 0.6931472, %v3742_v58  ;;  %3751 = vlog2.f32 %v7547_v25  ;;  %v5962_v5 = vsub.f32 %v7548_v48, %v5824_v10  ;;  %v2281_v22 = vadd.f32 %v2212_v16, %v2211_v11 }
 0x395   : > { %v2078_v27 = vadd.f32 %v5928_v4, %v5924_v20  ;;  %3753 = vpow2.f32 %v1975_v62  ;;  %v2391_v62 = vadd.f32 %v5914_v50, %v2390_v15  ;;  %v2396_v16 = vand.u32 2147483647, %v5782_v40 }
 0x396   : > { %3755 = vpow2.f32 %v1575_v42  ;;  %v5987_v42 = vsub.f32 %v7552_v55, %v5500_v38 }
 0x397   : > { %v3746_v9 = vpop.eup %3745  ;;  %3757 = vpow2.f32 %v1577_v13  ;;  %v2398_v13 = vand.u32 2147483648, %v5782_v40  ;;  %vm2397_vm9 = vcmp.eq.f32.partialorder %v2396_v16, 8.507059e+37 }
 0x398   : > { %v3748_v39 = vpop.eup %3747 }
 0x399   : > { %2079 = vadd.xlane.f32.xlu2 %v2078_v27  ;;  %v1678_v58 = vadd.f32 %v3748_v39, %v3746_v9  ;;  %v1977_v9 = vmul.f32 1.442695, %v5951_v60  ;;  %v5973_v27 = vsub.f32 %v7549_v34, %v5500_v38  ;;  %v5977_v39 = vsub.f32 %v7550_v12, %v5824_v10 }
 0x39a   : > { %v2031_v10 = vmul.f32 1.442695, %v5962_v5  ;;  %v1981_v34 = vmul.f32 1.442695, %v5987_v42 }
 0x39b   : > { %1679 = vadd.xlane.f32.xlu0 %v1678_v58  ;;  %v5991_v58 = vadd.f32 %v2252_v3, %v2251_v46  ;;  %v2033_v15 = vmul.f32 1.442695, %v5977_v39  ;;  %v1979_v46 = vmul.f32 1.442695, %v5973_v27  ;;  %v2395_v3 = vsel %vm5998_vm8, %v5914_v50, %v2391_v62 }
 0x39c   : > { %v1395_v24 = vpop.xlane.xlu2 %1394  ;;  %vm2462_vm8 = vweird.f32 %v5826_v52 }
 0x39d   : > { %v5966_v0 = vsub.f32 %v5659_v28, %v1395_v24  ;;  %v5969_v41 = vsub.f32 %v5657_v32, %v1395_v24  ;;  %v3750_v32 = vpop.eup %3749 }
 0x39e   : > { %v5979_v59 = vpop.xlane.xlu0 %1661  ;;  %v3752_v11 = vpop.eup %3751  ;;  %v2844_v40 = vmul.f32 0.6931472, %v3750_v32 }
 0x39f   : > { %7551 = vst [vmem:[#allocation47_spill] sm:$0xff] %v5979_v59  ;;  %v1583_v44 = vmul.f32 1.442695, %v5966_v0  ;;  %v1585_v28 = vmul.f32 1.442695, %v5969_v41  ;;  %v5995_v25 = vpop.eup %3753  ;;  %v2195_v32 = vsub.f32 %v5962_v5, %v5966_v0  ;;  %v6027_v5 = vsub.f32 %v5387_v54, %v5787_v26 }
 0x3a0   : > { %v3756_v48 = vpop.eup %3755 }
 0x3a1   : > { %3759 = vpow2.f32 %v1583_v44  ;;  %2282 = vadd.xlane.f32.xlu2 %v2281_v22  ;;  %v3758_v24 = vpop.eup %3757  ;;  %v2399_v22 = vor.u32 1.1754944e-38, %v2398_v13  ;;  %v1692_v44 = vmul.f32 0.6931472, %v3752_v11  ;;  %v2196_v11 = vsub.f32 %v5977_v39, %v5969_v41 }
 0x3a2   : > { %3761 = vpow2.f32 %v1585_v28  ;;  %v1675_v50 = vadd.f32 %v3758_v24, %v3756_v48 }
 0x3a3   : > { %3763 = vpow2.f32 %v1977_v9  ;;  %2288 = vadd.xlane.f32.xlu0 %v5496_v30  ;;  %v2400_v9 = vsel %vm2397_vm9, %v2399_v22, %v2395_v3  ;;  %v2905_v55 = vsub.f32 %v1692_v44, %v2844_v40  ;;  %v7555_v3 = vld [vmem:[#allocation101_spill] sm:$0xff] }
 0x3a4   : > { %3765 = vpow2.f32 %v2031_v10  ;;  %v6008_v12 = vpop.xlane.xlu2 %2043  ;;  %v2093_v10 = vadd.f32 %v5408_v29, %v5402_v35  ;;  %v7556_v29 = vld [vmem:[#allocation60_spill] sm:$0xff] }
 0x3a5   : > { %3767 = vrcp.f32 %v6008_v12  ;;  %v6033_v0 = vsub.f32 %v7556_v29, %v5787_v26  ;;  %v2035_v26 = vmul.f32 1.442695, %v6027_v5  ;;  %vm2378_vm11 = vweird.f32 %v6008_v12 }
 0x3a6   : > { %3769 = vpow2.f32 %v2033_v15  ;;  %v2271_v28 = vpop.xlane.xlu0 %2270 }
 0x3a7   : > { %v3760_v30 = vpop.eup %3759  ;;  %3771 = vpow2.f32 %v1979_v46  ;;  %v2809_v38 = vmul.f32 %v2400_v9, %v2271_v28  ;;  %v7557_v9 = vld [vmem:[#allocation44_spill] sm:$0xff] }
 0x3a8   : > { %v3762_v62 = vpop.eup %3761  ;;  %3773 = vpow2.f32 %v1981_v34 }
 0x3a9   : > { %v6015_v13 = vpop.eup %3763  ;;  %3775 = vlog2.f32 %v6008_v12  ;;  %v6020_v16 = vadd.f32 %v2905_v55, %v2809_v38  ;;  %1676 = vadd.xlane.f32.xlu2 %v1675_v50  ;;  %v1681_v15 = vadd.f32 %v3762_v62, %v3760_v30  ;;  %v2268_v55 = vpop.xlane.xlu1 %2267  ;;  %v2384_v38 = vand.u32 2147483648, %v6008_v12 }
 0x3aa   : > { %v6022_v48 = vpop.eup %3765  ;;  %3777 = vlog2.f32 %v7555_v3  ;;  %v2087_v50 = vadd.f32 %v6015_v13, %v5995_v25  ;;  %v2037_v62 = vmul.f32 1.442695, %v6033_v0 }
 0x3ab   : > { %v3768_v46 = vpop.eup %3767  ;;  %2094 = vadd.xlane.f32.xlu0 %v2093_v10  ;;  %1682 = vadd.xlane.f32.xlu1 %v1681_v15  ;;  %v2259_v24 = vmul.f32 %v6022_v48, %v2195_v32  ;;  %3779 = vpow2.f32 %v2035_v26 }
 0x3ac   : > { %v6029_v35 = vpop.eup %3769  ;;  %v2374_v41 = vmul.f32 %v3768_v46, %v6008_v12  ;;  %v1398_v39 = vpop.xlane.xlu2 %1397  ;;  %vm2379_vm10 = vweird.f32 %v3768_v46  ;;  %3781 = vpow2.f32 %v2037_v62  ;;  %v7559_v62 = vld [vmem:[#allocation67_spill] sm:$0xff] }
 0x3ad   : > { %v6036_v40 = vpop.eup %3771  ;;  %v2260_v34 = vmul.f32 %v6029_v35, %v2196_v11  ;;  %v1461_v54 = vsub.f32 %v5677_v2, %v1398_v39  ;;  %v1462_v28 = vsub.f32 %v7557_v9, %v1398_v39  ;;  %v2382_v2 = vand.u32 2147483647, %v6008_v12  ;;  %vm2380_vm12 = vmor %vm2378_vm11, %vm2379_vm10 }
 0x3ae   : > { %v6041_v22 = vpop.eup %3773  ;;  %v2375_v44 = vsub.f32 1.0, %v2374_v41  ;;  %v2385_v9 = vor.u32 1.1754944e-38, %v2384_v38 }
 0x3af   : > { %v3776_v30 = vpop.eup %3775  ;;  %v1587_v11 = vmul.f32 1.442695, %v1461_v54  ;;  %v2090_v15 = vadd.f32 %v6041_v22, %v6036_v40  ;;  %v6052_v3 = vadd.f32 %v2260_v34, %v2259_v24  ;;  %v1589_v39 = vmul.f32 1.442695, %v1462_v28 }
 0x3b0   : > { %v2376_v32 = vmul.f32 %v3768_v46, %v2375_v44  ;;  %v3778_v10 = vpop.eup %3777  ;;  %v2842_v41 = vmul.f32 0.6931472, %v3776_v30  ;;  %v7558_v44 = vld [vmem:[#allocation58_spill] sm:$0xff]  ;;  %vm2383_vm13 = vcmp.eq.f32.partialorder %v2382_v2, 8.507059e+37  ;;  %v2197_v38 = vsub.f32 %v6027_v5, %v1461_v54  ;;  %v7561_v2 = vld [vmem:[#allocation71_spill] sm:$0xff]  ;;  %v7562_v5 = vld [vmem:[#allocation57_spill] sm:$0xff] }
 0x3b1   : > { %2088 = vadd.xlane.f32.xlu2 %v2087_v50  ;;  %v1690_v7 = vmul.f32 0.6931472, %v3778_v10  ;;  %3783 = vpow2.f32 %v1587_v11  ;;  %v6058_v12 = vpop.xlane.xlu1 %1664  ;;  %v6060_v26 = vpop.eup %3779  ;;  %v2972_v54 = vsel %vm2968_vm14, %v6020_v16, 0.0  ;;  %v7565_v16 = vld [vmem:[#allocation98_spill] sm:$0xff] }
 0x3b2   : > { %v2377_v29 = vadd.f32 %v3768_v46, %v2376_v32  ;;  %3785 = vpow2.f32 %v1589_v39  ;;  %v2198_v32 = vsub.f32 %v6033_v0, %v1462_v28 }
 0x3b3   : > { %2297 = vadd.xlane.f32.xlu0 %v7558_v44  ;;  %2091 = vadd.xlane.f32.xlu1 %v2090_v15  ;;  %v2904_v34 = vsub.f32 %v1690_v7, %v2842_v41  ;;  %3787 = vlog2.f32 %v5858_v31  ;;  %v7563_v44 = vld [vmem:[#allocation87_spill] sm:$0xff] }
 0x3b4   : > { %v2381_v59 = vsel %vm2380_vm12, %v3768_v46, %v2377_v29  ;;  %v6056_v50 = vpop.xlane.xlu2 %1637  ;;  %v7560_v46 = vld [vmem:[#allocation82_spill] sm:$0xff] }
 0x3b5   : > { %v2386_v17 = vsel %vm2383_vm13, %v2385_v9, %v2381_v59  ;;  %v2102_v10 = vadd.f32 %v7561_v2, %v7560_v46  ;;  %v6067_v59 = vpop.eup %3781  ;;  %v7567_v2 = vld [vmem:[#allocation106_spill] sm:$0xff] }
 0x3b6   : > { %v2808_v24 = vmul.f32 %v2386_v17, %v2268_v55  ;;  %v2969_v17 = vsel %vm2968_vm14, %v5853_v8, 0.0  ;;  %v6072_v55 = vpop.xlane.xlu0 %2076  ;;  %v2261_v8 = vmul.f32 %v6060_v26, %v2197_v38  ;;  %v2262_v41 = vmul.f32 %v6067_v59, %v2198_v32  ;;  %v7566_v38 = vld [vmem:[#allocation90_spill] sm:$0xff] }
 0x3b7   : > { %v3784_v11 = vpop.eup %3783  ;;  %3789 = vlog2.f32 %v6072_v55  ;;  %v2161_v32 = vsub.f32 %v5880_v23, %v7566_v38  ;;  %v7573_v38 = vld [vmem:[#allocation45_spill] sm:$0xff] }
 0x3b8   : > { %v2936_v30 = vadd.f32 %v2904_v34, %v2808_v24  ;;  %v3786_v0 = vpop.eup %3785  ;;  %v7564_v24 = vld [vmem:[#allocation88_spill] sm:$0xff]  ;;  %v6087_v31 = vadd.f32 %v2262_v41, %v2261_v8  ;;  %3791 = vrcp.f32 %v5847_v53 }
 0x3b9   : > { %2291 = vadd.xlane.f32.xlu2 %v7559_v62  ;;  %v1684_v39 = vadd.f32 %v3786_v0, %v3784_v11  ;;  %v6083_v9 = vpop.xlane.xlu1 %2073  ;;  %v2099_v34 = vadd.f32 %v7564_v24, %v7563_v44  ;;  %v2225_v0 = vmul.f32 %v5924_v20, %v2161_v32  ;;  %v7572_v44 = vld [vmem:[#allocation37_spill] sm:$0xff]  ;;  %v7574_v20 = vld [vmem:[#allocation84_spill] sm:$0xff] }
 0x3ba   : > { %v2970_v7 = vsel %vm2968_vm14, %v2936_v30, 0.0  ;;  %v3788_v30 = vpop.eup %3787  ;;  %v2111_v32 = vadd.f32 %v7574_v20, %v7573_v38  ;;  %v7578_v38 = vld [vmem:[#allocation81_spill] sm:$0xff]  ;;  %v7579_v20 = vld [vmem:[#allocation43_spill] sm:$0xff] }
 0x3bb   : > { %v2971_v15 = vadd.f32 %v2970_v7, %v2969_v17  ;;  %2103 = vadd.xlane.f32.xlu0 %v2102_v10  ;;  %2294 = vadd.xlane.f32.xlu1 %v7562_v5  ;;  %v2162_v10 = vsub.f32 %v5890_v21, %v7567_v2  ;;  %v7568_v17 = vld [vmem:[#allocation115_spill] sm:$0xff]  ;;  %v7569_v7 = vld [vmem:[#allocation97_spill] sm:$0xff]  ;;  %v6103_v8 = vmul.f32 0.6931472, %v3788_v30 }
 0x3bc   : > { %v1840_v28 = vpop.xlane.xlu2 %1839  ;;  %3793 = vlog2.f32 %v7568_v17  ;;  %v7575_v2 = vld [vmem:[#allocation75_spill] sm:$0xff] }
 0x3bd   : > { %v6078_v29 = vadd.f32 %v2972_v54, %v2971_v15  ;;  %v1905_v62 = vsub.f32 %v7565_v16, %v1840_v28  ;;  %v3790_v46 = vpop.eup %3789  ;;  %v1906_v11 = vsub.f32 %v7569_v7, %v1840_v28  ;;  %v7570_v15 = vld [vmem:[#allocation34_spill] sm:$0xff]  ;;  %3795 = vlog2.f32 %v6083_v9 }
 0x3be   : > { %v2226_v54 = vmul.f32 %v5928_v4, %v2162_v10  ;;  %v6105_v23 = vmul.f32 0.6931472, %v3790_v46  ;;  %v2169_v46 = vsub.f32 %v5973_v27, %v7575_v2  ;;  %v7576_v10 = vld [vmem:[#allocation40_spill] sm:$0xff] }
 0x3bf   : > { %v2027_v21 = vmul.f32 1.442695, %v1905_v62  ;;  %v2029_v41 = vmul.f32 1.442695, %v1906_v11  ;;  %v2170_v17 = vsub.f32 %v5987_v42, %v7576_v10 }
 0x3c0   : > { %v2302_v4 = vadd.f32 %v2226_v54, %v2225_v0  ;;  %v2233_v27 = vmul.f32 %v6036_v40, %v2169_v46  ;;  %v2193_v40 = vsub.f32 %v1905_v62, %v5908_v47  ;;  %v7581_v46 = vld [vmem:[#allocation105_spill] sm:$0xff] }
 0x3c1   : > { %1685 = vadd.xlane.f32.xlu2 %v1684_v39  ;;  %v7571_v39 = vld [vmem:[#allocation36_spill] sm:$0xff]  ;;  %3797 = vpow2.f32 %v2027_v21  ;;  %v2234_v0 = vmul.f32 %v6041_v22, %v2170_v17  ;;  %v2194_v22 = vsub.f32 %v1906_v11, %v5911_v45  ;;  %v2168_v10 = vsub.f32 %v5951_v60, %v7581_v46  ;;  %v7582_v17 = vld [vmem:[#allocation70_spill] sm:$0xff] }
 0x3c2   : > { %v2096_v28 = vadd.f32 %v7572_v44, %v7571_v39  ;;  %3799 = vpow2.f32 %v2029_v41 }
 0x3c3   : > { %2306 = vadd.xlane.f32.xlu0 %v7570_v15  ;;  %2100 = vadd.xlane.f32.xlu1 %v2099_v34  ;;  %v6111_v34 = vpop.eup %3791  ;;  %v2232_v60 = vmul.f32 %v6015_v13, %v2168_v10  ;;  %v2120_v10 = vadd.f32 %v5836_v33, %v5822_v61 }
 0x3c4   : > { %v6098_v5 = vpop.xlane.xlu2 %1643  ;;  %v3794_v16 = vpop.eup %3793  ;;  %v2430_v7 = vmul.f32 %v6111_v34, %v5847_v53  ;;  %vm2435_vm15 = vweird.f32 %v6111_v34 }
 0x3c5   : > { %v3796_v30 = vpop.eup %3795  ;;  %v6123_v39 = vmul.f32 0.6931472, %v3794_v16  ;;  %v2314_v16 = vadd.f32 %v2234_v0, %v2233_v27  ;;  %v7583_v27 = vld [vmem:[#allocation83_spill] sm:$0xff]  ;;  %vm6176_vm3 = vmor %vm2434_vm1, %vm2435_vm15 }
 0x3c6   : > { %v6121_v15 = vmul.f32 0.6931472, %v3796_v30  ;;  %v2431_v54 = vsub.f32 1.0, %v2430_v7  ;;  %v7580_v30 = vld [vmem:[#allocation102_spill] sm:$0xff] }
 0x3c7   : > { %v6132_v21 = vpop.eup %3797  ;;  %v2167_v2 = vsub.f32 %v5932_v43, %v7580_v30 }
 0x3c8   : > { %v2914_v42 = vsub.f32 %v6123_v39, %v6121_v15  ;;  %v6134_v41 = vpop.eup %3799  ;;  %v2432_v7 = vmul.f32 %v6111_v34, %v2431_v54  ;;  %v2257_v47 = vmul.f32 %v6132_v21, %v2193_v40 }
 0x3c9   : > { %2097 = vadd.xlane.f32.xlu2 %v2096_v28  ;;  %v7577_v28 = vld [vmem:[#allocation63_spill] sm:$0xff]  ;;  %v2258_v45 = vmul.f32 %v6134_v41, %v2194_v22  ;;  %v2231_v43 = vmul.f32 %v5995_v25, %v2167_v2  ;;  %v2440_v22 = vand.u32 2147483648, %v5847_v53 }
 0x3ca   : > { %v2433_v40 = vadd.f32 %v6111_v34, %v2432_v7  ;;  %v2438_v7 = vand.u32 2147483647, %v5847_v53 }
 0x3cb   : > { %2112 = vadd.xlane.f32.xlu0 %v2111_v32  ;;  %2303 = vadd.xlane.f32.xlu1 %v2302_v4  ;;  %v2108_v32 = vadd.f32 %v7579_v20, %v7578_v38  ;;  %v7585_v38 = vld [vmem:[#allocation51_spill] sm:$0xff]  ;;  %v6166_v13 = vadd.f32 %v2258_v45, %v2257_v47 }
 0x3cc   : > { %v6125_v44 = vpop.xlane.xlu2 %2052  ;;  %vm2439_vm6 = vcmp.eq.f32.partialorder %v2438_v7, 8.507059e+37 }
 0x3cd   : > { %3801 = vrcp.f32 %v6125_v44  ;;  %v2424_v25 = vand.u32 2147483647, %v6125_v44  ;;  %vm2420_vm2 = vweird.f32 %v6125_v44 }
 0x3ce   : > { %3803 = vlog2.f32 %v6125_v44 }
 0x3cf   : > { %3805 = vlog2.f32 %v5847_v53  ;;  %v2437_v53 = vsel %vm6176_vm3, %v6111_v34, %v2433_v40  ;;  %vm2425_vm5 = vcmp.eq.f32.partialorder %v2424_v25, 8.507059e+37 }
 0x3d0   : > { %3807 = vlog2.f32 %v7582_v17  ;;  %v2311_v17 = vadd.f32 %v2232_v60, %v2231_v43  ;;  %v2441_v60 = vor.u32 1.1754944e-38, %v2440_v22  ;;  %v2117_v22 = vadd.f32 %v5920_v56, %v5916_v6  ;;  %v7593_v56 = vld [vmem:[#allocation73_spill] sm:$0xff] }
 0x3d1   : > { %2300 = vadd.xlane.f32.xlu2 %v7577_v28  ;;  %3809 = vlog2.f32 %v7583_v27  ;;  %v2129_v6 = vadd.f32 %v6029_v35, %v6022_v48  ;;  %v7595_v48 = vld [vmem:[#allocation35_spill] sm:$0xff]  ;;  %v2126_v35 = vadd.f32 %v6134_v41, %v6132_v21 }
 0x3d2   : > { %3811 = vrcp.f32 %v5826_v52 }
 0x3d3   : > { %v3802_v4 = vpop.eup %3801  ;;  %2315 = vadd.xlane.f32.xlu0 %v2314_v16  ;;  %2109 = vadd.xlane.f32.xlu1 %v2108_v32  ;;  %v7584_v16 = vld [vmem:[#allocation50_spill] sm:$0xff]  ;;  %v2426_v32 = vand.u32 2147483648, %v6125_v44 }
 0x3d4   : > { %v2416_v62 = vmul.f32 %v3802_v4, %v6125_v44  ;;  %v6153_v11 = vpop.xlane.xlu2 %1649  ;;  %v2105_v54 = vadd.f32 %v7585_v38, %v7584_v16  ;;  %v3804_v20 = vpop.eup %3803  ;;  %vm2421_vm0 = vweird.f32 %v3802_v4 }
 0x3d5   : > { %v3806_v30 = vpop.eup %3805  ;;  %vm2422_vm4 = vmor %vm2420_vm2, %vm2421_vm0  ;;  %v2427_v33 = vor.u32 1.1754944e-38, %v2426_v32  ;;  %v2277_v38 = vpop.xlane.xlu1 %2276 }
 0x3d6   : > { %v2417_v0 = vsub.f32 1.0, %v2416_v62  ;;  %v6157_v28 = vpop.xlane.xlu0 %1670  ;;  %v3808_v2 = vpop.eup %3807  ;;  %v2850_v61 = vmul.f32 0.6931472, %v3806_v30  ;;  %v7589_v30 = vld [vmem:[#allocation64_spill] sm:$0xff] }
 0x3d7   : > { %v3810_v27 = vpop.eup %3809  ;;  %v1696_v45 = vmul.f32 0.6931472, %v3808_v2  ;;  %v7590_v2 = vld [vmem:[#allocation74_spill] sm:$0xff] }
 0x3d8   : > { %v2418_v46 = vmul.f32 %v3802_v4, %v2417_v0  ;;  %v2848_v0 = vmul.f32 0.6931472, %v3804_v20  ;;  %v1698_v16 = vmul.f32 0.6931472, %v3810_v27  ;;  %v2442_v20 = vsel %vm2439_vm6, %v2441_v60, %v2437_v53  ;;  %v3812_v34 = vpop.eup %3811 }
 0x3d9   : > { %2106 = vadd.xlane.f32.xlu2 %v2105_v54  ;;  %v2458_v25 = vmul.f32 %v3812_v34, %v5826_v52  ;;  %vm2463_vm7 = vweird.f32 %v3812_v34 }
 0x3da   : > { %v2419_v62 = vadd.f32 %v3802_v4, %v2418_v46  ;;  %v2908_v24 = vsub.f32 %v1698_v16, %v2850_v61  ;;  %vm2464_vm9 = vmor %vm2462_vm8, %vm2463_vm7 }
 0x3db   : > { %2121 = vadd.xlane.f32.xlu0 %v2120_v10  ;;  %2312 = vadd.xlane.f32.xlu1 %v2311_v17  ;;  %v2907_v10 = vsub.f32 %v1696_v45, %v2848_v0  ;;  %v7588_v17 = vld [vmem:[#allocation48_spill] sm:$0xff]  ;;  %v2459_v53 = vsub.f32 1.0, %v2458_v25 }
 0x3dc   : > { %v2423_v43 = vsel %vm2422_vm4, %v3802_v4, %v2419_v62  ;;  %v6184_v44 = vpop.xlane.xlu2 %2058  ;;  %3813 = vrcp.f32 %v7588_v17  ;;  %v7591_v0 = vld [vmem:[#allocation108_spill] sm:$0xff]  ;;  %vm2406_vm12 = vweird.f32 %v7588_v17  ;;  %vm2476_vm4 = vweird.f32 %v5904_v36 }
 0x3dd   : > { %v2428_v54 = vsel %vm2425_vm5, %v2427_v33, %v2423_v43  ;;  %v7592_v33 = vld [vmem:[#allocation107_spill] sm:$0xff]  ;;  %v2460_v45 = vmul.f32 %v3812_v34, %v2459_v53  ;;  %3815 = vlog2.f32 %v7588_v17  ;;  %v2123_v53 = vadd.f32 %v5874_v1, %v5871_v18 }
 0x3de   : > { %v2280_v46 = vpop.xlane.xlu0 %2279  ;;  %v2811_v32 = vmul.f32 %v2428_v54, %v2277_v38  ;;  %v2468_v54 = vand.u32 2147483648, %v5826_v52  ;;  %vm2448_vm1 = vweird.f32 %v6184_v44 }
 0x3df   : > { %v2812_v47 = vmul.f32 %v2442_v20, %v2280_v46  ;;  %v2461_v38 = vadd.f32 %v3812_v34, %v2460_v45  ;;  %v7594_v46 = vld [vmem:[#allocation104_spill] sm:$0xff]  ;;  %v7600_v45 = vsub.f32 %v5892_v63, %v5886_v51  ;;  %v7602_v51 = vld [vmem:[#allocation33_spill] sm:$0xff] }
 0x3e0   : > { %v6187_v40 = vadd.f32 %v2907_v10, %v2811_v32  ;;  %3817 = vlog2.f32 %v7594_v46  ;;  %v2466_v32 = vand.u32 2147483647, %v5826_v52  ;;  %v7596_v10 = vld [vmem:[#allocation62_spill] sm:$0xff] }
 0x3e1   : > { %v6189_v4 = vadd.f32 %v2908_v24, %v2812_v47  ;;  %2309 = vadd.xlane.f32.xlu2 %v7589_v30  ;;  %v2114_v24 = vadd.f32 %v7592_v33, %v7591_v0  ;;  %3819 = vlog2.f32 %v7596_v10  ;;  %v7597_v30 = vld [vmem:[#allocation39_spill] sm:$0xff]  ;;  %v2412_v33 = vand.u32 2147483648, %v7588_v17 }
 0x3e2   : > { %v6198_v27 = vpop.eup %3813  ;;  %vm2467_vm10 = vcmp.eq.f32.partialorder %v2466_v32, 8.507059e+37 }
 0x3e3   : > { %2324 = vadd.xlane.f32.xlu0 %v7590_v2  ;;  %2118 = vadd.xlane.f32.xlu1 %v2117_v22  ;;  %v2402_v61 = vmul.f32 %v6198_v27, %v7588_v17  ;;  %v2465_v22 = vsel %vm2464_vm9, %v3812_v34, %v2461_v38  ;;  %v2469_v2 = vor.u32 1.1754944e-38, %v2468_v54  ;;  %vm2407_vm11 = vweird.f32 %v6198_v27  ;;  %v3816_v52 = vpop.eup %3815 }
 0x3e4   : > { %v6196_v7 = vpop.xlane.xlu2 %2067  ;;  %vm6239_vm13 = vmor %vm2406_vm12, %vm2407_vm11  ;;  %v2846_v1 = vmul.f32 0.6931472, %v3816_v52  ;;  %v2413_v38 = vor.u32 1.1754944e-38, %v2412_v33  ;;  %vm2518_vm9 = vweird.f32 %v6083_v9 }
 0x3e5   : > { %v2403_v60 = vsub.f32 1.0, %v2402_v61  ;;  %3821 = vlog2.f32 %v6196_v7  ;;  %v2470_v41 = vsel %vm2467_vm10, %v2469_v2, %v2465_v22 }
 0x3e6   : > { %v6200_v62 = vpop.xlane.xlu1 %1673  ;;  %v6223_v47 = vpop.xlane.xlu0 %2085  ;;  %3823 = vlog2.f32 %v6056_v50  ;;  %v2410_v50 = vand.u32 2147483647, %v7588_v17 }
 0x3e7   : > { %v2404_v20 = vmul.f32 %v6198_v27, %v2403_v60  ;;  %3825 = vlog2.f32 %v6223_v47  ;;  %v3818_v34 = vpop.eup %3817 }
 0x3e8   : > { %v3820_v61 = vpop.eup %3819  ;;  %3827 = vrcp.f32 %v6184_v44  ;;  %v6251_v17 = vmul.f32 0.6931472, %v3818_v34  ;;  %vm2411_vm15 = vcmp.eq.f32.partialorder %v2410_v50, 8.507059e+37 }
 0x3e9   : > { %2115 = vadd.xlane.f32.xlu2 %v2114_v24  ;;  %v2405_v21 = vadd.f32 %v6198_v27, %v2404_v20  ;;  %3829 = vrcp.f32 %v5904_v36  ;;  %v1694_v46 = vmul.f32 0.6931472, %v3820_v61 }
 0x3eb   : > { %2130 = vadd.xlane.f32.xlu0 %v2129_v6  ;;  %2321 = vadd.xlane.f32.xlu1 %v7593_v56  ;;  %v3822_v56 = vpop.eup %3821  ;;  %v2409_v18 = vsel %vm6239_vm13, %v6198_v27, %v2405_v21  ;;  %v2906_v10 = vsub.f32 %v1694_v46, %v2846_v1  ;;  %vm2490_vm13 = vweird.f32 %v6196_v7 }
 0x3ec   : > { %v6209_v43 = vpop.xlane.xlu2 %1658  ;;  %v6254_v54 = vmul.f32 0.6931472, %v3822_v56  ;;  %v3824_v20 = vpop.eup %3823  ;;  %v2976_v56 = vsel %vm2968_vm14, %v6187_v40, 0.0  ;;  %v2132_v40 = vadd.f32 %v6067_v59, %v6060_v26 }
 0x3ed   : > { %v3826_v63 = vpop.eup %3825  ;;  %v6264_v2 = vmul.f32 0.6931472, %v3824_v20 }
 0x3ee   : > { %v6211_v16 = vpop.xlane.xlu1 %2082  ;;  %v2912_v32 = vsub.f32 %v6251_v17, %v6254_v54  ;;  %v6262_v22 = vpop.eup %3827  ;;  %v6266_v21 = vmul.f32 0.6931472, %v3826_v63 }
 0x3ef   : > { %v6268_v52 = vpop.eup %3829  ;;  %v2444_v33 = vmul.f32 %v6262_v22, %v6184_v44  ;;  %vm2449_vm0 = vweird.f32 %v6262_v22  ;;  %v2564_v17 = vand.u32 2147483647, %v6211_v16 }
 0x3f0   : > { %v2472_v6 = vmul.f32 %v6268_v52, %v5904_v36  ;;  %vm2477_vm2 = vweird.f32 %v6268_v52  ;;  %vm6325_vm3 = vmor %vm2448_vm1, %vm2449_vm0 }
 0x3f1   : > { %2318 = vadd.xlane.f32.xlu2 %v7595_v48  ;;  %v7601_v48 = vld [vmem:[#allocation41_spill] sm:$0xff]  ;;  %v2445_v46 = vsub.f32 1.0, %v2444_v33  ;;  %vm2478_vm5 = vmor %vm2476_vm4, %vm2477_vm2 }
 0x3f2   : > { %3831 = vlog2.f32 %v7601_v48 }
 0x3f3   : > { %2333 = vadd.xlane.f32.xlu0 %v7597_v30  ;;  %2127 = vadd.xlane.f32.xlu1 %v2126_v35  ;;  %v2414_v35 = vsel %vm2411_vm15, %v2413_v38, %v2409_v18  ;;  %3833 = vlog2.f32 %v6211_v16 }
 0x3f4   : > { %v6227_v25 = vpop.xlane.xlu2 %2070 }
 0x3f5   : > { %vm2504_vm1 = vweird.f32 %v6227_v25 }
 0x3f6   : > { %v2286_v0 = vpop.xlane.xlu1 %2285 }
 0x3f7   : > { %v2814_v24 = vmul.f32 %v2470_v41, %v2286_v0  ;;  %v2918_v41 = vsub.f32 %v6264_v2, %v6266_v21 }
 0x3f8   : > { %v3832_v0 = vpop.eup %3831 }
 0x3f9   : > { %v6246_v60 = vadd.f32 %v7600_v45, %v2814_v24  ;;  %2124 = vadd.xlane.f32.xlu2 %v2123_v53  ;;  %v7603_v24 = vld [vmem:[#allocation72_spill] sm:$0xff]  ;;  %v7604_v53 = vld [vmem:[#allocation110_spill] sm:$0xff]  ;;  %v3834_v61 = vpop.eup %3833  ;;  %v7605_v45 = vld [vmem:[#allocation103_spill] sm:$0xff]  ;;  %v6284_v18 = vmul.f32 0.6931472, %v3832_v0 }
 0x3fa   : > { %3835 = vlog2.f32 %v7604_v53  ;;  %v6289_v20 = vmul.f32 0.6931472, %v3834_v61 }
 0x3fb   : > { %2342 = vadd.xlane.f32.xlu0 %v5991_v58  ;;  %2330 = vadd.xlane.f32.xlu1 %v7602_v51  ;;  %3837 = vlog2.f32 %v6227_v25  ;;  %v2473_v51 = vsub.f32 1.0, %v2472_v6 }
 0x3fc   : > { %v2274_v27 = vpop.xlane.xlu2 %2273  ;;  %3839 = vlog2.f32 %v6184_v44 }
 0x3fd   : > { %v2810_v30 = vmul.f32 %v2414_v35, %v2274_v27  ;;  %v7606_v35 = vld [vmem:[#allocation89_spill] sm:$0xff]  ;;  %v2446_v27 = vmul.f32 %v6262_v22, %v2445_v46 }
 0x3fe   : > { %3841 = vlog2.f32 %v7606_v35 }
 0x3ff   : > { %v2938_v58 = vadd.f32 %v2906_v10, %v2810_v30  ;;  %3843 = vrcp.f32 %v6083_v9  ;;  %v2474_v30 = vmul.f32 %v6268_v52, %v2473_v51  ;;  %v2447_v59 = vadd.f32 %v6262_v22, %v2446_v27 }
 0x400   : > { %v3836_v63 = vpop.eup %3835  ;;  %3845 = vrcp.f32 %v6196_v7 }
 0x401   : > { %v2974_v34 = vsel %vm2968_vm14, %v2938_v58, 0.0  ;;  %2327 = vadd.xlane.f32.xlu2 %v7603_v24  ;;  %v3838_v10 = vpop.eup %3837  ;;  %v2454_v24 = vand.u32 2147483648, %v6184_v44  ;;  %3847 = vrcp.f32 %v6227_v25 }
 0x402   : > { %v2975_v50 = vadd.f32 %v2974_v34, %v6078_v29  ;;  %v2978_v29 = vsel %vm2968_vm14, %v6189_v4, 0.0  ;;  %v6303_v4 = vmul.f32 0.6931472, %v3836_v63  ;;  %v6307_v58 = vmul.f32 0.6931472, %v3838_v10  ;;  %v3840_v33 = vpop.eup %3839 }
 0x403   : > { %2351 = vadd.xlane.f32.xlu0 %v6166_v13  ;;  %2336 = vadd.xlane.f32.xlu1 %v7605_v45  ;;  %v2917_v13 = vsub.f32 %v6284_v18, %v6289_v20  ;;  %v7609_v45 = vld [vmem:[#allocation31_spill] sm:$0xff]  ;;  %v2455_v46 = vor.u32 1.1754944e-38, %v2454_v24  ;;  %3849 = vlog2.f32 %v5936_v57  ;;  %v2982_v57 = vsel %vm2968_vm14, %v6246_v60, 0.0 }
 0x404   : > { %v2977_v1 = vadd.f32 %v2976_v56, %v2975_v50  ;;  %v6286_v38 = vpop.xlane.xlu2 %1667  ;;  %v2913_v0 = vsub.f32 %v6303_v4, %v6307_v58  ;;  %v3842_v53 = vpop.eup %3841  ;;  %v2475_v50 = vadd.f32 %v6268_v52, %v2474_v30  ;;  %v2482_v56 = vand.u32 2147483648, %v5904_v36 }
 0x405   : > { %v6322_v61 = vpop.eup %3843  ;;  %3851 = vrcp.f32 %v6211_v16  ;;  %v2538_v18 = vand.u32 2147483648, %v6072_v55 }
 0x406   : > { %v6293_v48 = vadd.f32 %v2978_v29, %v2977_v1  ;;  %v2852_v1 = vmul.f32 0.6931472, %v3840_v33  ;;  %v2480_v29 = vand.u32 2147483647, %v5904_v36  ;;  %v2514_v51 = vmul.f32 %v6322_v61, %v6083_v9  ;;  %v6341_v36 = vpop.eup %3845 }
 0x407   : > { %v2479_v63 = vsel %vm2478_vm5, %v6268_v52, %v2475_v50  ;;  %v2483_v27 = vor.u32 1.1754944e-38, %v2482_v56  ;;  %vm2519_vm8 = vweird.f32 %v6322_v61  ;;  %vm2491_vm12 = vweird.f32 %v6341_v36 }
 0x408   : > { %vm2481_vm7 = vcmp.eq.f32.partialorder %v2480_v29, 8.507059e+37  ;;  %v2515_v6 = vsub.f32 1.0, %v2514_v51  ;;  %vm2520_vm10 = vmor %vm2518_vm9, %vm2519_vm8  ;;  %vm2565_vm8 = vcmp.eq.f32.partialorder %v2564_v17, 8.507059e+37 }
 0x409   : > { %2133 = vadd.xlane.f32.xlu2 %v2132_v40  ;;  %v1700_v40 = vmul.f32 0.6931472, %v3842_v53  ;;  %vm6410_vm0 = vmor %vm2490_vm13, %vm2491_vm12  ;;  %vm2532_vm13 = vweird.f32 %v6072_v55 }
 0x40b   : > { %2345 = vadd.xlane.f32.xlu1 %v5851_v19  ;;  %v2452_v19 = vand.u32 2147483647, %v6184_v44  ;;  %v2451_v44 = vsel %vm6325_vm3, %v6262_v22, %v2447_v59  ;;  %v2909_v10 = vsub.f32 %v1700_v40, %v2852_v1  ;;  %v2484_v59 = vsel %vm2481_vm7, %v2483_v27, %v2479_v63  ;;  %v7611_v63 = vld [vmem:[#allocation80_spill] sm:$0xff]  ;;  %v7612_v27 = vld [vmem:[#allocation55_spill] sm:$0xff] }
 0x40c   : > { %v6309_v26 = vpop.xlane.xlu2 %2079  ;;  %v2516_v1 = vmul.f32 %v6322_v61, %v2515_v6 }
 0x40d   : > { %vm2453_vm6 = vcmp.eq.f32.partialorder %v2452_v19, 8.507059e+37  ;;  %v7610_v19 = vsub.f32 %v5934_v14, %v5938_v37  ;;  %3853 = vlog2.f32 %v6309_v26 }
 0x40e   : > { %v6315_v34 = vpop.xlane.xlu0 %1679  ;;  %v2456_v35 = vsel %vm2453_vm6, %v2455_v46, %v2451_v44  ;;  %3855 = vlog2.f32 %v7611_v63  ;;  %v2517_v60 = vadd.f32 %v6322_v61, %v2516_v1  ;;  %vm2560_vm6 = vweird.f32 %v6211_v16 }
 0x40f   : > { %3857 = vlog2.f32 %v7612_v27 }
 0x411   : > { %2339 = vadd.xlane.f32.xlu2 %v7609_v45  ;;  %v6343_v45 = vpop.eup %3847 }
 0x412   : > { %v2500_v44 = vmul.f32 %v6343_v45, %v6227_v25  ;;  %v3850_v51 = vpop.eup %3849  ;;  %vm2505_vm15 = vweird.f32 %v6343_v45 }
 0x413   : > { %2354 = vadd.xlane.f32.xlu1 %v6052_v3  ;;  %v2486_v3 = vmul.f32 %v6341_v36, %v6196_v7  ;;  %vm6426_vm2 = vmor %vm2504_vm1, %vm2505_vm15 }
 0x414   : > { %v2283_v22 = vpop.xlane.xlu2 %2282 }
 0x415   : > { %v2813_v30 = vmul.f32 %v2456_v35, %v2283_v22  ;;  %v2501_v35 = vsub.f32 1.0, %v2500_v44  ;;  %v6373_v22 = vpop.eup %3851 }
 0x416   : > { %v2289_v33 = vpop.xlane.xlu0 %2288  ;;  %v2556_v6 = vmul.f32 %v6373_v22, %v6211_v16  ;;  %vm2561_vm5 = vweird.f32 %v6373_v22 }
 0x417   : > { %v2941_v24 = vadd.f32 %v2909_v10, %v2813_v30  ;;  %v2815_v53 = vmul.f32 %v2484_v59, %v2289_v33  ;;  %v2524_v10 = vand.u32 2147483648, %v6083_v9  ;;  %v7613_v30 = vld [vmem:[#allocation56_spill] sm:$0xff]  ;;  %v2522_v59 = vand.u32 2147483647, %v6083_v9  ;;  %vm6465_vm7 = vmor %vm2560_vm6, %vm2561_vm5 }
 0x418   : > { %3859 = vlog2.f32 %v7613_v30 }
 0x419   : > { %v2980_v52 = vsel %vm2968_vm14, %v2941_v24, 0.0  ;;  %v2943_v50 = vadd.f32 %v7610_v19, %v2815_v53  ;;  %2348 = vadd.xlane.f32.xlu2 %v5901_v49  ;;  %v2487_v49 = vsub.f32 1.0, %v2486_v3  ;;  %v3854_v24 = vpop.eup %3853  ;;  %v6382_v53 = vmul.f32 0.6931472, %v3850_v51 }
 0x41a   : > { %v2981_v56 = vadd.f32 %v2980_v52, %v6293_v48  ;;  %3861 = vrcp.f32 %v6309_v26  ;;  %v2521_v3 = vsel %vm2520_vm10, %v6322_v61, %v2517_v60  ;;  %v2502_v52 = vmul.f32 %v6343_v45, %v2501_v35 }
 0x41b   : > { %v2984_v14 = vsel %vm2968_vm14, %v2943_v50, 0.0  ;;  %v2488_v33 = vmul.f32 %v6341_v36, %v2487_v49  ;;  %3863 = vrcp.f32 %v6072_v55  ;;  %v2525_v19 = vor.u32 1.1754944e-38, %v2524_v10  ;;  %v3856_v50 = vpop.eup %3855  ;;  %v7614_v10 = vld [vmem:[#allocation100_spill] sm:$0xff] }
 0x41c   : > { %v2983_v29 = vadd.f32 %v2982_v57, %v2981_v56  ;;  %v6360_v46 = vpop.xlane.xlu2 %1676  ;;  %vm2523_vm11 = vcmp.eq.f32.partialorder %v2522_v59, 8.507059e+37  ;;  %v3858_v57 = vpop.eup %3857  ;;  %v2496_v49 = vand.u32 2147483648, %v6196_v7  ;;  %v2503_v60 = vadd.f32 %v6343_v45, %v2502_v52 }
 0x41d   : > { %v2489_v56 = vadd.f32 %v6341_v36, %v2488_v33  ;;  %v2526_v61 = vsel %vm2523_vm11, %v2525_v19, %v2521_v3  ;;  %v2557_v35 = vsub.f32 1.0, %v2556_v6  ;;  %3865 = vlog2.f32 %v7614_v10 }
 0x41e   : > { %v6364_v37 = vadd.f32 %v2984_v14, %v2983_v29  ;;  %v6366_v40 = vpop.xlane.xlu0 %2094  ;;  %v6368_v48 = vpop.xlane.xlu1 %1682  ;;  %v2494_v14 = vand.u32 2147483647, %v6196_v7  ;;  %v2510_v59 = vand.u32 2147483648, %v6227_v25  ;;  %v2497_v3 = vor.u32 1.1754944e-38, %v2496_v49 }
 0x41f   : > { %v3860_v51 = vpop.eup %3859  ;;  %v2493_v33 = vsel %vm6410_vm0, %v6341_v36, %v2489_v56  ;;  %v2507_v39 = vsel %vm6426_vm2, %v6343_v45, %v2503_v60  ;;  %vm2546_vm10 = vweird.f32 %v6309_v26 }
 0x420   : > { %v6405_v27 = vpop.eup %3861  ;;  %vm2495_vm3 = vcmp.eq.f32.partialorder %v2494_v14, 8.507059e+37  ;;  %v2511_v56 = vor.u32 1.1754944e-38, %v2510_v59 }
 0x421   : > { %2357 = vadd.xlane.f32.xlu2 %v6087_v31  ;;  %v6389_v31 = vmul.f32 0.6931472, %v3854_v24  ;;  %v2508_v24 = vand.u32 2147483647, %v6227_v25  ;;  %v6423_v6 = vpop.eup %3863  ;;  %v2542_v15 = vmul.f32 %v6405_v27, %v6309_v26  ;;  %v7619_v25 = vld [vmem:[#allocation47_spill] sm:$0xff]  ;;  %v2498_v36 = vsel %vm2495_vm3, %v2497_v3, %v2493_v33 }
 0x422   : > { %v2528_v49 = vmul.f32 %v6423_v6, %v6072_v55  ;;  %v6449_v33 = vmul.f32 0.6931472, %v3856_v50  ;;  %vm2547_vm9 = vweird.f32 %v6405_v27  ;;  %vm2533_vm12 = vweird.f32 %v6423_v6 }
 0x423   : > { %v2916_v44 = vsub.f32 %v6382_v53, %v6389_v31  ;;  %vm2509_vm4 = vcmp.eq.f32.partialorder %v2508_v24, 8.507059e+37  ;;  %v2543_v30 = vsub.f32 1.0, %v2542_v15  ;;  %vm6512_vm11 = vmor %vm2546_vm10, %vm2547_vm9  ;;  %vm2574_vm10 = vweird.f32 %v6223_v47 }
 0x424   : > { %v6392_v9 = vpop.xlane.xlu2 %2088  ;;  %v2512_v10 = vsel %vm2509_vm4, %v2511_v56, %v2507_v39  ;;  %v2529_v15 = vsub.f32 1.0, %v2528_v49  ;;  %vm6534_vm0 = vmor %vm2532_vm13, %vm2533_vm12 }
 0x426   : > { %v2298_v1 = vpop.xlane.xlu0 %2297  ;;  %v6398_v29 = vpop.xlane.xlu1 %2091 }
 0x427   : > { %v2818_v63 = vmul.f32 %v2526_v61, %v2298_v1  ;;  %3867 = vrcp.f32 %v6398_v29  ;;  %v3866_v1 = vpop.eup %3865  ;;  %vm2602_vm3 = vweird.f32 %v6398_v29 }
 0x428   : > { %3869 = vlog2.f32 %v7619_v25 }
 0x429   : > { %v2946_v7 = vadd.f32 %v2914_v42, %v2818_v63  ;;  %v2558_v42 = vmul.f32 %v6373_v22, %v2557_v35  ;;  %3871 = vlog2.f32 %v6058_v12  ;;  %v2566_v12 = vand.u32 2147483648, %v6211_v16 }
 0x42a   : > { %3873 = vrcp.f32 %v6223_v47 }
 0x42b   : > { %v2559_v35 = vadd.f32 %v6373_v22, %v2558_v42  ;;  %3875 = vrcp.f32 %v6392_v9  ;;  %v2567_v25 = vor.u32 1.1754944e-38, %v2566_v12  ;;  %v2990_v56 = vsel %vm2968_vm14, %v2946_v7, 0.0 }
 0x42c   : > { %v2292_v19 = vpop.xlane.xlu2 %2291  ;;  %3877 = vlog2.f32 %v6392_v9 }
 0x42d   : > { %v2816_v61 = vmul.f32 %v2498_v36, %v2292_v19  ;;  %v6447_v59 = vpop.eup %3867  ;;  %v2563_v16 = vsel %vm6465_vm7, %v6373_v22, %v2559_v35  ;;  %v6481_v36 = vmul.f32 0.6931472, %v3866_v1  ;;  %3879 = vlog2.f32 %v6098_v5 }
 0x42e   : > { %v6440_v14 = vpop.xlane.xlu0 %2103  ;;  %v2295_v63 = vpop.xlane.xlu1 %2294  ;;  %v2598_v4 = vmul.f32 %v6447_v59, %v6398_v29  ;;  %v2568_v22 = vsel %vm2565_vm8, %v2567_v25, %v2563_v16  ;;  %3881 = vlog2.f32 %v6153_v11  ;;  %v2552_v5 = vand.u32 2147483648, %v6309_v26 }
 0x42f   : > { %v2944_v45 = vadd.f32 %v2912_v32, %v2816_v61  ;;  %v2817_v60 = vmul.f32 %v2512_v10, %v2295_v63  ;;  %v3870_v54 = vpop.eup %3869  ;;  %v6459_v32 = vmul.f32 0.6931472, %v3858_v57  ;;  %v2530_v63 = vmul.f32 %v6423_v6, %v2529_v15 }
 0x430   : > { %v3872_v57 = vpop.eup %3871  ;;  %v6483_v19 = vmul.f32 0.6931472, %v3870_v54  ;;  %3883 = vlog2.f32 %v6398_v29  ;;  %v2553_v15 = vor.u32 1.1754944e-38, %v2552_v5  ;;  %vm2603_vm2 = vweird.f32 %v6447_v59 }
 0x431   : > { %v2986_v24 = vsel %vm2968_vm14, %v2944_v45, 0.0  ;;  %v2945_v3 = vadd.f32 %v2913_v0, %v2817_v60  ;;  %v2544_v0 = vmul.f32 %v6405_v27, %v2543_v30  ;;  %v6486_v61 = vpop.eup %3873  ;;  %v2599_v60 = vsub.f32 1.0, %v2598_v4  ;;  %vm6567_vm4 = vmor %vm2602_vm3, %vm2603_vm2 }
 0x432   : > { %v2987_v50 = vadd.f32 %v2986_v24, %v6364_v37  ;;  %v6476_v37 = vmul.f32 0.6931472, %v3860_v51  ;;  %v6496_v7 = vpop.eup %3875  ;;  %v6498_v35 = vmul.f32 0.6931472, %v3872_v57  ;;  %v2536_v30 = vand.u32 2147483647, %v6072_v55 }
 0x433   : > { %v2988_v58 = vsel %vm2968_vm14, %v2945_v3, 0.0  ;;  %v2545_v1 = vadd.f32 %v6405_v27, %v2544_v0  ;;  %v2550_v24 = vand.u32 2147483647, %v6309_v26  ;;  %v3878_v3 = vpop.eup %3877  ;;  %3885 = vlog2.f32 %v6157_v28 }
 0x434   : > { %v2989_v39 = vadd.f32 %v2988_v58, %v2987_v50  ;;  %v6478_v42 = vpop.xlane.xlu2 %1685  ;;  %v2531_v17 = vadd.f32 %v6423_v6, %v2530_v63  ;;  %v2584_v20 = vmul.f32 %v6496_v7, %v6392_v9  ;;  %v2600_v26 = vmul.f32 %v6447_v59, %v2599_v60  ;;  %v3880_v54 = vpop.eup %3879 }
 0x435   : > { %v6525_v28 = vmul.f32 0.6931472, %v3878_v3  ;;  %v2570_v50 = vmul.f32 %v6486_v61, %v6223_v47  ;;  %3887 = vlog2.f32 %v6200_v62  ;;  %vm2551_vm15 = vcmp.eq.f32.partialorder %v2550_v24, 8.507059e+37  ;;  %v3882_v62 = vpop.eup %3881 }
 0x436   : > { %v2307_v51 = vpop.xlane.xlu0 %2306  ;;  %v6489_v49 = vpop.xlane.xlu1 %2100  ;;  %v6492_v10 = vadd.f32 %v2990_v56, %v2989_v39  ;;  %3889 = vrcp.f32 %v6366_v40  ;;  %vm6538_vm1 = vcmp.eq.f32.partialorder %v2536_v30, 8.507059e+37  ;;  %v2535_v57 = vsel %vm6534_vm0, %v6423_v6, %v2531_v17 }
 0x437   : > { %v2821_v45 = vmul.f32 %v2568_v22, %v2307_v51  ;;  %v2919_v58 = vsub.f32 %v6449_v33, %v6525_v28  ;;  %3891 = vlog2.f32 %v6209_v43  ;;  %v2539_v39 = vor.u32 1.1754944e-38, %v2538_v18  ;;  %v3884_v25 = vpop.eup %3883 }
 0x438   : > { %v2601_v22 = vadd.f32 %v6447_v59, %v2600_v26  ;;  %v2585_v51 = vsub.f32 1.0, %v2584_v20  ;;  %3893 = vlog2.f32 %v6286_v38  ;;  %v2608_v43 = vand.u32 2147483648, %v6398_v29 }
 0x439   : > { %v6506_v12 = vadd.f32 %v2917_v13, %v2821_v45  ;;  %v2549_v13 = vsel %vm6512_vm11, %v6405_v27, %v2545_v1  ;;  %v3886_v63 = vpop.eup %3885  ;;  %v1722_v45 = vmul.f32 0.6931472, %v3880_v54  ;;  %v2571_v1 = vsub.f32 1.0, %v2570_v50 }
 0x43a   : > { %v2554_v0 = vsel %vm2551_vm15, %v2553_v15, %v2549_v13  ;;  %3895 = vlog2.f32 %v6315_v34  ;;  %v2606_v60 = vand.u32 2147483647, %v6398_v29  ;;  %v6560_v30 = vmul.f32 0.6931472, %v3882_v62 }
 0x43b   : > { %v3888_v5 = vpop.eup %3887  ;;  %3897 = vrcp.f32 %v6489_v49  ;;  %v2540_v38 = vsel %vm6538_vm1, %v2539_v39, %v2535_v57  ;;  %v2874_v53 = vmul.f32 0.6931472, %v3884_v25  ;;  %v2605_v29 = vsel %vm6567_vm4, %v6447_v59, %v2601_v22 }
 0x43c   : > { %v6530_v52 = vpop.xlane.xlu2 %2097  ;;  %v6571_v31 = vpop.eup %3889  ;;  %3899 = vlog2.f32 %v6360_v46  ;;  %v2586_v24 = vmul.f32 %v6496_v7, %v2585_v51  ;;  %v2609_v17 = vor.u32 1.1754944e-38, %v2608_v43  ;;  %v2572_v18 = vmul.f32 %v6486_v61, %v2571_v1 }
 0x43d   : > { %v3892_v3 = vpop.eup %3891  ;;  %3901 = vlog2.f32 %v6368_v48  ;;  %v2578_v20 = vand.u32 2147483647, %v6223_v47  ;;  %vm2607_vm5 = vcmp.eq.f32.partialorder %v2606_v60, 8.507059e+37  ;;  %v2580_v26 = vand.u32 2147483648, %v6223_v47 }
 0x43e   : > { %v6545_v16 = vpop.xlane.xlu0 %2112  ;;  %v2304_v55 = vpop.xlane.xlu1 %2303  ;;  %3903 = vlog2.f32 %v6366_v40  ;;  %v2612_v59 = vmul.f32 %v6571_v31, %v6366_v40  ;;  %v2610_v48 = vsel %vm2607_vm5, %v2609_v17, %v2605_v29  ;;  %v2920_v50 = vsub.f32 %v1722_v45, %v2874_v53 }
 0x43f   : > { %v2820_v56 = vmul.f32 %v2554_v0, %v2304_v55  ;;  %v3894_v46 = vpop.eup %3893  ;;  %3905 = vrcp.f32 %v6530_v52  ;;  %v7630_v4 = vsub.f32 %v6103_v8, %v6105_v23  ;;  %v2587_v0 = vadd.f32 %v6496_v7, %v2586_v24 }
 0x440   : > { %v3896_v27 = vpop.eup %3895  ;;  %vm2589_vm6 = vweird.f32 %v6496_v7  ;;  %3907 = vrcp.f32 %v6440_v14  ;;  %v2594_v39 = vand.u32 2147483648, %v6392_v9  ;;  %v2573_v25 = vadd.f32 %v6486_v61, %v2572_v18 }
 0x441   : > { %v2948_v6 = vadd.f32 %v2916_v44, %v2820_v56  ;;  %v6573_v44 = vmul.f32 0.6931472, %v3886_v63  ;;  %v6595_v57 = vpop.eup %3897  ;;  %vm2575_vm7 = vweird.f32 %v6486_v61  ;;  %vm2588_vm8 = vweird.f32 %v6392_v9 }
 0x442   : > { %v3900_v56 = vpop.eup %3899  ;;  %v2592_v23 = vand.u32 2147483647, %v6392_v9  ;;  %v6606_v63 = vmul.f32 0.6931472, %v3888_v5  ;;  %v6608_v45 = vmul.f32 0.6931472, %v3892_v3  ;;  %vm6613_vm9 = vmor %vm2588_vm8, %vm2589_vm6  ;;  %v2640_v34 = vmul.f32 %v6595_v57, %v6489_v49 }
 0x443   : > { %v3902_v51 = vpop.eup %3901  ;;  %v2613_v60 = vsub.f32 1.0, %v2612_v59  ;;  %v2994_v9 = vsel %vm2968_vm14, %v2948_v6, 0.0  ;;  %v2591_v5 = vsel %vm6613_vm9, %v6496_v7, %v2587_v0  ;;  %v2595_v24 = vor.u32 1.1754944e-38, %v2594_v39  ;;  %vm6630_vm11 = vmor %vm2574_vm10, %vm2575_vm7 }
 0x444   : > { %v2301_v11 = vpop.xlane.xlu2 %2300  ;;  %vm6634_vm12 = vcmp.eq.f32.partialorder %v2578_v20, 8.507059e+37  ;;  %v6638_v7 = vmul.f32 0.6931472, %v3894_v46  ;;  %v2996_v47 = vsel %vm2968_vm14, %v6506_v12, 0.0  ;;  %vm2593_vm13 = vcmp.eq.f32.partialorder %v2592_v23, 8.507059e+37 }
 0x445   : > { %v2819_v13 = vmul.f32 %v2540_v38, %v2301_v11  ;;  %v3904_v38 = vpop.eup %3903  ;;  %v2581_v11 = vor.u32 1.1754944e-38, %v2580_v26  ;;  %v2577_v17 = vsel %vm6630_vm11, %v6486_v61, %v2573_v25  ;;  %v2596_v59 = vsel %vm2593_vm13, %v2595_v24, %v2591_v5 }
 0x446   : > { %v2316_v54 = vpop.xlane.xlu0 %2315  ;;  %v6588_v15 = vpop.xlane.xlu1 %2109  ;;  %v2614_v20 = vmul.f32 %v6571_v31, %v2613_v60  ;;  %v2641_v46 = vsub.f32 1.0, %v2640_v34  ;;  %v6661_v0 = vmul.f32 0.6931472, %v3902_v51  ;;  %vm2616_vm15 = vweird.f32 %v6366_v40 }
 0x447   : > { %v2947_v62 = vadd.f32 %v7630_v4, %v2819_v13  ;;  %v2824_v55 = vmul.f32 %v2610_v48, %v2316_v54  ;;  %v2620_v48 = vand.u32 2147483647, %v6366_v40  ;;  %3909 = vrcp.f32 %v6588_v15 }
 0x448   : > { %v2582_v61 = vsel %vm6634_vm12, %v2581_v11, %v2577_v17  ;;  %v2622_v4 = vand.u32 2147483648, %v6366_v40  ;;  %3911 = vlog2.f32 %v6478_v42  ;;  %vm2617_vm0 = vweird.f32 %v6571_v31 }
 0x449   : > { %v2992_v22 = vsel %vm2968_vm14, %v2947_v62, 0.0  ;;  %v6602_v8 = vadd.f32 %v2920_v50, %v2824_v55  ;;  %v6652_v50 = vmul.f32 0.6931472, %v3896_v27  ;;  %v6657_v62 = vmul.f32 0.6931472, %v3904_v38  ;;  %vm6692_vm2 = vmor %vm2616_vm15, %vm2617_vm0 }
 0x44a   : > { %v2993_v43 = vadd.f32 %v2992_v22, %v6492_v10  ;;  %v6624_v10 = vpop.eup %3905  ;;  %v6659_v55 = vmul.f32 0.6931472, %v3900_v56  ;;  %v2615_v27 = vadd.f32 %v6571_v31, %v2614_v20  ;;  %v2642_v56 = vmul.f32 %v6595_v57, %v2641_v46 }
 0x44b   : > { %v6645_v18 = vpop.eup %3907  ;;  %v2626_v26 = vmul.f32 %v6624_v10, %v6530_v52  ;;  %3913 = vlog2.f32 %v6489_v49  ;;  %vm6674_vm1 = vcmp.eq.f32.partialorder %v2620_v48, 8.507059e+37  ;;  %v2648_v28 = vand.u32 2147483647, %v6489_v49 }
 0x44c   : > { %v2995_v53 = vadd.f32 %v2994_v9, %v2993_v43  ;;  %v6626_v29 = vpop.xlane.xlu2 %2106  ;;  %v2654_v39 = vmul.f32 %v6645_v18, %v6440_v14  ;;  %3915 = vrcp.f32 %v6545_v16  ;;  %v2921_v51 = vsub.f32 %v6459_v32, %v6657_v62 }
 0x44d   : > { %v2627_v22 = vsub.f32 1.0, %v2626_v26  ;;  %v6684_v43 = vpop.eup %3909  ;;  %3917 = vrcp.f32 %v6626_v29  ;;  %v2650_v60 = vand.u32 2147483648, %v6489_v49  ;;  %vm2645_vm3 = vweird.f32 %v6595_v57 }
 0x44e   : > { %v2313_v13 = vpop.xlane.xlu1 %2312  ;;  %v2997_v54 = vadd.f32 %v2996_v47, %v2995_v53  ;;  %v6679_v33 = vpop.xlane.xlu0 %2121  ;;  %v2655_v34 = vsub.f32 1.0, %v2654_v39  ;;  %v2619_v5 = vsel %vm6692_vm2, %v6571_v31, %v2615_v27  ;;  %v2662_v53 = vand.u32 2147483647, %v6440_v14 }
 0x44f   : > { %v2823_v12 = vmul.f32 %v2596_v59, %v2313_v13  ;;  %v2664_v24 = vand.u32 2147483648, %v6440_v14  ;;  %v2643_v3 = vadd.f32 %v6595_v57, %v2642_v56  ;;  %v2628_v6 = vmul.f32 %v6624_v10, %v2627_v22  ;;  %v6710_v11 = vpop.eup %3911 }
 0x450   : > { %3919 = vlog2.f32 %v6530_v52  ;;  %v2682_v47 = vmul.f32 %v6684_v43, %v6588_v15  ;;  %vm2644_vm4 = vweird.f32 %v6489_v49  ;;  %vm6715_vm5 = vcmp.eq.f32.partialorder %v2648_v28, 8.507059e+37 }
 0x451   : > { %v2951_v25 = vadd.f32 %v2919_v58, %v2823_v12  ;;  %v2623_v58 = vor.u32 1.1754944e-38, %v2622_v4  ;;  %3921 = vlog2.f32 %v6440_v14  ;;  %v3914_v2 = vpop.eup %3913  ;;  %v2656_v13 = vmul.f32 %v6645_v18, %v2655_v34  ;;  %vm6728_vm6 = vmor %vm2644_vm4, %vm2645_vm3 }
 0x452   : > { %v6724_v59 = vpop.eup %3915  ;;  %vm2658_vm7 = vweird.f32 %v6440_v14  ;;  %vm2659_vm8 = vweird.f32 %v6645_v18  ;;  %v2665_v48 = vor.u32 1.1754944e-38, %v2664_v24  ;;  %v2647_v46 = vsel %vm6728_vm6, %v6595_v57, %v2643_v3 }
 0x453   : > { %v2624_v17 = vsel %vm6674_vm1, %v2623_v58, %v2619_v5  ;;  %v6734_v26 = vpop.eup %3917  ;;  %v3000_v12 = vsel %vm2968_vm14, %v2951_v25, 0.0  ;;  %vm2631_vm9 = vweird.f32 %v6624_v10  ;;  %vm6742_vm10 = vcmp.eq.f32.partialorder %v2662_v53, 8.507059e+37  ;;  %vm6781_vm13 = vmor %vm2658_vm7, %vm2659_vm8 }
 0x454   : > { %v2310_v42 = vpop.xlane.xlu2 %2309  ;;  %v6746_v39 = vmul.f32 0.6931472, %v3914_v2  ;;  %v2636_v56 = vand.u32 2147483648, %v6530_v52  ;;  %v2683_v25 = vsub.f32 1.0, %v2682_v47  ;;  %v3002_v57 = vsel %vm2968_vm14, %v6602_v8, 0.0 }
 0x455   : > { %v2822_v1 = vmul.f32 %v2582_v61, %v2310_v42  ;;  %vm2630_vm11 = vweird.f32 %v6530_v52  ;;  %v2634_v23 = vand.u32 2147483647, %v6530_v52  ;;  %v2657_v42 = vadd.f32 %v6645_v18, %v2656_v13 }
 0x456   : > { %v6697_v9 = vpop.xlane.xlu1 %2118  ;;  %v3920_v22 = vpop.eup %3919  ;;  %v2696_v58 = vmul.f32 %v6724_v59, %v6545_v16  ;;  %vm6763_vm12 = vmor %vm2630_vm11, %vm2631_vm9  ;;  %v2690_v53 = vand.u32 2147483647, %v6588_v15  ;;  %v2692_v24 = vand.u32 2147483648, %v6588_v15  ;;  %v2637_v3 = vor.u32 1.1754944e-38, %v2636_v56 }
 0x457   : > { %v2950_v40 = vadd.f32 %v2918_v41, %v2822_v1  ;;  %v2651_v41 = vor.u32 1.1754944e-38, %v2650_v60  ;;  %v3922_v28 = vpop.eup %3921  ;;  %v2668_v1 = vmul.f32 %v6734_v26, %v6626_v29  ;;  %v2325_v60 = vpop.xlane.xlu0 %2324  ;;  %3923 = vrcp.f32 %v6697_v9 }
 0x458   : > { %v2684_v47 = vmul.f32 %v6684_v43, %v2683_v25  ;;  %vm2635_vm15 = vcmp.eq.f32.partialorder %v2634_v23, 8.507059e+37  ;;  %3925 = vlog2.f32 %v6588_v15  ;;  %vm2686_vm0 = vweird.f32 %v6588_v15 }
 0x459   : > { %v2998_v21 = vsel %vm2968_vm14, %v2950_v40, 0.0  ;;  %v2652_v34 = vsel %vm6715_vm5, %v2651_v41, %v2647_v46  ;;  %v2923_v40 = vsub.f32 %v6476_v37, %v6746_v39  ;;  %v6789_v37 = vmul.f32 0.6931472, %v3922_v28 }
 0x45a   : > { %v2999_v20 = vadd.f32 %v2998_v21, %v2997_v54  ;;  %v2629_v54 = vadd.f32 %v6624_v10, %v2628_v6  ;;  %v2878_v6 = vmul.f32 0.6931472, %v3920_v22  ;;  %vm2687_vm1 = vweird.f32 %v6684_v43 }
 0x45b   : > { %v2669_v21 = vsub.f32 1.0, %v2668_v1  ;;  %3927 = vrcp.f32 %v6679_v33  ;;  %vm6794_vm2 = vcmp.eq.f32.partialorder %v2690_v53, 8.507059e+37  ;;  %v2693_v13 = vor.u32 1.1754944e-38, %v2692_v24  ;;  %vm6828_vm4 = vmor %vm2686_vm0, %vm2687_vm1 }
 0x45c   : > { %v3001_v4 = vadd.f32 %v3000_v12, %v2999_v20  ;;  %v6748_v27 = vpop.xlane.xlu2 %2115  ;;  %v2633_v5 = vsel %vm6763_vm12, %v6624_v10, %v2629_v54  ;;  %v2661_v10 = vsel %vm6781_vm13, %v6645_v18, %v2657_v42  ;;  %v2922_v18 = vsub.f32 %v6560_v30, %v2878_v6 }
 0x45d   : > { %v2638_v2 = vsel %vm2635_vm15, %v2637_v3, %v2633_v5  ;;  %v6798_v20 = vpop.eup %3923  ;;  %v2685_v12 = vadd.f32 %v6684_v43, %v2684_v47  ;;  %v6804_v46 = vsel %vm6742_vm10, %v2665_v48, %v2661_v10  ;;  %3929 = vlog2.f32 %v6545_v16 }
 0x45e   : > { %v2322_v38 = vpop.xlane.xlu1 %2321  ;;  %v3003_v52 = vadd.f32 %v3002_v57, %v3001_v4  ;;  %v2827_v54 = vmul.f32 %v2652_v34, %v2325_v60  ;;  %3931 = vlog2.f32 %v6626_v29  ;;  %v2697_v39 = vsub.f32 1.0, %v2696_v58  ;;  %v3926_v48 = vpop.eup %3925 }
 0x45f   : > { %v2826_v14 = vmul.f32 %v2638_v2, %v2322_v38  ;;  %3933 = vlog2.f32 %v6697_v9  ;;  %v2670_v30 = vmul.f32 %v6734_v26, %v2669_v21  ;;  %v2924_v25 = vsub.f32 %v6481_v36, %v6789_v37  ;;  %v6822_v23 = vpop.xlane.xlu0 %2130 }
 0x460   : > { %v2704_v61 = vand.u32 2147483647, %v6545_v16  ;;  %v2724_v22 = vmul.f32 %v6798_v20, %v6697_v9  ;;  %3935 = vrcp.f32 %v6748_v27  ;;  %vm2700_vm3 = vweird.f32 %v6545_v16 }
 0x461   : > { %vm2672_vm5 = vweird.f32 %v6626_v29  ;;  %vm2673_vm6 = vweird.f32 %v6734_v26  ;;  %vm2701_vm7 = vweird.f32 %v6724_v59  ;;  %v2706_v32 = vand.u32 2147483648, %v6545_v16  ;;  %v6836_v62 = vpop.eup %3927 }
 0x462   : > { %v2689_v15 = vsel %vm6828_vm4, %v6684_v43, %v2685_v12  ;;  %v2698_v58 = vmul.f32 %v6724_v59, %v2697_v39  ;;  %v6843_v38 = vmul.f32 0.6931472, %v3926_v48  ;;  %v2734_v8 = vand.u32 2147483648, %v6697_v9  ;;  %vm6876_vm10 = vmor %vm2672_vm5, %vm2673_vm6 }
 0x463   : > { %v3930_v1 = vpop.eup %3929  ;;  %v2676_v34 = vand.u32 2147483647, %v6626_v29  ;;  %v2725_v24 = vsub.f32 1.0, %v2724_v22  ;;  %vm6850_vm8 = vcmp.eq.f32.partialorder %v2704_v61, 8.507059e+37  ;;  %v2694_v47 = vsel %vm6794_vm2, %v2693_v13, %v2689_v15  ;;  %vm6893_vm12 = vmor %vm2700_vm3, %vm2701_vm7 }
 0x464   : > { %v2319_v49 = vpop.xlane.xlu2 %2318  ;;  %v3932_v5 = vpop.eup %3931  ;;  %v2678_v10 = vand.u32 2147483648, %v6626_v29  ;;  %vm2728_vm9 = vweird.f32 %v6697_v9  ;;  %v2926_v41 = vsub.f32 %v6483_v19, %v6843_v38  ;;  %v6870_v13 = vor.u32 1.1754944e-38, %v2734_v8 }
 0x465   : > { %v2825_v4 = vmul.f32 %v2624_v17, %v2319_v49  ;;  %v2954_v17 = vadd.f32 %v2922_v18, %v2826_v14  ;;  %v3934_v3 = vpop.eup %3933  ;;  %v2732_v14 = vand.u32 2147483647, %v6697_v9  ;;  %v2699_v18 = vadd.f32 %v6724_v59, %v2698_v58 }
 0x466   : > { %v6808_v56 = vpop.xlane.xlu1 %2127  ;;  %v6861_v2 = vpop.eup %3935  ;;  %v2726_v39 = vmul.f32 %v6798_v20, %v2725_v24  ;;  %vm2677_vm11 = vcmp.eq.f32.partialorder %v2676_v34, 8.507059e+37  ;;  %v2888_v19 = vmul.f32 0.6931472, %v3930_v1  ;;  %v6887_v29 = vmul.f32 0.6931472, %v3934_v3 }
 0x467   : > { %v2953_v57 = vadd.f32 %v2921_v51, %v2825_v4  ;;  %v2955_v51 = vadd.f32 %v2923_v40, %v2827_v54  ;;  %v3006_v53 = vsel %vm2968_vm14, %v2954_v17, 0.0  ;;  %3937 = vrcp.f32 %v6808_v56 }
 0x468   : > { %v2671_v40 = vadd.f32 %v6734_v26, %v2670_v30  ;;  %3939 = vrcp.f32 %v6822_v23  ;;  %v2884_v54 = vmul.f32 0.6931472, %v3932_v5  ;;  %v2710_v61 = vmul.f32 %v6861_v2, %v6748_v27 }
 0x469   : > { %v3004_v28 = vsel %vm2968_vm14, %v2953_v57, 0.0  ;;  %v3008_v21 = vsel %vm2968_vm14, %v2955_v51, 0.0  ;;  %v2679_v48 = vor.u32 1.1754944e-38, %v2678_v10  ;;  %v2707_v57 = vor.u32 1.1754944e-38, %v2706_v32  ;;  %v2334_v51 = vpop.xlane.xlu0 %2333 }
 0x46a   : > { %v3005_v60 = vadd.f32 %v3004_v28, %v3003_v52  ;;  %v2738_v52 = vmul.f32 %v6836_v62, %v6679_v33  ;;  %v2675_v30 = vsel %vm6876_vm10, %v6734_v26, %v2671_v40  ;;  %v2703_v26 = vsel %vm6893_vm12, %v6724_v59, %v2699_v18 }
 0x46b   : > { %v2748_v42 = vand.u32 2147483648, %v6679_v33  ;;  %vm2729_vm13 = vweird.f32 %v6798_v20  ;;  %vm6905_vm15 = vcmp.eq.f32.partialorder %v2732_v14, 8.507059e+37  ;;  %v2680_v28 = vsel %vm2677_vm11, %v2679_v48, %v2675_v30 }
 0x46c   : > { %v3007_v6 = vadd.f32 %v3006_v53, %v3005_v60  ;;  %v6858_v31 = vpop.xlane.xlu2 %2124  ;;  %v2925_v15 = vsub.f32 %v6608_v45, %v2884_v54  ;;  %v2739_v58 = vsub.f32 1.0, %v2738_v52  ;;  %v2727_v59 = vadd.f32 %v6798_v20, %v2726_v39  ;;  %vm6932_vm2 = vmor %vm2728_vm9, %vm2729_vm13 }
 0x46d   : > { %3941 = vrcp.f32 %v6858_v31  ;;  %v6897_v17 = vpop.eup %3937  ;;  %v2927_v60 = vsub.f32 %v6498_v35, %v2888_v19  ;;  %v2746_v38 = vand.u32 2147483647, %v6679_v33  ;;  %v2929_v34 = vsub.f32 %v6573_v44, %v6887_v29 }
 0x46e   : > { %v2331_v49 = vpop.xlane.xlu1 %2330  ;;  %v3009_v4 = vadd.f32 %v3008_v21, %v3007_v6  ;;  %3943 = vlog2.f32 %v6679_v33  ;;  %v6910_v1 = vpop.eup %3939  ;;  %v2766_v8 = vmul.f32 %v6897_v17, %v6808_v56  ;;  %v2708_v45 = vsel %vm6850_vm8, %v2707_v57, %v2703_v26 }
 0x46f   : > { %v2829_v32 = vmul.f32 %v2680_v28, %v2331_v49  ;;  %vm2742_vm0 = vweird.f32 %v6679_v33  ;;  %v2711_v53 = vsub.f32 1.0, %v2710_v61  ;;  %v2830_v24 = vmul.f32 %v2694_v47, %v2334_v51 }
 0x470   : > { %vm2743_vm1 = vweird.f32 %v6836_v62  ;;  %v2749_v35 = vor.u32 1.1754944e-38, %v2748_v42  ;;  %v2780_v52 = vmul.f32 %v6910_v1, %v6822_v23  ;;  %v2740_v47 = vmul.f32 %v6836_v62, %v2739_v58 }
 0x471   : > { %vm2714_vm3 = vweird.f32 %v6748_v27  ;;  %vm2715_vm4 = vweird.f32 %v6861_v2  ;;  %v2731_v21 = vsel %vm6932_vm2, %v6798_v20, %v2727_v59  ;;  %v2957_v14 = vadd.f32 %v2925_v15, %v2829_v32  ;;  %v2343_v58 = vpop.xlane.xlu0 %2342  ;;  %vm6977_vm7 = vmor %vm2742_vm0, %vm2743_vm1 }
 0x472   : > { %v2767_v49 = vsub.f32 1.0, %v2766_v8  ;;  %v2774_v12 = vand.u32 2147483647, %v6808_v56  ;;  %vm6947_vm5 = vcmp.eq.f32.partialorder %v2746_v38, 8.507059e+37  ;;  %v2712_v39 = vmul.f32 %v6861_v2, %v2711_v53  ;;  %vm6996_vm10 = vmor %vm2714_vm3, %vm2715_vm4 }
 0x473   : > { %v6924_v3 = vpop.eup %3941  ;;  %3945 = vlog2.f32 %v6748_v27  ;;  %v2958_v30 = vadd.f32 %v2926_v41, %v2830_v24  ;;  %v2776_v37 = vand.u32 2147483648, %v6808_v56  ;;  %v2736_v48 = vsel %vm6905_vm15, %v6870_v13, %v2731_v21 }
 0x474   : > { %v2328_v5 = vpop.xlane.xlu2 %2327  ;;  %v3944_v10 = vpop.eup %3943  ;;  %v2752_v20 = vmul.f32 %v6924_v3, %v6858_v31  ;;  %3947 = vlog2.f32 %v6808_v56  ;;  %v3012_v41 = vsel %vm2968_vm14, %v2957_v14, 0.0  ;;  %v2720_v26 = vand.u32 2147483648, %v6748_v27 }
 0x475   : > { %v2828_v40 = vmul.f32 %v6804_v46, %v2328_v5  ;;  %v2718_v46 = vand.u32 2147483647, %v6748_v27  ;;  %v6959_v61 = vmul.f32 0.6931472, %v3944_v10  ;;  %v2768_v42 = vmul.f32 %v6897_v17, %v2767_v49 }
 0x476   : > { %v2337_v6 = vpop.xlane.xlu1 %2336  ;;  %v2781_v28 = vsub.f32 1.0, %v2780_v52  ;;  %v3014_v15 = vsel %vm2968_vm14, %v2958_v30, 0.0  ;;  %vm2770_vm6 = vweird.f32 %v6808_v56  ;;  %v2753_v16 = vsub.f32 1.0, %v2752_v20 }
 0x477   : > { %v2956_v9 = vadd.f32 %v2924_v25, %v2828_v40  ;;  %v2831_v18 = vmul.f32 %v2708_v45, %v2337_v6  ;;  %v2741_v25 = vadd.f32 %v6836_v62, %v2740_v47  ;;  %vm6981_vm8 = vcmp.eq.f32.partialorder %v2774_v12, 8.507059e+37 }
 0x478   : > { %v2930_v5 = vsub.f32 %v6606_v63, %v6959_v61  ;;  %vm2771_vm9 = vweird.f32 %v6897_v17  ;;  %vm7000_vm11 = vcmp.eq.f32.partialorder %v2718_v46, 8.507059e+37  ;;  %v2769_v63 = vadd.f32 %v6897_v17, %v2768_v42 }
 0x479   : > { %v3010_v19 = vsel %vm2968_vm14, %v2956_v9, 0.0  ;;  %v2959_v22 = vadd.f32 %v2927_v60, %v2831_v18  ;;  %v3946_v59 = vpop.eup %3945  ;;  %v2777_v60 = vor.u32 1.1754944e-38, %v2776_v37  ;;  %v2745_v8 = vsel %vm6977_vm7, %v6836_v62, %v2741_v25  ;;  %vm7021_vm13 = vmor %vm2770_vm6, %vm2771_vm9 }
 0x47a   : > { %v3011_v36 = vadd.f32 %v3010_v19, %v3009_v4  ;;  %v2713_v4 = vadd.f32 %v6861_v2, %v2712_v39  ;;  %v3948_v33 = vpop.eup %3947  ;;  %v2782_v27 = vmul.f32 %v6910_v1, %v2781_v28  ;;  %v2750_v43 = vsel %vm6947_vm5, %v2749_v35, %v2745_v8 }
 0x47b   : > { %v3016_v45 = vsel %vm2968_vm14, %v2959_v22, 0.0  ;;  %v2721_v6 = vor.u32 1.1754944e-38, %v2720_v26  ;;  %v2890_v47 = vmul.f32 0.6931472, %v3946_v59  ;;  %v2754_v46 = vmul.f32 %v6924_v3, %v2753_v16 }
 0x47c   : > { %v3013_v57 = vadd.f32 %v3012_v41, %v3011_v36  ;;  %v6967_v51 = vpop.xlane.xlu2 %2133  ;;  %v2717_v52 = vsel %vm6996_vm10, %v6861_v2, %v2713_v4  ;;  %v2833_v10 = vmul.f32 %v2736_v48, %v2343_v58  ;;  %v2898_v21 = vmul.f32 0.6931472, %v3948_v33  ;;  %v2352_v48 = vpop.xlane.xlu0 %2351 }
 0x47d   : > { %3949 = vrcp.f32 %v6967_v51  ;;  %vm2784_vm12 = vweird.f32 %v6822_v23  ;;  %v2722_v35 = vsel %vm7000_vm11, %v2721_v6, %v2717_v52  ;;  %vm2785_vm15 = vweird.f32 %v6910_v1 }
 0x47e   : > { %v3015_v38 = vadd.f32 %v3014_v15, %v3013_v57  ;;  %3951 = vlog2.f32 %v6858_v31  ;;  %v2346_v40 = vpop.xlane.xlu1 %2345  ;;  %v2788_v9 = vand.u32 2147483647, %v6822_v23  ;;  %v2790_v18 = vand.u32 2147483648, %v6822_v23  ;;  %vm7050_vm1 = vmor %vm2784_vm12, %vm2785_vm15 }
 0x47f   : > { %3953 = vlog2.f32 %v6822_v23  ;;  %v2773_v49 = vsel %vm7021_vm13, %v6897_v17, %v2769_v63  ;;  %v2834_v12 = vmul.f32 %v2750_v43, %v2346_v40  ;;  %v2783_v39 = vadd.f32 %v6910_v1, %v2782_v27 }
 0x480   : > { %v3017_v62 = vadd.f32 %v3016_v45, %v3015_v38  ;;  %v2928_v20 = vsub.f32 %v6638_v7, %v2890_v47  ;;  %v2755_v36 = vadd.f32 %v6924_v3, %v2754_v46  ;;  %vm2757_vm0 = vweird.f32 %v6924_v3 }
 0x481   : > { %v2961_v37 = vadd.f32 %v2929_v34, %v2833_v10  ;;  %v2932_v17 = vsub.f32 %v6652_v50, %v2898_v21  ;;  %v2762_v25 = vand.u32 2147483648, %v6858_v31  ;;  %v2778_v41 = vsel %vm6981_vm8, %v2777_v60, %v2773_v49 }
 0x482   : > { %vm2756_vm2 = vweird.f32 %v6858_v31  ;;  %v2760_v44 = vand.u32 2147483647, %v6858_v31  ;;  %v2962_v29 = vadd.f32 %v2930_v5, %v2834_v12  ;;  %v2787_v34 = vsel %vm7050_vm1, %v6910_v1, %v2783_v39 }
 0x483   : > { %v7015_v14 = vpop.eup %3949  ;;  %vm7059_vm3 = vmor %vm2756_vm2, %vm2757_vm0  ;;  %3955 = vlog2.f32 %v6967_v51  ;;  %v2791_v42 = vor.u32 1.1754944e-38, %v2790_v18  ;;  %v2836_v28 = vmul.f32 %v2778_v41, %v2352_v48  ;;  %vm2789_vm4 = vcmp.eq.f32.partialorder %v2788_v9, 8.507059e+37 }
 0x484   : > { %v2794_v56 = vmul.f32 %v7015_v14, %v6967_v51  ;;  %v2340_v54 = vpop.xlane.xlu2 %2339  ;;  %v3952_v30 = vpop.eup %3951  ;;  %v2759_v31 = vsel %vm7059_vm3, %v6924_v3, %v2755_v36  ;;  %v2763_v58 = vor.u32 1.1754944e-38, %v2762_v25  ;;  %v3020_v13 = vsel %vm2968_vm14, %v2961_v37, 0.0 }
 0x485   : > { %v2832_v19 = vmul.f32 %v2722_v35, %v2340_v54  ;;  %v3954_v50 = vpop.eup %3953  ;;  %v2896_v57 = vmul.f32 0.6931472, %v3952_v30  ;;  %v2792_v16 = vsel %vm2789_vm4, %v2791_v42, %v2787_v34  ;;  %vm2761_vm5 = vcmp.eq.f32.partialorder %v2760_v44, 8.507059e+37 }
 0x486   : > { %v2795_v61 = vsub.f32 1.0, %v2794_v56  ;;  %v2355_v1 = vpop.xlane.xlu1 %2354  ;;  %v2900_v59 = vmul.f32 0.6931472, %v3954_v50  ;;  %v3022_v32 = vsel %vm2968_vm14, %v2962_v29, 0.0  ;;  %v2764_v38 = vsel %vm2761_vm5, %v2763_v58, %v2759_v31 }
 0x487   : > { %v2960_v22 = vadd.f32 %v2928_v20, %v2832_v19  ;;  %v2931_v8 = vsub.f32 %v6659_v55, %v2896_v57  ;;  %v2837_v3 = vmul.f32 %v2792_v16, %v2355_v1  ;;  %vm2799_vm6 = vweird.f32 %v7015_v14 }
 0x488   : > { %v2796_v4 = vmul.f32 %v7015_v14, %v2795_v61  ;;  %v2964_v24 = vadd.f32 %v2932_v17, %v2836_v28  ;;  %v2933_v40 = vsub.f32 %v6661_v0, %v2900_v59  ;;  %vm2798_vm7 = vweird.f32 %v6967_v51  ;;  %v2967_v17 = vld [vmem:[#allocation2] sm:$0xff] }
 0x489   : > { %v3018_v23 = vsel %vm2968_vm14, %v2960_v22, 0.0  ;;  %v3956_v53 = vpop.eup %3955  ;;  %v2802_v27 = vand.u32 2147483647, %v6967_v51  ;;  %vm2800_vm8 = vmor %vm2798_vm7, %vm2799_vm6  ;;  %v1750_v21 = vmul.f32 0.6931472, %v6710_v11 }
 0x48a   : > { %v3019_v15 = vadd.f32 %v3018_v23, %v3017_v62  ;;  %v2797_v45 = vadd.f32 %v7015_v14, %v2796_v4  ;;  %v2804_v62 = vand.u32 2147483648, %v6967_v51  ;;  %v2965_v55 = vadd.f32 %v2933_v40, %v2837_v3 }
 0x48b   : > { %v2902_v47 = vmul.f32 0.6931472, %v3956_v53  ;;  %v3026_v2 = vsel %vm2968_vm14, %v2964_v24, 0.0  ;;  %vm2803_vm9 = vcmp.eq.f32.partialorder %v2802_v27, 8.507059e+37 }
 0x48c   : > { %v3021_v60 = vadd.f32 %v3020_v13, %v3019_v15  ;;  %v2349_v5 = vpop.xlane.xlu2 %2348  ;;  %v2801_v6 = vsel %vm2800_vm8, %v7015_v14, %v2797_v45  ;;  %v2805_v10 = vor.u32 1.1754944e-38, %v2804_v62  ;;  %v3028_v18 = vsel %vm2968_vm14, %v2965_v55, 0.0 }
 0x48d   : > { %v2835_v33 = vmul.f32 %v2764_v38, %v2349_v5  ;;  %v2934_v51 = vsub.f32 %v1750_v21, %v2902_v47 }
 0x48e   : > { %v3023_v63 = vadd.f32 %v3022_v32, %v3021_v60  ;;  %v2806_v35 = vsel %vm2803_vm9, %v2805_v10, %v2801_v6 }
 0x48f   : > { %v2963_v52 = vadd.f32 %v2931_v8, %v2835_v33 }
 0x491   : > { %v3024_v43 = vsel %vm2968_vm14, %v2963_v52, 0.0 }
 0x492   : > { %v3025_v46 = vadd.f32 %v3024_v43, %v3023_v63 }
 0x494   : > { %v3027_v0 = vadd.f32 %v3026_v2, %v3025_v46  ;;  %v2358_v9 = vpop.xlane.xlu2 %2357 }
 0x495   : > { %v2838_v49 = vmul.f32 %v2806_v35, %v2358_v9 }
 0x496   : > { %v3029_v56 = vadd.f32 %v3028_v18, %v3027_v0 }
 0x497   : > { %v2966_v12 = vadd.f32 %v2934_v51, %v2838_v49 }
 0x499   : > { %v3030_v54 = vsel %vm2968_vm14, %v2966_v12, 0.0 }
 0x49a   : > { %v3031_v14 = vadd.f32 %v3030_v54, %v3029_v56 }
 0x49c   : > { %3032 = vadd.xlane.f32.xlu0 %v3031_v14 }
 0x50f   : > { %v3033_v39 = vpop.xlane.xlu0 %3032 }
 0x510   : > { %v3034_v30 = vrot.slane %v3033_v39, 4 }
 0x512   : > { %v3035_v20 = vadd.f32 %v3034_v30, %v3033_v39 }
 0x514   : > { %v3036_v11 = vrot.slane %v3035_v20, 2 }
 0x516   : > { %v3037_v19 = vadd.f32 %v3036_v11, %v3035_v20 }
 0x518   : > { %v3038_v36 = vrot.slane %v3037_v19, 1 }
 0x51a   : > { %v3039_v37 = vadd.f32 %v3038_v36, %v3037_v19 }
 0x51c   : > { %3388 = vpush %v3039_v37 }
 0x54d   : > { %s3389_s29 = spop %3388  ;;  %3047 = sbr.rel (%p3379_p7) target bundleno = 1370 (0x55a), region = 60 }
 0x54e   : > { %v3041_v25 = vstv %s3389_s29 }
 0x54f   : > { %v3042_v61 = vadd.f32 %v3041_v25, %v2967_v17 }
 0x551   : > { %3043 = vst [vmem:[#allocation2] sm:$0xff] %v3042_v61 }
 0x558   : > { %v3048_v48 = vld [vmem:[#allocation2] sm:$0xff] }
 0x559   : > { %3049 = vst [vmem:[%s361_s13] sm:$0xff] %v3048_v48 }
 0x55a PF: > { %s7682_s15 = sld [smem:[#allocation20_spill]]  ;;  %s3064_s30 = sshll.u32 %s361_s13, 4  ;;  %s3065_s30 = int_to_ptr.vmem [resolvable:$true] %s3064_s30 }
 0x55b   : > { %s7684_s8 = sld [smem:[#allocation118_spill]]  ;;  %s3051_s24 = scalar_lea.sflag [#allocation5], %s4424_s0 }
 0x560   : > { %s3381_s22 = sshll.u32 %s7682_s15, 3 }
 0x561   : > { %s3062_s18 = scalar_lea.hbm %s7684_s8, %s3381_s22  ;;  %s4097_s9 = scalar_lea.hbm %s7684_s8, 16 }
 0x562   : > { %s3066_s1 = sshll.u32 %s3062_s18, 4  ;;  %s3067_s1 = int_to_ptr.hbm [resolvable:$true] %s3066_s1 }
 0x563   : > { %s4091_s25 = sshra.s32 %s3067_s1, 4  ;;  %s4092_s25 = int_to_ptr.hbm [resolvable:$true] %s4091_s25 }
 0x564   : > { %s4093_s27 = scalar_lea.hbm %s4092_s25, 8  ;;  %p4098_p5 = scmp.lt.s32.totalorder %s4092_s25, %s7684_s8 }
 0x565   : > { %p4094_p12 = scmp.ne.s32.totalorder %s4092_s25, %s4093_s27  ;;  %p4099_p6 = scmp.lt.s32.totalorder %s4097_s9, %s4093_s27 }
 0x567   : > { %p4095_p3 = pnand %p4094_p12, %p4385_p0  ;;  %p4100_p10 = por %p4099_p6, %p4098_p5 }
 0x569   : > { %p4096_p4 = pneg %p4095_p3 }
 0x56b   : > { %p4101_p1 = pnand %p4100_p10, %p4096_p4 }
 0x56d   : > { %4104 = shalt.err (!%p4101_p1)
}
 0x56e   : > { %3398 = dma.vmem_to_hbm [thread:$0]  (%p4385_p0), %s3065_s30, 128, %s3067_s1, %s3051_s24  }
 0x56f PF: > { %s7685_s0 = sld [smem:[#allocation22_spill]] }
 0x570   : > { %s7686_s20 = sld [smem:[#allocation17_spill]] }
 0x575   : > { %p3418_p11 = scmp.ge.s32.totalorder %s7685_s0, 2 }
 0x576   : > { %s3078_s12 = sand.u32 1, %s7686_s20  }
 0x577   : > { %p3414_p2 = pnand %p3418_p11, %p4392_p8  ;;  %s3079_s13 = scalar_lea.sflag [#allocation5], %s3078_s12 }
 0x579   : > { %p3415_p13 = pneg %p3414_p2 }
 0x57b   : > { %4166 = dma.done.wait (%p3415_p13), %s3079_s13, 128  }
 0x57c   : > { %4168 = vsyncadd (%p3415_p13), %s3079_s13, 4294967168  ;;  %s26_s25 = sadd.s32 1, %s7685_s0   ;;  %s7688_s28 = sld [smem:[#allocation25_spill]] }
 0x57d   : > { %p23_p9 = scmp.ge.s32.totalorder %s26_s25, 6   ;;  %s7689_s29 = sld [smem:[#allocation18_spill]] }
 0x57e   : > { %s7690_s20 = sld [smem:[#allocation29_spill]]  ;;  %s7694_s15 = smov %s4175_s16 }
 0x57f   : > { %s7691_s22 = sld [smem:[#allocation21_spill]]  ;;  %s7695_s16 = smov %s4179_s17 }
 0x580   : > { %s7692_s5 = sld [smem:[#allocation23_spill]]  ;;  %s7697_s18 = smov %s4187_s19 }
 0x581   : > { %s7693_s24 = sld [smem:[#allocation26_spill]]  ;;  %s7699_s21 = smov %s4203_s23 }
 0x582   : > { %s7696_s17 = smov %s7688_s28  ;;  %25 = sbr.rel (!%p23_p9) target bundleno = 17 (0x11), region = 126 }
 0x583   : > { %s7698_s19 = smov %s7689_s29 }
 0x586   : > { %s7700_s23 = smov %s7692_s5 }
 0x587   :  { %3085 = vsyncpa [#allocation4], 1 }
 0x588   :  { %3087 = vsyncpa [#allocation4 + $0x1], 1 }
 0x589   :  { %3088 = vsyncpa [#allocation7], 1 }
 0x58a   :  { %3090 = vsyncpa [#allocation7 + $0x1], 1 }
 0x58b   :  { %3091 = vsyncpa [#allocation10], 1 }
 0x58c   :  { %3093 = vsyncpa [#allocation10 + $0x1], 1 }
 0x58d   :  { %3094 = vsyncpa [#allocation5], 1 }
 0x58e   :  { %3096 = vsyncpa [#allocation5 + $0x1], 1 }

</bundles_post_ra>
